<compile_context>
chip_gen: v6e
topology: v6e:2x2x1
jax: 0.10.0
libtpu: 0.0.40
codegen_flags: <defaults>
</compile_context>

<pallas_src>
import jax
import jax.numpy as jnp
import numpy as np
from jax import lax
from jax.experimental import pallas as pl
from jax.experimental.pallas import tpu as pltpu

EPS = 1e-5                      # nn.BatchNorm2d default eps
MXU_DTYPE = jnp.bfloat16        # MXU operand dtype (f32 accumulation)


def _conv_out(n):
    # Conv2d(kernel=3, stride=3, padding=3) output spatial size
    return (n + 2 * 3 - 3) // 3 + 1


def _round_up(n, m):
    return -(-n // m) * m


def _taps(oh, ow, in_h, in_w):
    """Static (tap_index = kh*3+kw, flat source position = r*in_w + c) list for one
    kernel-3/stride-3/padding-3 conv output position, keeping only taps that land
    inside the unpadded input -- zero-padding taps are skipped entirely."""
    out = []
    for kh in range(3):
        r = 3 * oh + kh - 3
        if not (0 <= r < in_h):
            continue
        for kw in range(3):
            c = 3 * ow + kw - 3
            if not (0 <= c < in_w):
                continue
            out.append((kh * 3 + kw, r * in_w + c))
    return out


# ---------------------------------------------------------------------------
# Fused forward kernel (one batch tile per grid step)
# ---------------------------------------------------------------------------
def _make_fused_kernel(OH1, OW1, P1H, P1W, OH3, OW3, OH4, OW4):
    def kernel(p11_ref, w11_ref, b11_ref, w12_ref, b12_ref,
               w21_ref, b21_ref, w22_ref, b22_ref,
               fw1_ref, fb1_ref, fw2_ref, fb2_ref,
               o_ref, h1_ref, pool1_ref):
        TB = p11_ref.shape[1]
        C1 = w11_ref.shape[-1]          # Conv11 out / Conv12 in  (128)
        C2 = w12_ref.shape[-1]          # Conv12 out / Conv21 in  (128)
        C3 = w21_ref.shape[-1]          # Conv21 out / Conv22 in  (64)
        C4 = w22_ref.shape[-1]          # Conv22 out              (64)

        def conv_position(read_slab, w_ref, bias_full, relu_bias, taps):
            # One conv output position: bias-initialised f32 accumulator, one bf16 MXU
            # matmul per *valid* tap, ReLU epilogue.  All-padding positions are just
            # the (hoisted) relu(bias) constant.
            if not taps:
                return relu_bias
            acc = bias_full
            for t, src in taps:
                acc = acc + jnp.dot(read_slab(src), w_ref[t],
                                    preferred_element_type=jnp.float32)
            return jnp.maximum(acc, 0.0)

        # ---- layer_1 / Conv11 + BN + ReLU: one (OW1*TB, 9) x (9, C1) matmul per
        #      output row, written directly into the (pos, TB, C1) scratch Conv12 reads.
        w11 = w11_ref[...]                                       # (9, C1) bf16
        b11f = jnp.broadcast_to(b11_ref[...], (OW1 * TB, C1))    # hoisted bias
        for r in range(OH1):
            pch = p11_ref[pl.ds(r * OW1, OW1), :, :].reshape(OW1 * TB, 9)
            y = jnp.dot(pch, w11, preferred_element_type=jnp.float32)
            y = jnp.maximum(y + b11f, 0.0)
            h1_ref[pl.ds(r * OW1, OW1), :, :] = (
                y.reshape(OW1, TB, C1).astype(h1_ref.dtype))

        # ---- Conv12 + BN + ReLU fused with MaxPool1 (Dropout1 = identity): pooled
        #      slabs go straight into Conv21's (pos, TB, C2) scratch (dense stores).
        b12f = jnp.broadcast_to(b12_ref[...], (TB, C2))
        rb12 = jnp.maximum(b12f, 0.0)
        for pi in range(P1H):
            for pj in range(P1W):
                pooled = None
                for di in range(2):
                    for dj in range(2):
                        taps = _taps(2 * pi + di, 2 * pj + dj, OH1, OW1)
                        y = conv_position(lambda p: h1_ref[p], w12_ref,
                                          b12f, rb12, taps)
                        pooled = y if pooled is None else jnp.maximum(pooled, y)
                pool1_ref[pi * P1W + pj] = pooled.astype(pool1_ref.dtype)

        # ---- layer_2 / Conv21 + BN + ReLU (2x2 spatial -> keep outputs in registers)
        b21f = jnp.broadcast_to(b21_ref[...], (TB, C3))
        rb21 = jnp.maximum(b21f, 0.0)
        h3 = []
        for oh in range(OH3):
            for ow in range(OW3):
                taps = _taps(oh, ow, P1H, P1W)
                h3.append(conv_position(lambda p: pool1_ref[p], w21_ref,
                                        b21f, rb21, taps))

        # ---- Conv22 + BN + ReLU
        b22f = jnp.broadcast_to(b22_ref[...], (TB, C4))
        rb22 = jnp.maximum(b22f, 0.0)
        h4 = []
        for oh in range(OH4):
            for ow in range(OW4):
                taps = _taps(oh, ow, OH3, OW3)
                h4.append(conv_position(lambda p: h3[p].astype(MXU_DTYPE), w22_ref,
                                        b22f, rb22, taps))

        # ---- MaxPool2 -> (TB, C4); final pooled spatial size is 1x1 (asserted in the
        #      wrapper); Dropout2 = identity.
        f = None
        for di in range(2):
            for dj in range(2):
                v = h4[di * OW4 + dj]
                f = v if f is None else jnp.maximum(f, v)

        # ---- fully_connected: Linear(64,32) -> Linear(32,1 padded to 128) -> sigmoid
        z = jnp.dot(f, fw1_ref[...], preferred_element_type=jnp.float32) + fb1_ref[...]
        z = jnp.dot(z, fw2_ref[...], preferred_element_type=jnp.float32) + fb2_ref[...]
        ez = jnp.exp(-jnp.abs(z))                       # numerically stable sigmoid
        o_ref[...] = jnp.where(z >= 0.0, 1.0 / (1.0 + ez),
                               ez / (1.0 + ez)).astype(o_ref.dtype)

    return kernel


# ---------------------------------------------------------------------------
# Wrapper: BN folding, first-layer im2col, batch tiling, pallas_call
# ---------------------------------------------------------------------------
def classification_cnn_forward(x, params, *, tile_b=32, mxu_dtype=MXU_DTYPE):
    """x: (B, H, W) float32 (the module does x.unsqueeze(1) itself). Returns (B, 1)."""
    B, H, W = x.shape
    OH1, OW1 = _conv_out(H), _conv_out(W)          # Conv11 out
    OH2, OW2 = _conv_out(OH1), _conv_out(OW1)      # Conv12 out
    P1H, P1W = OH2 // 2, OW2 // 2                  # MaxPool1 out
    OH3, OW3 = _conv_out(P1H), _conv_out(P1W)      # Conv21 out
    OH4, OW4 = _conv_out(OH3), _conv_out(OW3)      # Conv22 out
    if OH4 // 2 != 1 or OW4 // 2 != 1:
        # TODO(synk): PyTorch's x.view(-1, 64) only matches NHWC flatten when the
        # final pooled spatial size is 1x1 (true for 16x16 inputs).
        raise ValueError("final pooled spatial size must be 1x1")

    # --- batch tile: multiple of 16 so (TB, C) slabs are exact bf16 (16,128) tiles
    #     and all in-kernel reshapes are layout-free.  (v7x note: keep Bp//tb >= 2 at
    #     large batch so the "parallel" grid axis shards across both TensorCores.)
    tb = max(16, (int(tile_b) // 16) * 16)
    tb = min(tb, _round_up(B, 16))
    Bp = _round_up(B, tb)

    # --- Conv11 im2col in the wrapper (C_in = 1; stride == kernel == 3 -> a pure
    #     pad/reshape/transpose), laid out (position, batch, tap) so the kernel's
    #     flatten to (pos*TB, 9) is free.  Passed as bf16 (MXU operand dtype).
    xp = jnp.pad(x, ((0, Bp - B), (3, 3 * OH1 - 3 - H), (3, 3 * OW1 - 3 - W)))
    patches = xp.reshape(Bp, OH1, 3, OW1, 3).transpose(1, 3, 0, 2, 4)
    patches = patches.reshape(OH1 * OW1, Bp, 9).astype(mxu_dtype)

    # --- fold BatchNorm into conv weights/bias; tap-major (9, Cin, Cout) bf16 weights
    def fold(sfx):
        w, b = params['w' + sfx], params['b' + sfx]
        g, be = params['g' + sfx], params['be' + sfx]
        m, v = params['m' + sfx], params['v' + sfx]
        s = g / jnp.sqrt(v + EPS)                               # (OC,)
        oc, ic = w.shape[0], w.shape[1]
        wf = (jnp.transpose(w, (2, 3, 1, 0)) * s).reshape(9, ic, oc)
        bias = (be + (b - m) * s).reshape(1, -1).astype(jnp.float32)
        return wf.astype(mxu_dtype), bias

    w11, b11 = fold('11')
    w11 = w11.reshape(9, -1)                                    # IC == 1 -> (9, 128)
    w12, b12 = fold('12')
    w21, b21 = fold('21')
    w22, b22 = fold('22')

    fw1 = params['fw1'].T.astype(jnp.float32)                   # (64, 32)
    fb1 = params['fb1'].reshape(1, -1).astype(jnp.float32)      # (1, 32)
    # pad the 1-wide Linear2 output to 128 lanes so the only HBM store is lane-dense
    fw2 = jnp.zeros((32, 128), jnp.float32).at[:, 0].set(params['fw2'][0])
    fb2 = jnp.zeros((1, 128), jnp.float32).at[0, 0].set(params['fb2'][0])

    c1 = w11.shape[-1]                                          # 128
    c2 = w12.shape[-1]                                          # 128
    scratch = [
        pltpu.VMEM((OH1 * OW1, tb, c1), mxu_dtype),             # Conv11 output slabs
        pltpu.VMEM((P1H * P1W, tb, c2), mxu_dtype),             # MaxPool1 output slabs
    ]

    def rep(a):
        nd = a.ndim
        return pl.BlockSpec(a.shape, lambda i, _n=nd: (0,) * _n)

    out = pl.pallas_call(
        _make_fused_kernel(OH1, OW1, P1H, P1W, OH3, OW3, OH4, OW4),
        out_shape=jax.ShapeDtypeStruct((Bp, 128), jnp.float32),
        grid=(Bp // tb,),
        in_specs=[pl.BlockSpec((OH1 * OW1, tb, 9), lambda i: (0, i, 0)),
                  rep(w11), rep(b11), rep(w12), rep(b12),
                  rep(w21), rep(b21), rep(w22), rep(b22),
                  rep(fw1), rep(fb1), rep(fw2), rep(fb2)],
        out_specs=pl.BlockSpec((tb, 128), lambda i: (i, 0)),
        scratch_shapes=scratch,
        compiler_params=pltpu.CompilerParams(dimension_semantics=("parallel",)),
    )(patches, w11, b11, w12, b12, w21, b21, w22, b22, fw1, fb1, fw2, fb2)

    return out[:B, :1]


# ---------------------------------------------------------------------------
# Deterministic synthetic parameters (shapes per the module __init__)
# ---------------------------------------------------------------------------
def init_params(key):
    def conv_block(k, oc, ic, ksz):
        kw, kb, kg, kbe, km, kv = jax.random.split(k, 6)
        return (0.05 * jax.random.normal(kw, (oc, ic, ksz, ksz), jnp.float32),
                0.05 * jax.random.normal(kb, (oc,), jnp.float32),
                1.0 + 0.05 * jax.random.normal(kg, (oc,), jnp.float32),
                0.05 * jax.random.normal(kbe, (oc,), jnp.float32),
                0.05 * jax.random.normal(km, (oc,), jnp.float32),
                0.5 + 0.1 * jnp.abs(jax.random.normal(kv, (oc,), jnp.float32)))

    k11, k12, k21, k22, kf1, kf2 = jax.random.split(key, 6)
    p = {}
    for name, kk, oc, ic in (('11', k11, 128, 1), ('12', k12, 128, 128),
                             ('21', k21, 64, 128), ('22', k22, 64, 64)):
        w, b, g, be, m, v = conv_block(kk, oc, ic, 3)
        p['w' + name], p['b' + name] = w, b
        p['g' + name], p['be' + name] = g, be
        p['m' + name], p['v' + name] = m, v
    ka, kb_ = jax.random.split(kf1)
    p['fw1'] = 0.1 * jax.random.normal(ka, (32, 64), jnp.float32)   # Linear(64, 32)
    p['fb1'] = 0.1 * jax.random.normal(kb_, (32,), jnp.float32)
    kc, kd = jax.random.split(kf2)
    p['fw2'] = 0.1 * jax.random.normal(kc, (1, 32), jnp.float32)    # Linear(32, 1)
    p['fb2'] = 0.1 * jax.random.normal(kd, (1,), jnp.float32)
    return p


# ---------------------------------------------------------------------------
# Pure-JAX f32 reference (numerical verification of the Pallas path)
# ---------------------------------------------------------------------------
def reference_forward(x, p):
    def conv(h, w, b, stride, pad):
        out = lax.conv_general_dilated(
            h, jnp.transpose(w, (2, 3, 1, 0)),
            window_strides=(stride, stride),
            padding=((pad, pad), (pad, pad)),
            dimension_numbers=('NHWC', 'HWIO', 'NHWC'))
        return out + b

    def bn(h, g, be, m, v):
        return (h - m) / jnp.sqrt(v + EPS) * g + be

    def mp(h):
        B, H, W, C = h.shape
        return h[:, :2 * (H // 2), :2 * (W // 2), :].reshape(
            B, H // 2, 2, W // 2, 2, C).max(axis=(2, 4))

    h = x[..., None]
    h = jax.nn.relu(bn(conv(h, p['w11'], p['b11'], 3, 3), p['g11'], p['be11'], p['m11'], p['v11']))
    h = jax.nn.relu(bn(conv(h, p['w12'], p['b12'], 3, 3), p['g12'], p['be12'], p['m12'], p['v12']))
    h = mp(h)
    h = jax.nn.relu(bn(conv(h, p['w21'], p['b21'], 3, 3), p['g21'], p['be21'], p['m21'], p['v21']))
    h = jax.nn.relu(bn(conv(h, p['w22'], p['b22'], 3, 3), p['g22'], p['be22'], p['m22'], p['v22']))
    h = mp(h)
    h = h.reshape(-1, 64)
    h = h @ p['fw1'].T + p['fb1']
    h = h @ p['fw2'].T + p['fb2']
    return jax.nn.sigmoid(h)


if __name__ == "__main__":
    key = jax.random.PRNGKey(0)
    kx, kp = jax.random.split(key)
    # (B, H, W) = (2, 16, 16): 16 -> conv 7 -> conv 4 -> pool 2 -> conv 2 -> conv 2 -> pool 1
    x = jax.random.normal(kx, (2, 16, 16), jnp.float32)
    params = init_params(kp)

    fwd = jax.jit(classification_cnn_forward)
    out = jax.block_until_ready(fwd(x, params))

    ref = reference_forward(x, params)
    assert out.shape == (2, 1)
    # bf16 MXU operands with f32 accumulation -> compare at bf16-appropriate tolerance
    np.testing.assert_allclose(np.asarray(out), np.asarray(ref), rtol=2e-2, atol=2e-2)
    print("KERNEL_OK")
</pallas_src>

<mosaic_0001>
module attributes {stable_mosaic.version = 11 : i64} {
  func.func @kernel(%arg0: i32, %arg1: memref<49x16x9xbf16, #tpu.memory_space<vmem>>, %arg2: memref<9x128xbf16, #tpu.memory_space<vmem>>, %arg3: memref<1x128xf32, #tpu.memory_space<vmem>>, %arg4: memref<9x128x128xbf16, #tpu.memory_space<vmem>>, %arg5: memref<1x128xf32, #tpu.memory_space<vmem>>, %arg6: memref<9x128x64xbf16, #tpu.memory_space<vmem>>, %arg7: memref<1x64xf32, #tpu.memory_space<vmem>>, %arg8: memref<9x64x64xbf16, #tpu.memory_space<vmem>>, %arg9: memref<1x64xf32, #tpu.memory_space<vmem>>, %arg10: memref<64x32xf32, #tpu.memory_space<vmem>>, %arg11: memref<1x32xf32, #tpu.memory_space<vmem>>, %arg12: memref<32x128xf32, #tpu.memory_space<vmem>>, %arg13: memref<1x128xf32, #tpu.memory_space<vmem>>, %arg14: memref<16x128xf32, #tpu.memory_space<vmem>>, %arg15: memref<49x16x128xbf16, #tpu.memory_space<vmem>>, %arg16: memref<4x16x128xbf16, #tpu.memory_space<vmem>>) attributes {dimension_semantics = [#tpu.dimension_semantics<parallel>], iteration_bounds = array<i64: 1>, scalar_prefetch = 0 : i64, scratch_operands = 2 : i64, tpu.core_type = #tpu.core_type<tc>, window_params = [{transform_indices = @transform_0, window_bounds = array<i64: 49, 16, 9>}, {pipeline_mode = #tpu.pipeline_mode<synchronous>, transform_indices = @transform_1, window_bounds = array<i64: 9, 128>}, {pipeline_mode = #tpu.pipeline_mode<synchronous>, transform_indices = @transform_2, window_bounds = array<i64: 1, 128>}, {pipeline_mode = #tpu.pipeline_mode<synchronous>, transform_indices = @transform_3, window_bounds = array<i64: 9, 128, 128>}, {pipeline_mode = #tpu.pipeline_mode<synchronous>, transform_indices = @transform_4, window_bounds = array<i64: 1, 128>}, {pipeline_mode = #tpu.pipeline_mode<synchronous>, transform_indices = @transform_5, window_bounds = array<i64: 9, 128, 64>}, {pipeline_mode = #tpu.pipeline_mode<synchronous>, transform_indices = @transform_6, window_bounds = array<i64: 1, 64>}, {pipeline_mode = #tpu.pipeline_mode<synchronous>, transform_indices = @transform_7, window_bounds = array<i64: 9, 64, 64>}, {pipeline_mode = #tpu.pipeline_mode<synchronous>, transform_indices = @transform_8, window_bounds = array<i64: 1, 64>}, {pipeline_mode = #tpu.pipeline_mode<synchronous>, transform_indices = @transform_9, window_bounds = array<i64: 64, 32>}, {pipeline_mode = #tpu.pipeline_mode<synchronous>, transform_indices = @transform_10, window_bounds = array<i64: 1, 32>}, {pipeline_mode = #tpu.pipeline_mode<synchronous>, transform_indices = @transform_11, window_bounds = array<i64: 32, 128>}, {pipeline_mode = #tpu.pipeline_mode<synchronous>, transform_indices = @transform_12, window_bounds = array<i64: 1, 128>}, {transform_indices = @transform_13, window_bounds = array<i64: 16, 128>}]} {
    %c0 = arith.constant 0 : index
    %c0_0 = arith.constant 0 : index
    %0 = vector.load %arg2[%c0, %c0_0] : memref<9x128xbf16, #tpu.memory_space<vmem>>, vector<9x128xbf16>
    %c0_1 = arith.constant 0 : index
    %c0_2 = arith.constant 0 : index
    %1 = vector.load %arg3[%c0_1, %c0_2] : memref<1x128xf32, #tpu.memory_space<vmem>>, vector<1x128xf32>
    %2 = vector.shape_cast %1 : vector<1x128xf32> to vector<1x128xf32>
    %3 = vector.broadcast %2 : vector<1x128xf32> to vector<112x128xf32>
    %c0_3 = arith.constant 0 : index
    %c0_4 = arith.constant 0 : index
    %c0_5 = arith.constant 0 : index
    %4 = vector.load %arg1[%c0_3, %c0_4, %c0_5] : memref<49x16x9xbf16, #tpu.memory_space<vmem>>, vector<7x16x9xbf16>
    %5 = vector.shape_cast %4 : vector<7x16x9xbf16> to vector<112x9xbf16>
    %cst = arith.constant dense<0.000000e+00> : vector<112x128xf32>
    %6 = tpu.matmul %5, %0, %cst {dimension_numbers = #tpu.dot_dimension_numbers<[1], [0], [0], [1], [0, 0, 1, 1], [], []>} : vector<112x9xbf16>, vector<9x128xbf16>, vector<112x128xf32> -> vector<112x128xf32>
    %7 = arith.addf %6, %3 : vector<112x128xf32>
    %cst_6 = arith.constant 0.000000e+00 : f32
    %8 = vector.broadcast %cst_6 : f32 to vector<112x128xf32>
    %9 = arith.maximumf %7, %8 : vector<112x128xf32>
    %10 = vector.shape_cast %9 : vector<112x128xf32> to vector<7x16x128xf32>
    %11 = arith.truncf %10 : vector<7x16x128xf32> to vector<7x16x128xbf16>
    %c0_7 = arith.constant 0 : index
    %c0_8 = arith.constant 0 : index
    %c0_9 = arith.constant 0 : index
    %12 = vector.load %arg15[%c0_7, %c0_8, %c0_9] : memref<49x16x128xbf16, #tpu.memory_space<vmem>>, vector<7x16x128xbf16>
    tpu.vector_store %arg15[%c0_7, %c0_8, %c0_9], %11 {strides = array<i32>} : memref<49x16x128xbf16, #tpu.memory_space<vmem>>, vector<7x16x128xbf16>,
    %c7 = arith.constant 7 : index
    %c0_10 = arith.constant 0 : index
    %c0_11 = arith.constant 0 : index
    %13 = vector.load %arg1[%c7, %c0_10, %c0_11] : memref<49x16x9xbf16, #tpu.memory_space<vmem>>, vector<7x16x9xbf16>
    %14 = vector.shape_cast %13 : vector<7x16x9xbf16> to vector<112x9xbf16>
    %cst_12 = arith.constant dense<0.000000e+00> : vector<112x128xf32>
    %15 = tpu.matmul %14, %0, %cst_12 {dimension_numbers = #tpu.dot_dimension_numbers<[1], [0], [0], [1], [0, 0, 1, 1], [], []>} : vector<112x9xbf16>, vector<9x128xbf16>, vector<112x128xf32> -> vector<112x128xf32>
    %16 = arith.addf %15, %3 : vector<112x128xf32>
    %cst_13 = arith.constant 0.000000e+00 : f32
    %17 = vector.broadcast %cst_13 : f32 to vector<112x128xf32>
    %18 = arith.maximumf %16, %17 : vector<112x128xf32>
    %19 = vector.shape_cast %18 : vector<112x128xf32> to vector<7x16x128xf32>
    %20 = arith.truncf %19 : vector<7x16x128xf32> to vector<7x16x128xbf16>
    %c7_14 = arith.constant 7 : index
    %c0_15 = arith.constant 0 : index
    %c0_16 = arith.constant 0 : index
    %21 = vector.load %arg15[%c7_14, %c0_15, %c0_16] : memref<49x16x128xbf16, #tpu.memory_space<vmem>>, vector<7x16x128xbf16>
    tpu.vector_store %arg15[%c7_14, %c0_15, %c0_16], %20 {strides = array<i32>} : memref<49x16x128xbf16, #tpu.memory_space<vmem>>, vector<7x16x128xbf16>,
    %c14 = arith.constant 14 : index
    %c0_17 = arith.constant 0 : index
    %c0_18 = arith.constant 0 : index
    %22 = vector.load %arg1[%c14, %c0_17, %c0_18] : memref<49x16x9xbf16, #tpu.memory_space<vmem>>, vector<7x16x9xbf16>
    %23 = vector.shape_cast %22 : vector<7x16x9xbf16> to vector<112x9xbf16>
    %cst_19 = arith.constant dense<0.000000e+00> : vector<112x128xf32>
    %24 = tpu.matmul %23, %0, %cst_19 {dimension_numbers = #tpu.dot_dimension_numbers<[1], [0], [0], [1], [0, 0, 1, 1], [], []>} : vector<112x9xbf16>, vector<9x128xbf16>, vector<112x128xf32> -> vector<112x128xf32>
    %25 = arith.addf %24, %3 : vector<112x128xf32>
    %cst_20 = arith.constant 0.000000e+00 : f32
    %26 = vector.broadcast %cst_20 : f32 to vector<112x128xf32>
    %27 = arith.maximumf %25, %26 : vector<112x128xf32>
    %28 = vector.shape_cast %27 : vector<112x128xf32> to vector<7x16x128xf32>
    %29 = arith.truncf %28 : vector<7x16x128xf32> to vector<7x16x128xbf16>
    %c14_21 = arith.constant 14 : index
    %c0_22 = arith.constant 0 : index
    %c0_23 = arith.constant 0 : index
    %30 = vector.load %arg15[%c14_21, %c0_22, %c0_23] : memref<49x16x128xbf16, #tpu.memory_space<vmem>>, vector<7x16x128xbf16>
    tpu.vector_store %arg15[%c14_21, %c0_22, %c0_23], %29 {strides = array<i32>} : memref<49x16x128xbf16, #tpu.memory_space<vmem>>, vector<7x16x128xbf16>,
    %c21 = arith.constant 21 : index
    %c0_24 = arith.constant 0 : index
    %c0_25 = arith.constant 0 : index
    %31 = vector.load %arg1[%c21, %c0_24, %c0_25] : memref<49x16x9xbf16, #tpu.memory_space<vmem>>, vector<7x16x9xbf16>
    %32 = vector.shape_cast %31 : vector<7x16x9xbf16> to vector<112x9xbf16>
    %cst_26 = arith.constant dense<0.000000e+00> : vector<112x128xf32>
    %33 = tpu.matmul %32, %0, %cst_26 {dimension_numbers = #tpu.dot_dimension_numbers<[1], [0], [0], [1], [0, 0, 1, 1], [], []>} : vector<112x9xbf16>, vector<9x128xbf16>, vector<112x128xf32> -> vector<112x128xf32>
    %34 = arith.addf %33, %3 : vector<112x128xf32>
    %cst_27 = arith.constant 0.000000e+00 : f32
    %35 = vector.broadcast %cst_27 : f32 to vector<112x128xf32>
    %36 = arith.maximumf %34, %35 : vector<112x128xf32>
    %37 = vector.shape_cast %36 : vector<112x128xf32> to vector<7x16x128xf32>
    %38 = arith.truncf %37 : vector<7x16x128xf32> to vector<7x16x128xbf16>
    %c21_28 = arith.constant 21 : index
    %c0_29 = arith.constant 0 : index
    %c0_30 = arith.constant 0 : index
    %39 = vector.load %arg15[%c21_28, %c0_29, %c0_30] : memref<49x16x128xbf16, #tpu.memory_space<vmem>>, vector<7x16x128xbf16>
    tpu.vector_store %arg15[%c21_28, %c0_29, %c0_30], %38 {strides = array<i32>} : memref<49x16x128xbf16, #tpu.memory_space<vmem>>, vector<7x16x128xbf16>,
    %c28 = arith.constant 28 : index
    %c0_31 = arith.constant 0 : index
    %c0_32 = arith.constant 0 : index
    %40 = vector.load %arg1[%c28, %c0_31, %c0_32] : memref<49x16x9xbf16, #tpu.memory_space<vmem>>, vector<7x16x9xbf16>
    %41 = vector.shape_cast %40 : vector<7x16x9xbf16> to vector<112x9xbf16>
    %cst_33 = arith.constant dense<0.000000e+00> : vector<112x128xf32>
    %42 = tpu.matmul %41, %0, %cst_33 {dimension_numbers = #tpu.dot_dimension_numbers<[1], [0], [0], [1], [0, 0, 1, 1], [], []>} : vector<112x9xbf16>, vector<9x128xbf16>, vector<112x128xf32> -> vector<112x128xf32>
    %43 = arith.addf %42, %3 : vector<112x128xf32>
    %cst_34 = arith.constant 0.000000e+00 : f32
    %44 = vector.broadcast %cst_34 : f32 to vector<112x128xf32>
    %45 = arith.maximumf %43, %44 : vector<112x128xf32>
    %46 = vector.shape_cast %45 : vector<112x128xf32> to vector<7x16x128xf32>
    %47 = arith.truncf %46 : vector<7x16x128xf32> to vector<7x16x128xbf16>
    %c28_35 = arith.constant 28 : index
    %c0_36 = arith.constant 0 : index
    %c0_37 = arith.constant 0 : index
    %48 = vector.load %arg15[%c28_35, %c0_36, %c0_37] : memref<49x16x128xbf16, #tpu.memory_space<vmem>>, vector<7x16x128xbf16>
    tpu.vector_store %arg15[%c28_35, %c0_36, %c0_37], %47 {strides = array<i32>} : memref<49x16x128xbf16, #tpu.memory_space<vmem>>, vector<7x16x128xbf16>,
    %c35 = arith.constant 35 : index
    %c0_38 = arith.constant 0 : index
    %c0_39 = arith.constant 0 : index
    %49 = vector.load %arg1[%c35, %c0_38, %c0_39] : memref<49x16x9xbf16, #tpu.memory_space<vmem>>, vector<7x16x9xbf16>
    %50 = vector.shape_cast %49 : vector<7x16x9xbf16> to vector<112x9xbf16>
    %cst_40 = arith.constant dense<0.000000e+00> : vector<112x128xf32>
    %51 = tpu.matmul %50, %0, %cst_40 {dimension_numbers = #tpu.dot_dimension_numbers<[1], [0], [0], [1], [0, 0, 1, 1], [], []>} : vector<112x9xbf16>, vector<9x128xbf16>, vector<112x128xf32> -> vector<112x128xf32>
    %52 = arith.addf %51, %3 : vector<112x128xf32>
    %cst_41 = arith.constant 0.000000e+00 : f32
    %53 = vector.broadcast %cst_41 : f32 to vector<112x128xf32>
    %54 = arith.maximumf %52, %53 : vector<112x128xf32>
    %55 = vector.shape_cast %54 : vector<112x128xf32> to vector<7x16x128xf32>
    %56 = arith.truncf %55 : vector<7x16x128xf32> to vector<7x16x128xbf16>
    %c35_42 = arith.constant 35 : index
    %c0_43 = arith.constant 0 : index
    %c0_44 = arith.constant 0 : index
    %57 = vector.load %arg15[%c35_42, %c0_43, %c0_44] : memref<49x16x128xbf16, #tpu.memory_space<vmem>>, vector<7x16x128xbf16>
    tpu.vector_store %arg15[%c35_42, %c0_43, %c0_44], %56 {strides = array<i32>} : memref<49x16x128xbf16, #tpu.memory_space<vmem>>, vector<7x16x128xbf16>,
    %c42 = arith.constant 42 : index
    %c0_45 = arith.constant 0 : index
    %c0_46 = arith.constant 0 : index
    %58 = vector.load %arg1[%c42, %c0_45, %c0_46] : memref<49x16x9xbf16, #tpu.memory_space<vmem>>, vector<7x16x9xbf16>
    %59 = vector.shape_cast %58 : vector<7x16x9xbf16> to vector<112x9xbf16>
    %cst_47 = arith.constant dense<0.000000e+00> : vector<112x128xf32>
    %60 = tpu.matmul %59, %0, %cst_47 {dimension_numbers = #tpu.dot_dimension_numbers<[1], [0], [0], [1], [0, 0, 1, 1], [], []>} : vector<112x9xbf16>, vector<9x128xbf16>, vector<112x128xf32> -> vector<112x128xf32>
    %61 = arith.addf %60, %3 : vector<112x128xf32>
    %cst_48 = arith.constant 0.000000e+00 : f32
    %62 = vector.broadcast %cst_48 : f32 to vector<112x128xf32>
    %63 = arith.maximumf %61, %62 : vector<112x128xf32>
    %64 = vector.shape_cast %63 : vector<112x128xf32> to vector<7x16x128xf32>
    %65 = arith.truncf %64 : vector<7x16x128xf32> to vector<7x16x128xbf16>
    %c42_49 = arith.constant 42 : index
    %c0_50 = arith.constant 0 : index
    %c0_51 = arith.constant 0 : index
    %66 = vector.load %arg15[%c42_49, %c0_50, %c0_51] : memref<49x16x128xbf16, #tpu.memory_space<vmem>>, vector<7x16x128xbf16>
    tpu.vector_store %arg15[%c42_49, %c0_50, %c0_51], %65 {strides = array<i32>} : memref<49x16x128xbf16, #tpu.memory_space<vmem>>, vector<7x16x128xbf16>,
    %c0_52 = arith.constant 0 : index
    %c0_53 = arith.constant 0 : index
    %67 = vector.load %arg5[%c0_52, %c0_53] : memref<1x128xf32, #tpu.memory_space<vmem>>, vector<1x128xf32>
    %68 = vector.shape_cast %67 : vector<1x128xf32> to vector<1x128xf32>
    %69 = vector.broadcast %68 : vector<1x128xf32> to vector<16x128xf32>
    %cst_54 = arith.constant 0.000000e+00 : f32
    %70 = vector.broadcast %cst_54 : f32 to vector<16x128xf32>
    %71 = arith.maximumf %69, %70 : vector<16x128xf32>
    %72 = arith.maximumf %71, %71 : vector<16x128xf32>
    %73 = arith.maximumf %72, %71 : vector<16x128xf32>
    %c0_55 = arith.constant 0 : index
    %c0_56 = arith.constant 0 : index
    %c0_57 = arith.constant 0 : index
    %74 = vector.load %arg15[%c0_55, %c0_56, %c0_57] : memref<49x16x128xbf16, #tpu.memory_space<vmem>>, vector<1x16x128xbf16>
    %75 = vector.shape_cast %74 : vector<1x16x128xbf16> to vector<16x128xbf16>
    %c0_58 = arith.constant 0 : index
    %c0_59 = arith.constant 0 : index
    %c0_60 = arith.constant 0 : index
    %76 = vector.load %arg4[%c0_58, %c0_59, %c0_60] : memref<9x128x128xbf16, #tpu.memory_space<vmem>>, vector<1x128x128xbf16>
    %77 = vector.shape_cast %76 : vector<1x128x128xbf16> to vector<128x128xbf16>
    %cst_61 = arith.constant dense<0.000000e+00> : vector<16x128xf32>
    %78 = tpu.matmul %75, %77, %cst_61 {dimension_numbers = #tpu.dot_dimension_numbers<[1], [0], [0], [1], [0, 0, 1, 1], [], []>} : vector<16x128xbf16>, vector<128x128xbf16>, vector<16x128xf32> -> vector<16x128xf32>
    %79 = arith.addf %69, %78 : vector<16x128xf32>
    %c1 = arith.constant 1 : index
    %c0_62 = arith.constant 0 : index
    %c0_63 = arith.constant 0 : index
    %80 = vector.load %arg15[%c1, %c0_62, %c0_63] : memref<49x16x128xbf16, #tpu.memory_space<vmem>>, vector<1x16x128xbf16>
    %81 = vector.shape_cast %80 : vector<1x16x128xbf16> to vector<16x128xbf16>
    %c1_64 = arith.constant 1 : index
    %c0_65 = arith.constant 0 : index
    %c0_66 = arith.constant 0 : index
    %82 = vector.load %arg4[%c1_64, %c0_65, %c0_66] : memref<9x128x128xbf16, #tpu.memory_space<vmem>>, vector<1x128x128xbf16>
    %83 = vector.shape_cast %82 : vector<1x128x128xbf16> to vector<128x128xbf16>
    %cst_67 = arith.constant dense<0.000000e+00> : vector<16x128xf32>
    %84 = tpu.matmul %81, %83, %cst_67 {dimension_numbers = #tpu.dot_dimension_numbers<[1], [0], [0], [1], [0, 0, 1, 1], [], []>} : vector<16x128xbf16>, vector<128x128xbf16>, vector<16x128xf32> -> vector<16x128xf32>
    %85 = arith.addf %79, %84 : vector<16x128xf32>
    %c2 = arith.constant 2 : index
    %c0_68 = arith.constant 0 : index
    %c0_69 = arith.constant 0 : index
    %86 = vector.load %arg15[%c2, %c0_68, %c0_69] : memref<49x16x128xbf16, #tpu.memory_space<vmem>>, vector<1x16x128xbf16>
    %87 = vector.shape_cast %86 : vector<1x16x128xbf16> to vector<16x128xbf16>
    %c2_70 = arith.constant 2 : index
    %c0_71 = arith.constant 0 : index
    %c0_72 = arith.constant 0 : index
    %88 = vector.load %arg4[%c2_70, %c0_71, %c0_72] : memref<9x128x128xbf16, #tpu.memory_space<vmem>>, vector<1x128x128xbf16>
    %89 = vector.shape_cast %88 : vector<1x128x128xbf16> to vector<128x128xbf16>
    %cst_73 = arith.constant dense<0.000000e+00> : vector<16x128xf32>
    %90 = tpu.matmul %87, %89, %cst_73 {dimension_numbers = #tpu.dot_dimension_numbers<[1], [0], [0], [1], [0, 0, 1, 1], [], []>} : vector<16x128xbf16>, vector<128x128xbf16>, vector<16x128xf32> -> vector<16x128xf32>
    %91 = arith.addf %85, %90 : vector<16x128xf32>
    %c7_74 = arith.constant 7 : index
    %c0_75 = arith.constant 0 : index
    %c0_76 = arith.constant 0 : index
    %92 = vector.load %arg15[%c7_74, %c0_75, %c0_76] : memref<49x16x128xbf16, #tpu.memory_space<vmem>>, vector<1x16x128xbf16>
    %93 = vector.shape_cast %92 : vector<1x16x128xbf16> to vector<16x128xbf16>
    %c3 = arith.constant 3 : index
    %c0_77 = arith.constant 0 : index
    %c0_78 = arith.constant 0 : index
    %94 = vector.load %arg4[%c3, %c0_77, %c0_78] : memref<9x128x128xbf16, #tpu.memory_space<vmem>>, vector<1x128x128xbf16>
    %95 = vector.shape_cast %94 : vector<1x128x128xbf16> to vector<128x128xbf16>
    %cst_79 = arith.constant dense<0.000000e+00> : vector<16x128xf32>
    %96 = tpu.matmul %93, %95, %cst_79 {dimension_numbers = #tpu.dot_dimension_numbers<[1], [0], [0], [1], [0, 0, 1, 1], [], []>} : vector<16x128xbf16>, vector<128x128xbf16>, vector<16x128xf32> -> vector<16x128xf32>
    %97 = arith.addf %91, %96 : vector<16x128xf32>
    %c8 = arith.constant 8 : index
    %c0_80 = arith.constant 0 : index
    %c0_81 = arith.constant 0 : index
    %98 = vector.load %arg15[%c8, %c0_80, %c0_81] : memref<49x16x128xbf16, #tpu.memory_space<vmem>>, vector<1x16x128xbf16>
    %99 = vector.shape_cast %98 : vector<1x16x128xbf16> to vector<16x128xbf16>
    %c4 = arith.constant 4 : index
    %c0_82 = arith.constant 0 : index
    %c0_83 = arith.constant 0 : index
    %100 = vector.load %arg4[%c4, %c0_82, %c0_83] : memref<9x128x128xbf16, #tpu.memory_space<vmem>>, vector<1x128x128xbf16>
    %101 = vector.shape_cast %100 : vector<1x128x128xbf16> to vector<128x128xbf16>
    %cst_84 = arith.constant dense<0.000000e+00> : vector<16x128xf32>
    %102 = tpu.matmul %99, %101, %cst_84 {dimension_numbers = #tpu.dot_dimension_numbers<[1], [0], [0], [1], [0, 0, 1, 1], [], []>} : vector<16x128xbf16>, vector<128x128xbf16>, vector<16x128xf32> -> vector<16x128xf32>
    %103 = arith.addf %97, %102 : vector<16x128xf32>
    %c9 = arith.constant 9 : index
    %c0_85 = arith.constant 0 : index
    %c0_86 = arith.constant 0 : index
    %104 = vector.load %arg15[%c9, %c0_85, %c0_86] : memref<49x16x128xbf16, #tpu.memory_space<vmem>>, vector<1x16x128xbf16>
    %105 = vector.shape_cast %104 : vector<1x16x128xbf16> to vector<16x128xbf16>
    %c5 = arith.constant 5 : index
    %c0_87 = arith.constant 0 : index
    %c0_88 = arith.constant 0 : index
    %106 = vector.load %arg4[%c5, %c0_87, %c0_88] : memref<9x128x128xbf16, #tpu.memory_space<vmem>>, vector<1x128x128xbf16>
    %107 = vector.shape_cast %106 : vector<1x128x128xbf16> to vector<128x128xbf16>
    %cst_89 = arith.constant dense<0.000000e+00> : vector<16x128xf32>
    %108 = tpu.matmul %105, %107, %cst_89 {dimension_numbers = #tpu.dot_dimension_numbers<[1], [0], [0], [1], [0, 0, 1, 1], [], []>} : vector<16x128xbf16>, vector<128x128xbf16>, vector<16x128xf32> -> vector<16x128xf32>
    %109 = arith.addf %103, %108 : vector<16x128xf32>
    %c14_90 = arith.constant 14 : index
    %c0_91 = arith.constant 0 : index
    %c0_92 = arith.constant 0 : index
    %110 = vector.load %arg15[%c14_90, %c0_91, %c0_92] : memref<49x16x128xbf16, #tpu.memory_space<vmem>>, vector<1x16x128xbf16>
    %111 = vector.shape_cast %110 : vector<1x16x128xbf16> to vector<16x128xbf16>
    %c6 = arith.constant 6 : index
    %c0_93 = arith.constant 0 : index
    %c0_94 = arith.constant 0 : index
    %112 = vector.load %arg4[%c6, %c0_93, %c0_94] : memref<9x128x128xbf16, #tpu.memory_space<vmem>>, vector<1x128x128xbf16>
    %113 = vector.shape_cast %112 : vector<1x128x128xbf16> to vector<128x128xbf16>
    %cst_95 = arith.constant dense<0.000000e+00> : vector<16x128xf32>
    %114 = tpu.matmul %111, %113, %cst_95 {dimension_numbers = #tpu.dot_dimension_numbers<[1], [0], [0], [1], [0, 0, 1, 1], [], []>} : vector<16x128xbf16>, vector<128x128xbf16>, vector<16x128xf32> -> vector<16x128xf32>
    %115 = arith.addf %109, %114 : vector<16x128xf32>
    %c15 = arith.constant 15 : index
    %c0_96 = arith.constant 0 : index
    %c0_97 = arith.constant 0 : index
    %116 = vector.load %arg15[%c15, %c0_96, %c0_97] : memref<49x16x128xbf16, #tpu.memory_space<vmem>>, vector<1x16x128xbf16>
    %117 = vector.shape_cast %116 : vector<1x16x128xbf16> to vector<16x128xbf16>
    %c7_98 = arith.constant 7 : index
    %c0_99 = arith.constant 0 : index
    %c0_100 = arith.constant 0 : index
    %118 = vector.load %arg4[%c7_98, %c0_99, %c0_100] : memref<9x128x128xbf16, #tpu.memory_space<vmem>>, vector<1x128x128xbf16>
    %119 = vector.shape_cast %118 : vector<1x128x128xbf16> to vector<128x128xbf16>
    %cst_101 = arith.constant dense<0.000000e+00> : vector<16x128xf32>
    %120 = tpu.matmul %117, %119, %cst_101 {dimension_numbers = #tpu.dot_dimension_numbers<[1], [0], [0], [1], [0, 0, 1, 1], [], []>} : vector<16x128xbf16>, vector<128x128xbf16>, vector<16x128xf32> -> vector<16x128xf32>
    %121 = arith.addf %115, %120 : vector<16x128xf32>
    %c16 = arith.constant 16 : index
    %c0_102 = arith.constant 0 : index
    %c0_103 = arith.constant 0 : index
    %122 = vector.load %arg15[%c16, %c0_102, %c0_103] : memref<49x16x128xbf16, #tpu.memory_space<vmem>>, vector<1x16x128xbf16>
    %123 = vector.shape_cast %122 : vector<1x16x128xbf16> to vector<16x128xbf16>
    %c8_104 = arith.constant 8 : index
    %c0_105 = arith.constant 0 : index
    %c0_106 = arith.constant 0 : index
    %124 = vector.load %arg4[%c8_104, %c0_105, %c0_106] : memref<9x128x128xbf16, #tpu.memory_space<vmem>>, vector<1x128x128xbf16>
    %125 = vector.shape_cast %124 : vector<1x128x128xbf16> to vector<128x128xbf16>
    %cst_107 = arith.constant dense<0.000000e+00> : vector<16x128xf32>
    %126 = tpu.matmul %123, %125, %cst_107 {dimension_numbers = #tpu.dot_dimension_numbers<[1], [0], [0], [1], [0, 0, 1, 1], [], []>} : vector<16x128xbf16>, vector<128x128xbf16>, vector<16x128xf32> -> vector<16x128xf32>
    %127 = arith.addf %121, %126 : vector<16x128xf32>
    %cst_108 = arith.constant 0.000000e+00 : f32
    %128 = vector.broadcast %cst_108 : f32 to vector<16x128xf32>
    %129 = arith.maximumf %127, %128 : vector<16x128xf32>
    %130 = arith.maximumf %73, %129 : vector<16x128xf32>
    %131 = arith.truncf %130 : vector<16x128xf32> to vector<16x128xbf16>
    %c0_109 = arith.constant 0 : index
    %c0_110 = arith.constant 0 : index
    %c0_111 = arith.constant 0 : index
    %132 = vector.load %arg16[%c0_109, %c0_110, %c0_111] : memref<4x16x128xbf16, #tpu.memory_space<vmem>>, vector<1x16x128xbf16>
    %133 = vector.shape_cast %132 : vector<1x16x128xbf16> to vector<16x128xbf16>
    %134 = vector.shape_cast %131 : vector<16x128xbf16> to vector<1x16x128xbf16>
    tpu.vector_store %arg16[%c0_109, %c0_110, %c0_111], %134 {strides = array<i32>} : memref<4x16x128xbf16, #tpu.memory_space<vmem>>, vector<1x16x128xbf16>,
    %135 = arith.maximumf %71, %71 : vector<16x128xf32>
    %c3_112 = arith.constant 3 : index
    %c0_113 = arith.constant 0 : index
    %c0_114 = arith.constant 0 : index
    %136 = vector.load %arg15[%c3_112, %c0_113, %c0_114] : memref<49x16x128xbf16, #tpu.memory_space<vmem>>, vector<1x16x128xbf16>
    %137 = vector.shape_cast %136 : vector<1x16x128xbf16> to vector<16x128xbf16>
    %c0_115 = arith.constant 0 : index
    %c0_116 = arith.constant 0 : index
    %c0_117 = arith.constant 0 : index
    %138 = vector.load %arg4[%c0_115, %c0_116, %c0_117] : memref<9x128x128xbf16, #tpu.memory_space<vmem>>, vector<1x128x128xbf16>
    %139 = vector.shape_cast %138 : vector<1x128x128xbf16> to vector<128x128xbf16>
    %cst_118 = arith.constant dense<0.000000e+00> : vector<16x128xf32>
    %140 = tpu.matmul %137, %139, %cst_118 {dimension_numbers = #tpu.dot_dimension_numbers<[1], [0], [0], [1], [0, 0, 1, 1], [], []>} : vector<16x128xbf16>, vector<128x128xbf16>, vector<16x128xf32> -> vector<16x128xf32>
    %141 = arith.addf %69, %140 : vector<16x128xf32>
    %c4_119 = arith.constant 4 : index
    %c0_120 = arith.constant 0 : index
    %c0_121 = arith.constant 0 : index
    %142 = vector.load %arg15[%c4_119, %c0_120, %c0_121] : memref<49x16x128xbf16, #tpu.memory_space<vmem>>, vector<1x16x128xbf16>
    %143 = vector.shape_cast %142 : vector<1x16x128xbf16> to vector<16x128xbf16>
    %c1_122 = arith.constant 1 : index
    %c0_123 = arith.constant 0 : index
    %c0_124 = arith.constant 0 : index
    %144 = vector.load %arg4[%c1_122, %c0_123, %c0_124] : memref<9x128x128xbf16, #tpu.memory_space<vmem>>, vector<1x128x128xbf16>
    %145 = vector.shape_cast %144 : vector<1x128x128xbf16> to vector<128x128xbf16>
    %cst_125 = arith.constant dense<0.000000e+00> : vector<16x128xf32>
    %146 = tpu.matmul %143, %145, %cst_125 {dimension_numbers = #tpu.dot_dimension_numbers<[1], [0], [0], [1], [0, 0, 1, 1], [], []>} : vector<16x128xbf16>, vector<128x128xbf16>, vector<16x128xf32> -> vector<16x128xf32>
    %147 = arith.addf %141, %146 : vector<16x128xf32>
    %c5_126 = arith.constant 5 : index
    %c0_127 = arith.constant 0 : index
    %c0_128 = arith.constant 0 : index
    %148 = vector.load %arg15[%c5_126, %c0_127, %c0_128] : memref<49x16x128xbf16, #tpu.memory_space<vmem>>, vector<1x16x128xbf16>
    %149 = vector.shape_cast %148 : vector<1x16x128xbf16> to vector<16x128xbf16>
    %c2_129 = arith.constant 2 : index
    %c0_130 = arith.constant 0 : index
    %c0_131 = arith.constant 0 : index
    %150 = vector.load %arg4[%c2_129, %c0_130, %c0_131] : memref<9x128x128xbf16, #tpu.memory_space<vmem>>, vector<1x128x128xbf16>
    %151 = vector.shape_cast %150 : vector<1x128x128xbf16> to vector<128x128xbf16>
    %cst_132 = arith.constant dense<0.000000e+00> : vector<16x128xf32>
    %152 = tpu.matmul %149, %151, %cst_132 {dimension_numbers = #tpu.dot_dimension_numbers<[1], [0], [0], [1], [0, 0, 1, 1], [], []>} : vector<16x128xbf16>, vector<128x128xbf16>, vector<16x128xf32> -> vector<16x128xf32>
    %153 = arith.addf %147, %152 : vector<16x128xf32>
    %c10 = arith.constant 10 : index
    %c0_133 = arith.constant 0 : index
    %c0_134 = arith.constant 0 : index
    %154 = vector.load %arg15[%c10, %c0_133, %c0_134] : memref<49x16x128xbf16, #tpu.memory_space<vmem>>, vector<1x16x128xbf16>
    %155 = vector.shape_cast %154 : vector<1x16x128xbf16> to vector<16x128xbf16>
    %c3_135 = arith.constant 3 : index
    %c0_136 = arith.constant 0 : index
    %c0_137 = arith.constant 0 : index
    %156 = vector.load %arg4[%c3_135, %c0_136, %c0_137] : memref<9x128x128xbf16, #tpu.memory_space<vmem>>, vector<1x128x128xbf16>
    %157 = vector.shape_cast %156 : vector<1x128x128xbf16> to vector<128x128xbf16>
    %cst_138 = arith.constant dense<0.000000e+00> : vector<16x128xf32>
    %158 = tpu.matmul %155, %157, %cst_138 {dimension_numbers = #tpu.dot_dimension_numbers<[1], [0], [0], [1], [0, 0, 1, 1], [], []>} : vector<16x128xbf16>, vector<128x128xbf16>, vector<16x128xf32> -> vector<16x128xf32>
    %159 = arith.addf %153, %158 : vector<16x128xf32>
    %c11 = arith.constant 11 : index
    %c0_139 = arith.constant 0 : index
    %c0_140 = arith.constant 0 : index
    %160 = vector.load %arg15[%c11, %c0_139, %c0_140] : memref<49x16x128xbf16, #tpu.memory_space<vmem>>, vector<1x16x128xbf16>
    %161 = vector.shape_cast %160 : vector<1x16x128xbf16> to vector<16x128xbf16>
    %c4_141 = arith.constant 4 : index
    %c0_142 = arith.constant 0 : index
    %c0_143 = arith.constant 0 : index
    %162 = vector.load %arg4[%c4_141, %c0_142, %c0_143] : memref<9x128x128xbf16, #tpu.memory_space<vmem>>, vector<1x128x128xbf16>
    %163 = vector.shape_cast %162 : vector<1x128x128xbf16> to vector<128x128xbf16>
    %cst_144 = arith.constant dense<0.000000e+00> : vector<16x128xf32>
    %164 = tpu.matmul %161, %163, %cst_144 {dimension_numbers = #tpu.dot_dimension_numbers<[1], [0], [0], [1], [0, 0, 1, 1], [], []>} : vector<16x128xbf16>, vector<128x128xbf16>, vector<16x128xf32> -> vector<16x128xf32>
    %165 = arith.addf %159, %164 : vector<16x128xf32>
    %c12 = arith.constant 12 : index
    %c0_145 = arith.constant 0 : index
    %c0_146 = arith.constant 0 : index
    %166 = vector.load %arg15[%c12, %c0_145, %c0_146] : memref<49x16x128xbf16, #tpu.memory_space<vmem>>, vector<1x16x128xbf16>
    %167 = vector.shape_cast %166 : vector<1x16x128xbf16> to vector<16x128xbf16>
    %c5_147 = arith.constant 5 : index
    %c0_148 = arith.constant 0 : index
    %c0_149 = arith.constant 0 : index
    %168 = vector.load %arg4[%c5_147, %c0_148, %c0_149] : memref<9x128x128xbf16, #tpu.memory_space<vmem>>, vector<1x128x128xbf16>
    %169 = vector.shape_cast %168 : vector<1x128x128xbf16> to vector<128x128xbf16>
    %cst_150 = arith.constant dense<0.000000e+00> : vector<16x128xf32>
    %170 = tpu.matmul %167, %169, %cst_150 {dimension_numbers = #tpu.dot_dimension_numbers<[1], [0], [0], [1], [0, 0, 1, 1], [], []>} : vector<16x128xbf16>, vector<128x128xbf16>, vector<16x128xf32> -> vector<16x128xf32>
    %171 = arith.addf %165, %170 : vector<16x128xf32>
    %c17 = arith.constant 17 : index
    %c0_151 = arith.constant 0 : index
    %c0_152 = arith.constant 0 : index
    %172 = vector.load %arg15[%c17, %c0_151, %c0_152] : memref<49x16x128xbf16, #tpu.memory_space<vmem>>, vector<1x16x128xbf16>
    %173 = vector.shape_cast %172 : vector<1x16x128xbf16> to vector<16x128xbf16>
    %c6_153 = arith.constant 6 : index
    %c0_154 = arith.constant 0 : index
    %c0_155 = arith.constant 0 : index
    %174 = vector.load %arg4[%c6_153, %c0_154, %c0_155] : memref<9x128x128xbf16, #tpu.memory_space<vmem>>, vector<1x128x128xbf16>
    %175 = vector.shape_cast %174 : vector<1x128x128xbf16> to vector<128x128xbf16>
    %cst_156 = arith.constant dense<0.000000e+00> : vector<16x128xf32>
    %176 = tpu.matmul %173, %175, %cst_156 {dimension_numbers = #tpu.dot_dimension_numbers<[1], [0], [0], [1], [0, 0, 1, 1], [], []>} : vector<16x128xbf16>, vector<128x128xbf16>, vector<16x128xf32> -> vector<16x128xf32>
    %177 = arith.addf %171, %176 : vector<16x128xf32>
    %c18 = arith.constant 18 : index
    %c0_157 = arith.constant 0 : index
    %c0_158 = arith.constant 0 : index
    %178 = vector.load %arg15[%c18, %c0_157, %c0_158] : memref<49x16x128xbf16, #tpu.memory_space<vmem>>, vector<1x16x128xbf16>
    %179 = vector.shape_cast %178 : vector<1x16x128xbf16> to vector<16x128xbf16>
    %c7_159 = arith.constant 7 : index
    %c0_160 = arith.constant 0 : index
    %c0_161 = arith.constant 0 : index
    %180 = vector.load %arg4[%c7_159, %c0_160, %c0_161] : memref<9x128x128xbf16, #tpu.memory_space<vmem>>, vector<1x128x128xbf16>
    %181 = vector.shape_cast %180 : vector<1x128x128xbf16> to vector<128x128xbf16>
    %cst_162 = arith.constant dense<0.000000e+00> : vector<16x128xf32>
    %182 = tpu.matmul %179, %181, %cst_162 {dimension_numbers = #tpu.dot_dimension_numbers<[1], [0], [0], [1], [0, 0, 1, 1], [], []>} : vector<16x128xbf16>, vector<128x128xbf16>, vector<16x128xf32> -> vector<16x128xf32>
    %183 = arith.addf %177, %182 : vector<16x128xf32>
    %c19 = arith.constant 19 : index
    %c0_163 = arith.constant 0 : index
    %c0_164 = arith.constant 0 : index
    %184 = vector.load %arg15[%c19, %c0_163, %c0_164] : memref<49x16x128xbf16, #tpu.memory_space<vmem>>, vector<1x16x128xbf16>
    %185 = vector.shape_cast %184 : vector<1x16x128xbf16> to vector<16x128xbf16>
    %c8_165 = arith.constant 8 : index
    %c0_166 = arith.constant 0 : index
    %c0_167 = arith.constant 0 : index
    %186 = vector.load %arg4[%c8_165, %c0_166, %c0_167] : memref<9x128x128xbf16, #tpu.memory_space<vmem>>, vector<1x128x128xbf16>
    %187 = vector.shape_cast %186 : vector<1x128x128xbf16> to vector<128x128xbf16>
    %cst_168 = arith.constant dense<0.000000e+00> : vector<16x128xf32>
    %188 = tpu.matmul %185, %187, %cst_168 {dimension_numbers = #tpu.dot_dimension_numbers<[1], [0], [0], [1], [0, 0, 1, 1], [], []>} : vector<16x128xbf16>, vector<128x128xbf16>, vector<16x128xf32> -> vector<16x128xf32>
    %189 = arith.addf %183, %188 : vector<16x128xf32>
    %cst_169 = arith.constant 0.000000e+00 : f32
    %190 = vector.broadcast %cst_169 : f32 to vector<16x128xf32>
    %191 = arith.maximumf %189, %190 : vector<16x128xf32>
    %192 = arith.maximumf %135, %191 : vector<16x128xf32>
    %c6_170 = arith.constant 6 : index
    %c0_171 = arith.constant 0 : index
    %c0_172 = arith.constant 0 : index
    %193 = vector.load %arg15[%c6_170, %c0_171, %c0_172] : memref<49x16x128xbf16, #tpu.memory_space<vmem>>, vector<1x16x128xbf16>
    %194 = vector.shape_cast %193 : vector<1x16x128xbf16> to vector<16x128xbf16>
    %c0_173 = arith.constant 0 : index
    %c0_174 = arith.constant 0 : index
    %c0_175 = arith.constant 0 : index
    %195 = vector.load %arg4[%c0_173, %c0_174, %c0_175] : memref<9x128x128xbf16, #tpu.memory_space<vmem>>, vector<1x128x128xbf16>
    %196 = vector.shape_cast %195 : vector<1x128x128xbf16> to vector<128x128xbf16>
    %cst_176 = arith.constant dense<0.000000e+00> : vector<16x128xf32>
    %197 = tpu.matmul %194, %196, %cst_176 {dimension_numbers = #tpu.dot_dimension_numbers<[1], [0], [0], [1], [0, 0, 1, 1], [], []>} : vector<16x128xbf16>, vector<128x128xbf16>, vector<16x128xf32> -> vector<16x128xf32>
    %198 = arith.addf %69, %197 : vector<16x128xf32>
    %c13 = arith.constant 13 : index
    %c0_177 = arith.constant 0 : index
    %c0_178 = arith.constant 0 : index
    %199 = vector.load %arg15[%c13, %c0_177, %c0_178] : memref<49x16x128xbf16, #tpu.memory_space<vmem>>, vector<1x16x128xbf16>
    %200 = vector.shape_cast %199 : vector<1x16x128xbf16> to vector<16x128xbf16>
    %c3_179 = arith.constant 3 : index
    %c0_180 = arith.constant 0 : index
    %c0_181 = arith.constant 0 : index
    %201 = vector.load %arg4[%c3_179, %c0_180, %c0_181] : memref<9x128x128xbf16, #tpu.memory_space<vmem>>, vector<1x128x128xbf16>
    %202 = vector.shape_cast %201 : vector<1x128x128xbf16> to vector<128x128xbf16>
    %cst_182 = arith.constant dense<0.000000e+00> : vector<16x128xf32>
    %203 = tpu.matmul %200, %202, %cst_182 {dimension_numbers = #tpu.dot_dimension_numbers<[1], [0], [0], [1], [0, 0, 1, 1], [], []>} : vector<16x128xbf16>, vector<128x128xbf16>, vector<16x128xf32> -> vector<16x128xf32>
    %204 = arith.addf %198, %203 : vector<16x128xf32>
    %c20 = arith.constant 20 : index
    %c0_183 = arith.constant 0 : index
    %c0_184 = arith.constant 0 : index
    %205 = vector.load %arg15[%c20, %c0_183, %c0_184] : memref<49x16x128xbf16, #tpu.memory_space<vmem>>, vector<1x16x128xbf16>
    %206 = vector.shape_cast %205 : vector<1x16x128xbf16> to vector<16x128xbf16>
    %c6_185 = arith.constant 6 : index
    %c0_186 = arith.constant 0 : index
    %c0_187 = arith.constant 0 : index
    %207 = vector.load %arg4[%c6_185, %c0_186, %c0_187] : memref<9x128x128xbf16, #tpu.memory_space<vmem>>, vector<1x128x128xbf16>
    %208 = vector.shape_cast %207 : vector<1x128x128xbf16> to vector<128x128xbf16>
    %cst_188 = arith.constant dense<0.000000e+00> : vector<16x128xf32>
    %209 = tpu.matmul %206, %208, %cst_188 {dimension_numbers = #tpu.dot_dimension_numbers<[1], [0], [0], [1], [0, 0, 1, 1], [], []>} : vector<16x128xbf16>, vector<128x128xbf16>, vector<16x128xf32> -> vector<16x128xf32>
    %210 = arith.addf %204, %209 : vector<16x128xf32>
    %cst_189 = arith.constant 0.000000e+00 : f32
    %211 = vector.broadcast %cst_189 : f32 to vector<16x128xf32>
    %212 = arith.maximumf %210, %211 : vector<16x128xf32>
    %213 = arith.maximumf %192, %212 : vector<16x128xf32>
    %214 = arith.truncf %213 : vector<16x128xf32> to vector<16x128xbf16>
    %c1_190 = arith.constant 1 : index
    %c0_191 = arith.constant 0 : index
    %c0_192 = arith.constant 0 : index
    %215 = vector.load %arg16[%c1_190, %c0_191, %c0_192] : memref<4x16x128xbf16, #tpu.memory_space<vmem>>, vector<1x16x128xbf16>
    %216 = vector.shape_cast %215 : vector<1x16x128xbf16> to vector<16x128xbf16>
    %217 = vector.shape_cast %214 : vector<16x128xbf16> to vector<1x16x128xbf16>
    tpu.vector_store %arg16[%c1_190, %c0_191, %c0_192], %217 {strides = array<i32>} : memref<4x16x128xbf16, #tpu.memory_space<vmem>>, vector<1x16x128xbf16>,
    %c21_193 = arith.constant 21 : index
    %c0_194 = arith.constant 0 : index
    %c0_195 = arith.constant 0 : index
    %218 = vector.load %arg15[%c21_193, %c0_194, %c0_195] : memref<49x16x128xbf16, #tpu.memory_space<vmem>>, vector<1x16x128xbf16>
    %219 = vector.shape_cast %218 : vector<1x16x128xbf16> to vector<16x128xbf16>
    %c0_196 = arith.constant 0 : index
    %c0_197 = arith.constant 0 : index
    %c0_198 = arith.constant 0 : index
    %220 = vector.load %arg4[%c0_196, %c0_197, %c0_198] : memref<9x128x128xbf16, #tpu.memory_space<vmem>>, vector<1x128x128xbf16>
    %221 = vector.shape_cast %220 : vector<1x128x128xbf16> to vector<128x128xbf16>
    %cst_199 = arith.constant dense<0.000000e+00> : vector<16x128xf32>
    %222 = tpu.matmul %219, %221, %cst_199 {dimension_numbers = #tpu.dot_dimension_numbers<[1], [0], [0], [1], [0, 0, 1, 1], [], []>} : vector<16x128xbf16>, vector<128x128xbf16>, vector<16x128xf32> -> vector<16x128xf32>
    %223 = arith.addf %69, %222 : vector<16x128xf32>
    %c22 = arith.constant 22 : index
    %c0_200 = arith.constant 0 : index
    %c0_201 = arith.constant 0 : index
    %224 = vector.load %arg15[%c22, %c0_200, %c0_201] : memref<49x16x128xbf16, #tpu.memory_space<vmem>>, vector<1x16x128xbf16>
    %225 = vector.shape_cast %224 : vector<1x16x128xbf16> to vector<16x128xbf16>
    %c1_202 = arith.constant 1 : index
    %c0_203 = arith.constant 0 : index
    %c0_204 = arith.constant 0 : index
    %226 = vector.load %arg4[%c1_202, %c0_203, %c0_204] : memref<9x128x128xbf16, #tpu.memory_space<vmem>>, vector<1x128x128xbf16>
    %227 = vector.shape_cast %226 : vector<1x128x128xbf16> to vector<128x128xbf16>
    %cst_205 = arith.constant dense<0.000000e+00> : vector<16x128xf32>
    %228 = tpu.matmul %225, %227, %cst_205 {dimension_numbers = #tpu.dot_dimension_numbers<[1], [0], [0], [1], [0, 0, 1, 1], [], []>} : vector<16x128xbf16>, vector<128x128xbf16>, vector<16x128xf32> -> vector<16x128xf32>
    %229 = arith.addf %223, %228 : vector<16x128xf32>
    %c23 = arith.constant 23 : index
    %c0_206 = arith.constant 0 : index
    %c0_207 = arith.constant 0 : index
    %230 = vector.load %arg15[%c23, %c0_206, %c0_207] : memref<49x16x128xbf16, #tpu.memory_space<vmem>>, vector<1x16x128xbf16>
    %231 = vector.shape_cast %230 : vector<1x16x128xbf16> to vector<16x128xbf16>
    %c2_208 = arith.constant 2 : index
    %c0_209 = arith.constant 0 : index
    %c0_210 = arith.constant 0 : index
    %232 = vector.load %arg4[%c2_208, %c0_209, %c0_210] : memref<9x128x128xbf16, #tpu.memory_space<vmem>>, vector<1x128x128xbf16>
    %233 = vector.shape_cast %232 : vector<1x128x128xbf16> to vector<128x128xbf16>
    %cst_211 = arith.constant dense<0.000000e+00> : vector<16x128xf32>
    %234 = tpu.matmul %231, %233, %cst_211 {dimension_numbers = #tpu.dot_dimension_numbers<[1], [0], [0], [1], [0, 0, 1, 1], [], []>} : vector<16x128xbf16>, vector<128x128xbf16>, vector<16x128xf32> -> vector<16x128xf32>
    %235 = arith.addf %229, %234 : vector<16x128xf32>
    %c28_212 = arith.constant 28 : index
    %c0_213 = arith.constant 0 : index
    %c0_214 = arith.constant 0 : index
    %236 = vector.load %arg15[%c28_212, %c0_213, %c0_214] : memref<49x16x128xbf16, #tpu.memory_space<vmem>>, vector<1x16x128xbf16>
    %237 = vector.shape_cast %236 : vector<1x16x128xbf16> to vector<16x128xbf16>
    %c3_215 = arith.constant 3 : index
    %c0_216 = arith.constant 0 : index
    %c0_217 = arith.constant 0 : index
    %238 = vector.load %arg4[%c3_215, %c0_216, %c0_217] : memref<9x128x128xbf16, #tpu.memory_space<vmem>>, vector<1x128x128xbf16>
    %239 = vector.shape_cast %238 : vector<1x128x128xbf16> to vector<128x128xbf16>
    %cst_218 = arith.constant dense<0.000000e+00> : vector<16x128xf32>
    %240 = tpu.matmul %237, %239, %cst_218 {dimension_numbers = #tpu.dot_dimension_numbers<[1], [0], [0], [1], [0, 0, 1, 1], [], []>} : vector<16x128xbf16>, vector<128x128xbf16>, vector<16x128xf32> -> vector<16x128xf32>
    %241 = arith.addf %235, %240 : vector<16x128xf32>
    %c29 = arith.constant 29 : index
    %c0_219 = arith.constant 0 : index
    %c0_220 = arith.constant 0 : index
    %242 = vector.load %arg15[%c29, %c0_219, %c0_220] : memref<49x16x128xbf16, #tpu.memory_space<vmem>>, vector<1x16x128xbf16>
    %243 = vector.shape_cast %242 : vector<1x16x128xbf16> to vector<16x128xbf16>
    %c4_221 = arith.constant 4 : index
    %c0_222 = arith.constant 0 : index
    %c0_223 = arith.constant 0 : index
    %244 = vector.load %arg4[%c4_221, %c0_222, %c0_223] : memref<9x128x128xbf16, #tpu.memory_space<vmem>>, vector<1x128x128xbf16>
    %245 = vector.shape_cast %244 : vector<1x128x128xbf16> to vector<128x128xbf16>
    %cst_224 = arith.constant dense<0.000000e+00> : vector<16x128xf32>
    %246 = tpu.matmul %243, %245, %cst_224 {dimension_numbers = #tpu.dot_dimension_numbers<[1], [0], [0], [1], [0, 0, 1, 1], [], []>} : vector<16x128xbf16>, vector<128x128xbf16>, vector<16x128xf32> -> vector<16x128xf32>
    %247 = arith.addf %241, %246 : vector<16x128xf32>
    %c30 = arith.constant 30 : index
    %c0_225 = arith.constant 0 : index
    %c0_226 = arith.constant 0 : index
    %248 = vector.load %arg15[%c30, %c0_225, %c0_226] : memref<49x16x128xbf16, #tpu.memory_space<vmem>>, vector<1x16x128xbf16>
    %249 = vector.shape_cast %248 : vector<1x16x128xbf16> to vector<16x128xbf16>
    %c5_227 = arith.constant 5 : index
    %c0_228 = arith.constant 0 : index
    %c0_229 = arith.constant 0 : index
    %250 = vector.load %arg4[%c5_227, %c0_228, %c0_229] : memref<9x128x128xbf16, #tpu.memory_space<vmem>>, vector<1x128x128xbf16>
    %251 = vector.shape_cast %250 : vector<1x128x128xbf16> to vector<128x128xbf16>
    %cst_230 = arith.constant dense<0.000000e+00> : vector<16x128xf32>
    %252 = tpu.matmul %249, %251, %cst_230 {dimension_numbers = #tpu.dot_dimension_numbers<[1], [0], [0], [1], [0, 0, 1, 1], [], []>} : vector<16x128xbf16>, vector<128x128xbf16>, vector<16x128xf32> -> vector<16x128xf32>
    %253 = arith.addf %247, %252 : vector<16x128xf32>
    %c35_231 = arith.constant 35 : index
    %c0_232 = arith.constant 0 : index
    %c0_233 = arith.constant 0 : index
    %254 = vector.load %arg15[%c35_231, %c0_232, %c0_233] : memref<49x16x128xbf16, #tpu.memory_space<vmem>>, vector<1x16x128xbf16>
    %255 = vector.shape_cast %254 : vector<1x16x128xbf16> to vector<16x128xbf16>
    %c6_234 = arith.constant 6 : index
    %c0_235 = arith.constant 0 : index
    %c0_236 = arith.constant 0 : index
    %256 = vector.load %arg4[%c6_234, %c0_235, %c0_236] : memref<9x128x128xbf16, #tpu.memory_space<vmem>>, vector<1x128x128xbf16>
    %257 = vector.shape_cast %256 : vector<1x128x128xbf16> to vector<128x128xbf16>
    %cst_237 = arith.constant dense<0.000000e+00> : vector<16x128xf32>
    %258 = tpu.matmul %255, %257, %cst_237 {dimension_numbers = #tpu.dot_dimension_numbers<[1], [0], [0], [1], [0, 0, 1, 1], [], []>} : vector<16x128xbf16>, vector<128x128xbf16>, vector<16x128xf32> -> vector<16x128xf32>
    %259 = arith.addf %253, %258 : vector<16x128xf32>
    %c36 = arith.constant 36 : index
    %c0_238 = arith.constant 0 : index
    %c0_239 = arith.constant 0 : index
    %260 = vector.load %arg15[%c36, %c0_238, %c0_239] : memref<49x16x128xbf16, #tpu.memory_space<vmem>>, vector<1x16x128xbf16>
    %261 = vector.shape_cast %260 : vector<1x16x128xbf16> to vector<16x128xbf16>
    %c7_240 = arith.constant 7 : index
    %c0_241 = arith.constant 0 : index
    %c0_242 = arith.constant 0 : index
    %262 = vector.load %arg4[%c7_240, %c0_241, %c0_242] : memref<9x128x128xbf16, #tpu.memory_space<vmem>>, vector<1x128x128xbf16>
    %263 = vector.shape_cast %262 : vector<1x128x128xbf16> to vector<128x128xbf16>
    %cst_243 = arith.constant dense<0.000000e+00> : vector<16x128xf32>
    %264 = tpu.matmul %261, %263, %cst_243 {dimension_numbers = #tpu.dot_dimension_numbers<[1], [0], [0], [1], [0, 0, 1, 1], [], []>} : vector<16x128xbf16>, vector<128x128xbf16>, vector<16x128xf32> -> vector<16x128xf32>
    %265 = arith.addf %259, %264 : vector<16x128xf32>
    %c37 = arith.constant 37 : index
    %c0_244 = arith.constant 0 : index
    %c0_245 = arith.constant 0 : index
    %266 = vector.load %arg15[%c37, %c0_244, %c0_245] : memref<49x16x128xbf16, #tpu.memory_space<vmem>>, vector<1x16x128xbf16>
    %267 = vector.shape_cast %266 : vector<1x16x128xbf16> to vector<16x128xbf16>
    %c8_246 = arith.constant 8 : index
    %c0_247 = arith.constant 0 : index
    %c0_248 = arith.constant 0 : index
    %268 = vector.load %arg4[%c8_246, %c0_247, %c0_248] : memref<9x128x128xbf16, #tpu.memory_space<vmem>>, vector<1x128x128xbf16>
    %269 = vector.shape_cast %268 : vector<1x128x128xbf16> to vector<128x128xbf16>
    %cst_249 = arith.constant dense<0.000000e+00> : vector<16x128xf32>
    %270 = tpu.matmul %267, %269, %cst_249 {dimension_numbers = #tpu.dot_dimension_numbers<[1], [0], [0], [1], [0, 0, 1, 1], [], []>} : vector<16x128xbf16>, vector<128x128xbf16>, vector<16x128xf32> -> vector<16x128xf32>
    %271 = arith.addf %265, %270 : vector<16x128xf32>
    %cst_250 = arith.constant 0.000000e+00 : f32
    %272 = vector.broadcast %cst_250 : f32 to vector<16x128xf32>
    %273 = arith.maximumf %271, %272 : vector<16x128xf32>
    %274 = arith.maximumf %71, %273 : vector<16x128xf32>
    %275 = arith.maximumf %274, %71 : vector<16x128xf32>
    %c42_251 = arith.constant 42 : index
    %c0_252 = arith.constant 0 : index
    %c0_253 = arith.constant 0 : index
    %276 = vector.load %arg15[%c42_251, %c0_252, %c0_253] : memref<49x16x128xbf16, #tpu.memory_space<vmem>>, vector<1x16x128xbf16>
    %277 = vector.shape_cast %276 : vector<1x16x128xbf16> to vector<16x128xbf16>
    %c0_254 = arith.constant 0 : index
    %c0_255 = arith.constant 0 : index
    %c0_256 = arith.constant 0 : index
    %278 = vector.load %arg4[%c0_254, %c0_255, %c0_256] : memref<9x128x128xbf16, #tpu.memory_space<vmem>>, vector<1x128x128xbf16>
    %279 = vector.shape_cast %278 : vector<1x128x128xbf16> to vector<128x128xbf16>
    %cst_257 = arith.constant dense<0.000000e+00> : vector<16x128xf32>
    %280 = tpu.matmul %277, %279, %cst_257 {dimension_numbers = #tpu.dot_dimension_numbers<[1], [0], [0], [1], [0, 0, 1, 1], [], []>} : vector<16x128xbf16>, vector<128x128xbf16>, vector<16x128xf32> -> vector<16x128xf32>
    %281 = arith.addf %69, %280 : vector<16x128xf32>
    %c43 = arith.constant 43 : index
    %c0_258 = arith.constant 0 : index
    %c0_259 = arith.constant 0 : index
    %282 = vector.load %arg15[%c43, %c0_258, %c0_259] : memref<49x16x128xbf16, #tpu.memory_space<vmem>>, vector<1x16x128xbf16>
    %283 = vector.shape_cast %282 : vector<1x16x128xbf16> to vector<16x128xbf16>
    %c1_260 = arith.constant 1 : index
    %c0_261 = arith.constant 0 : index
    %c0_262 = arith.constant 0 : index
    %284 = vector.load %arg4[%c1_260, %c0_261, %c0_262] : memref<9x128x128xbf16, #tpu.memory_space<vmem>>, vector<1x128x128xbf16>
    %285 = vector.shape_cast %284 : vector<1x128x128xbf16> to vector<128x128xbf16>
    %cst_263 = arith.constant dense<0.000000e+00> : vector<16x128xf32>
    %286 = tpu.matmul %283, %285, %cst_263 {dimension_numbers = #tpu.dot_dimension_numbers<[1], [0], [0], [1], [0, 0, 1, 1], [], []>} : vector<16x128xbf16>, vector<128x128xbf16>, vector<16x128xf32> -> vector<16x128xf32>
    %287 = arith.addf %281, %286 : vector<16x128xf32>
    %c44 = arith.constant 44 : index
    %c0_264 = arith.constant 0 : index
    %c0_265 = arith.constant 0 : index
    %288 = vector.load %arg15[%c44, %c0_264, %c0_265] : memref<49x16x128xbf16, #tpu.memory_space<vmem>>, vector<1x16x128xbf16>
    %289 = vector.shape_cast %288 : vector<1x16x128xbf16> to vector<16x128xbf16>
    %c2_266 = arith.constant 2 : index
    %c0_267 = arith.constant 0 : index
    %c0_268 = arith.constant 0 : index
    %290 = vector.load %arg4[%c2_266, %c0_267, %c0_268] : memref<9x128x128xbf16, #tpu.memory_space<vmem>>, vector<1x128x128xbf16>
    %291 = vector.shape_cast %290 : vector<1x128x128xbf16> to vector<128x128xbf16>
    %cst_269 = arith.constant dense<0.000000e+00> : vector<16x128xf32>
    %292 = tpu.matmul %289, %291, %cst_269 {dimension_numbers = #tpu.dot_dimension_numbers<[1], [0], [0], [1], [0, 0, 1, 1], [], []>} : vector<16x128xbf16>, vector<128x128xbf16>, vector<16x128xf32> -> vector<16x128xf32>
    %293 = arith.addf %287, %292 : vector<16x128xf32>
    %cst_270 = arith.constant 0.000000e+00 : f32
    %294 = vector.broadcast %cst_270 : f32 to vector<16x128xf32>
    %295 = arith.maximumf %293, %294 : vector<16x128xf32>
    %296 = arith.maximumf %275, %295 : vector<16x128xf32>
    %297 = arith.truncf %296 : vector<16x128xf32> to vector<16x128xbf16>
    %c2_271 = arith.constant 2 : index
    %c0_272 = arith.constant 0 : index
    %c0_273 = arith.constant 0 : index
    %298 = vector.load %arg16[%c2_271, %c0_272, %c0_273] : memref<4x16x128xbf16, #tpu.memory_space<vmem>>, vector<1x16x128xbf16>
    %299 = vector.shape_cast %298 : vector<1x16x128xbf16> to vector<16x128xbf16>
    %300 = vector.shape_cast %297 : vector<16x128xbf16> to vector<1x16x128xbf16>
    tpu.vector_store %arg16[%c2_271, %c0_272, %c0_273], %300 {strides = array<i32>} : memref<4x16x128xbf16, #tpu.memory_space<vmem>>, vector<1x16x128xbf16>,
    %c24 = arith.constant 24 : index
    %c0_274 = arith.constant 0 : index
    %c0_275 = arith.constant 0 : index
    %301 = vector.load %arg15[%c24, %c0_274, %c0_275] : memref<49x16x128xbf16, #tpu.memory_space<vmem>>, vector<1x16x128xbf16>
    %302 = vector.shape_cast %301 : vector<1x16x128xbf16> to vector<16x128xbf16>
    %c0_276 = arith.constant 0 : index
    %c0_277 = arith.constant 0 : index
    %c0_278 = arith.constant 0 : index
    %303 = vector.load %arg4[%c0_276, %c0_277, %c0_278] : memref<9x128x128xbf16, #tpu.memory_space<vmem>>, vector<1x128x128xbf16>
    %304 = vector.shape_cast %303 : vector<1x128x128xbf16> to vector<128x128xbf16>
    %cst_279 = arith.constant dense<0.000000e+00> : vector<16x128xf32>
    %305 = tpu.matmul %302, %304, %cst_279 {dimension_numbers = #tpu.dot_dimension_numbers<[1], [0], [0], [1], [0, 0, 1, 1], [], []>} : vector<16x128xbf16>, vector<128x128xbf16>, vector<16x128xf32> -> vector<16x128xf32>
    %306 = arith.addf %69, %305 : vector<16x128xf32>
    %c25 = arith.constant 25 : index
    %c0_280 = arith.constant 0 : index
    %c0_281 = arith.constant 0 : index
    %307 = vector.load %arg15[%c25, %c0_280, %c0_281] : memref<49x16x128xbf16, #tpu.memory_space<vmem>>, vector<1x16x128xbf16>
    %308 = vector.shape_cast %307 : vector<1x16x128xbf16> to vector<16x128xbf16>
    %c1_282 = arith.constant 1 : index
    %c0_283 = arith.constant 0 : index
    %c0_284 = arith.constant 0 : index
    %309 = vector.load %arg4[%c1_282, %c0_283, %c0_284] : memref<9x128x128xbf16, #tpu.memory_space<vmem>>, vector<1x128x128xbf16>
    %310 = vector.shape_cast %309 : vector<1x128x128xbf16> to vector<128x128xbf16>
    %cst_285 = arith.constant dense<0.000000e+00> : vector<16x128xf32>
    %311 = tpu.matmul %308, %310, %cst_285 {dimension_numbers = #tpu.dot_dimension_numbers<[1], [0], [0], [1], [0, 0, 1, 1], [], []>} : vector<16x128xbf16>, vector<128x128xbf16>, vector<16x128xf32> -> vector<16x128xf32>
    %312 = arith.addf %306, %311 : vector<16x128xf32>
    %c26 = arith.constant 26 : index
    %c0_286 = arith.constant 0 : index
    %c0_287 = arith.constant 0 : index
    %313 = vector.load %arg15[%c26, %c0_286, %c0_287] : memref<49x16x128xbf16, #tpu.memory_space<vmem>>, vector<1x16x128xbf16>
    %314 = vector.shape_cast %313 : vector<1x16x128xbf16> to vector<16x128xbf16>
    %c2_288 = arith.constant 2 : index
    %c0_289 = arith.constant 0 : index
    %c0_290 = arith.constant 0 : index
    %315 = vector.load %arg4[%c2_288, %c0_289, %c0_290] : memref<9x128x128xbf16, #tpu.memory_space<vmem>>, vector<1x128x128xbf16>
    %316 = vector.shape_cast %315 : vector<1x128x128xbf16> to vector<128x128xbf16>
    %cst_291 = arith.constant dense<0.000000e+00> : vector<16x128xf32>
    %317 = tpu.matmul %314, %316, %cst_291 {dimension_numbers = #tpu.dot_dimension_numbers<[1], [0], [0], [1], [0, 0, 1, 1], [], []>} : vector<16x128xbf16>, vector<128x128xbf16>, vector<16x128xf32> -> vector<16x128xf32>
    %318 = arith.addf %312, %317 : vector<16x128xf32>
    %c31 = arith.constant 31 : index
    %c0_292 = arith.constant 0 : index
    %c0_293 = arith.constant 0 : index
    %319 = vector.load %arg15[%c31, %c0_292, %c0_293] : memref<49x16x128xbf16, #tpu.memory_space<vmem>>, vector<1x16x128xbf16>
    %320 = vector.shape_cast %319 : vector<1x16x128xbf16> to vector<16x128xbf16>
    %c3_294 = arith.constant 3 : index
    %c0_295 = arith.constant 0 : index
    %c0_296 = arith.constant 0 : index
    %321 = vector.load %arg4[%c3_294, %c0_295, %c0_296] : memref<9x128x128xbf16, #tpu.memory_space<vmem>>, vector<1x128x128xbf16>
    %322 = vector.shape_cast %321 : vector<1x128x128xbf16> to vector<128x128xbf16>
    %cst_297 = arith.constant dense<0.000000e+00> : vector<16x128xf32>
    %323 = tpu.matmul %320, %322, %cst_297 {dimension_numbers = #tpu.dot_dimension_numbers<[1], [0], [0], [1], [0, 0, 1, 1], [], []>} : vector<16x128xbf16>, vector<128x128xbf16>, vector<16x128xf32> -> vector<16x128xf32>
    %324 = arith.addf %318, %323 : vector<16x128xf32>
    %c32 = arith.constant 32 : index
    %c0_298 = arith.constant 0 : index
    %c0_299 = arith.constant 0 : index
    %325 = vector.load %arg15[%c32, %c0_298, %c0_299] : memref<49x16x128xbf16, #tpu.memory_space<vmem>>, vector<1x16x128xbf16>
    %326 = vector.shape_cast %325 : vector<1x16x128xbf16> to vector<16x128xbf16>
    %c4_300 = arith.constant 4 : index
    %c0_301 = arith.constant 0 : index
    %c0_302 = arith.constant 0 : index
    %327 = vector.load %arg4[%c4_300, %c0_301, %c0_302] : memref<9x128x128xbf16, #tpu.memory_space<vmem>>, vector<1x128x128xbf16>
    %328 = vector.shape_cast %327 : vector<1x128x128xbf16> to vector<128x128xbf16>
    %cst_303 = arith.constant dense<0.000000e+00> : vector<16x128xf32>
    %329 = tpu.matmul %326, %328, %cst_303 {dimension_numbers = #tpu.dot_dimension_numbers<[1], [0], [0], [1], [0, 0, 1, 1], [], []>} : vector<16x128xbf16>, vector<128x128xbf16>, vector<16x128xf32> -> vector<16x128xf32>
    %330 = arith.addf %324, %329 : vector<16x128xf32>
    %c33 = arith.constant 33 : index
    %c0_304 = arith.constant 0 : index
    %c0_305 = arith.constant 0 : index
    %331 = vector.load %arg15[%c33, %c0_304, %c0_305] : memref<49x16x128xbf16, #tpu.memory_space<vmem>>, vector<1x16x128xbf16>
    %332 = vector.shape_cast %331 : vector<1x16x128xbf16> to vector<16x128xbf16>
    %c5_306 = arith.constant 5 : index
    %c0_307 = arith.constant 0 : index
    %c0_308 = arith.constant 0 : index
    %333 = vector.load %arg4[%c5_306, %c0_307, %c0_308] : memref<9x128x128xbf16, #tpu.memory_space<vmem>>, vector<1x128x128xbf16>
    %334 = vector.shape_cast %333 : vector<1x128x128xbf16> to vector<128x128xbf16>
    %cst_309 = arith.constant dense<0.000000e+00> : vector<16x128xf32>
    %335 = tpu.matmul %332, %334, %cst_309 {dimension_numbers = #tpu.dot_dimension_numbers<[1], [0], [0], [1], [0, 0, 1, 1], [], []>} : vector<16x128xbf16>, vector<128x128xbf16>, vector<16x128xf32> -> vector<16x128xf32>
    %336 = arith.addf %330, %335 : vector<16x128xf32>
    %c38 = arith.constant 38 : index
    %c0_310 = arith.constant 0 : index
    %c0_311 = arith.constant 0 : index
    %337 = vector.load %arg15[%c38, %c0_310, %c0_311] : memref<49x16x128xbf16, #tpu.memory_space<vmem>>, vector<1x16x128xbf16>
    %338 = vector.shape_cast %337 : vector<1x16x128xbf16> to vector<16x128xbf16>
    %c6_312 = arith.constant 6 : index
    %c0_313 = arith.constant 0 : index
    %c0_314 = arith.constant 0 : index
    %339 = vector.load %arg4[%c6_312, %c0_313, %c0_314] : memref<9x128x128xbf16, #tpu.memory_space<vmem>>, vector<1x128x128xbf16>
    %340 = vector.shape_cast %339 : vector<1x128x128xbf16> to vector<128x128xbf16>
    %cst_315 = arith.constant dense<0.000000e+00> : vector<16x128xf32>
    %341 = tpu.matmul %338, %340, %cst_315 {dimension_numbers = #tpu.dot_dimension_numbers<[1], [0], [0], [1], [0, 0, 1, 1], [], []>} : vector<16x128xbf16>, vector<128x128xbf16>, vector<16x128xf32> -> vector<16x128xf32>
    %342 = arith.addf %336, %341 : vector<16x128xf32>
    %c39 = arith.constant 39 : index
    %c0_316 = arith.constant 0 : index
    %c0_317 = arith.constant 0 : index
    %343 = vector.load %arg15[%c39, %c0_316, %c0_317] : memref<49x16x128xbf16, #tpu.memory_space<vmem>>, vector<1x16x128xbf16>
    %344 = vector.shape_cast %343 : vector<1x16x128xbf16> to vector<16x128xbf16>
    %c7_318 = arith.constant 7 : index
    %c0_319 = arith.constant 0 : index
    %c0_320 = arith.constant 0 : index
    %345 = vector.load %arg4[%c7_318, %c0_319, %c0_320] : memref<9x128x128xbf16, #tpu.memory_space<vmem>>, vector<1x128x128xbf16>
    %346 = vector.shape_cast %345 : vector<1x128x128xbf16> to vector<128x128xbf16>
    %cst_321 = arith.constant dense<0.000000e+00> : vector<16x128xf32>
    %347 = tpu.matmul %344, %346, %cst_321 {dimension_numbers = #tpu.dot_dimension_numbers<[1], [0], [0], [1], [0, 0, 1, 1], [], []>} : vector<16x128xbf16>, vector<128x128xbf16>, vector<16x128xf32> -> vector<16x128xf32>
    %348 = arith.addf %342, %347 : vector<16x128xf32>
    %c40 = arith.constant 40 : index
    %c0_322 = arith.constant 0 : index
    %c0_323 = arith.constant 0 : index
    %349 = vector.load %arg15[%c40, %c0_322, %c0_323] : memref<49x16x128xbf16, #tpu.memory_space<vmem>>, vector<1x16x128xbf16>
    %350 = vector.shape_cast %349 : vector<1x16x128xbf16> to vector<16x128xbf16>
    %c8_324 = arith.constant 8 : index
    %c0_325 = arith.constant 0 : index
    %c0_326 = arith.constant 0 : index
    %351 = vector.load %arg4[%c8_324, %c0_325, %c0_326] : memref<9x128x128xbf16, #tpu.memory_space<vmem>>, vector<1x128x128xbf16>
    %352 = vector.shape_cast %351 : vector<1x128x128xbf16> to vector<128x128xbf16>
    %cst_327 = arith.constant dense<0.000000e+00> : vector<16x128xf32>
    %353 = tpu.matmul %350, %352, %cst_327 {dimension_numbers = #tpu.dot_dimension_numbers<[1], [0], [0], [1], [0, 0, 1, 1], [], []>} : vector<16x128xbf16>, vector<128x128xbf16>, vector<16x128xf32> -> vector<16x128xf32>
    %354 = arith.addf %348, %353 : vector<16x128xf32>
    %cst_328 = arith.constant 0.000000e+00 : f32
    %355 = vector.broadcast %cst_328 : f32 to vector<16x128xf32>
    %356 = arith.maximumf %354, %355 : vector<16x128xf32>
    %c27 = arith.constant 27 : index
    %c0_329 = arith.constant 0 : index
    %c0_330 = arith.constant 0 : index
    %357 = vector.load %arg15[%c27, %c0_329, %c0_330] : memref<49x16x128xbf16, #tpu.memory_space<vmem>>, vector<1x16x128xbf16>
    %358 = vector.shape_cast %357 : vector<1x16x128xbf16> to vector<16x128xbf16>
    %c0_331 = arith.constant 0 : index
    %c0_332 = arith.constant 0 : index
    %c0_333 = arith.constant 0 : index
    %359 = vector.load %arg4[%c0_331, %c0_332, %c0_333] : memref<9x128x128xbf16, #tpu.memory_space<vmem>>, vector<1x128x128xbf16>
    %360 = vector.shape_cast %359 : vector<1x128x128xbf16> to vector<128x128xbf16>
    %cst_334 = arith.constant dense<0.000000e+00> : vector<16x128xf32>
    %361 = tpu.matmul %358, %360, %cst_334 {dimension_numbers = #tpu.dot_dimension_numbers<[1], [0], [0], [1], [0, 0, 1, 1], [], []>} : vector<16x128xbf16>, vector<128x128xbf16>, vector<16x128xf32> -> vector<16x128xf32>
    %362 = arith.addf %69, %361 : vector<16x128xf32>
    %c34 = arith.constant 34 : index
    %c0_335 = arith.constant 0 : index
    %c0_336 = arith.constant 0 : index
    %363 = vector.load %arg15[%c34, %c0_335, %c0_336] : memref<49x16x128xbf16, #tpu.memory_space<vmem>>, vector<1x16x128xbf16>
    %364 = vector.shape_cast %363 : vector<1x16x128xbf16> to vector<16x128xbf16>
    %c3_337 = arith.constant 3 : index
    %c0_338 = arith.constant 0 : index
    %c0_339 = arith.constant 0 : index
    %365 = vector.load %arg4[%c3_337, %c0_338, %c0_339] : memref<9x128x128xbf16, #tpu.memory_space<vmem>>, vector<1x128x128xbf16>
    %366 = vector.shape_cast %365 : vector<1x128x128xbf16> to vector<128x128xbf16>
    %cst_340 = arith.constant dense<0.000000e+00> : vector<16x128xf32>
    %367 = tpu.matmul %364, %366, %cst_340 {dimension_numbers = #tpu.dot_dimension_numbers<[1], [0], [0], [1], [0, 0, 1, 1], [], []>} : vector<16x128xbf16>, vector<128x128xbf16>, vector<16x128xf32> -> vector<16x128xf32>
    %368 = arith.addf %362, %367 : vector<16x128xf32>
    %c41 = arith.constant 41 : index
    %c0_341 = arith.constant 0 : index
    %c0_342 = arith.constant 0 : index
    %369 = vector.load %arg15[%c41, %c0_341, %c0_342] : memref<49x16x128xbf16, #tpu.memory_space<vmem>>, vector<1x16x128xbf16>
    %370 = vector.shape_cast %369 : vector<1x16x128xbf16> to vector<16x128xbf16>
    %c6_343 = arith.constant 6 : index
    %c0_344 = arith.constant 0 : index
    %c0_345 = arith.constant 0 : index
    %371 = vector.load %arg4[%c6_343, %c0_344, %c0_345] : memref<9x128x128xbf16, #tpu.memory_space<vmem>>, vector<1x128x128xbf16>
    %372 = vector.shape_cast %371 : vector<1x128x128xbf16> to vector<128x128xbf16>
    %cst_346 = arith.constant dense<0.000000e+00> : vector<16x128xf32>
    %373 = tpu.matmul %370, %372, %cst_346 {dimension_numbers = #tpu.dot_dimension_numbers<[1], [0], [0], [1], [0, 0, 1, 1], [], []>} : vector<16x128xbf16>, vector<128x128xbf16>, vector<16x128xf32> -> vector<16x128xf32>
    %374 = arith.addf %368, %373 : vector<16x128xf32>
    %cst_347 = arith.constant 0.000000e+00 : f32
    %375 = vector.broadcast %cst_347 : f32 to vector<16x128xf32>
    %376 = arith.maximumf %374, %375 : vector<16x128xf32>
    %377 = arith.maximumf %356, %376 : vector<16x128xf32>
    %c45 = arith.constant 45 : index
    %c0_348 = arith.constant 0 : index
    %c0_349 = arith.constant 0 : index
    %378 = vector.load %arg15[%c45, %c0_348, %c0_349] : memref<49x16x128xbf16, #tpu.memory_space<vmem>>, vector<1x16x128xbf16>
    %379 = vector.shape_cast %378 : vector<1x16x128xbf16> to vector<16x128xbf16>
    %c0_350 = arith.constant 0 : index
    %c0_351 = arith.constant 0 : index
    %c0_352 = arith.constant 0 : index
    %380 = vector.load %arg4[%c0_350, %c0_351, %c0_352] : memref<9x128x128xbf16, #tpu.memory_space<vmem>>, vector<1x128x128xbf16>
    %381 = vector.shape_cast %380 : vector<1x128x128xbf16> to vector<128x128xbf16>
    %cst_353 = arith.constant dense<0.000000e+00> : vector<16x128xf32>
    %382 = tpu.matmul %379, %381, %cst_353 {dimension_numbers = #tpu.dot_dimension_numbers<[1], [0], [0], [1], [0, 0, 1, 1], [], []>} : vector<16x128xbf16>, vector<128x128xbf16>, vector<16x128xf32> -> vector<16x128xf32>
    %383 = arith.addf %69, %382 : vector<16x128xf32>
    %c46 = arith.constant 46 : index
    %c0_354 = arith.constant 0 : index
    %c0_355 = arith.constant 0 : index
    %384 = vector.load %arg15[%c46, %c0_354, %c0_355] : memref<49x16x128xbf16, #tpu.memory_space<vmem>>, vector<1x16x128xbf16>
    %385 = vector.shape_cast %384 : vector<1x16x128xbf16> to vector<16x128xbf16>
    %c1_356 = arith.constant 1 : index
    %c0_357 = arith.constant 0 : index
    %c0_358 = arith.constant 0 : index
    %386 = vector.load %arg4[%c1_356, %c0_357, %c0_358] : memref<9x128x128xbf16, #tpu.memory_space<vmem>>, vector<1x128x128xbf16>
    %387 = vector.shape_cast %386 : vector<1x128x128xbf16> to vector<128x128xbf16>
    %cst_359 = arith.constant dense<0.000000e+00> : vector<16x128xf32>
    %388 = tpu.matmul %385, %387, %cst_359 {dimension_numbers = #tpu.dot_dimension_numbers<[1], [0], [0], [1], [0, 0, 1, 1], [], []>} : vector<16x128xbf16>, vector<128x128xbf16>, vector<16x128xf32> -> vector<16x128xf32>
    %389 = arith.addf %383, %388 : vector<16x128xf32>
    %c47 = arith.constant 47 : index
    %c0_360 = arith.constant 0 : index
    %c0_361 = arith.constant 0 : index
    %390 = vector.load %arg15[%c47, %c0_360, %c0_361] : memref<49x16x128xbf16, #tpu.memory_space<vmem>>, vector<1x16x128xbf16>
    %391 = vector.shape_cast %390 : vector<1x16x128xbf16> to vector<16x128xbf16>
    %c2_362 = arith.constant 2 : index
    %c0_363 = arith.constant 0 : index
    %c0_364 = arith.constant 0 : index
    %392 = vector.load %arg4[%c2_362, %c0_363, %c0_364] : memref<9x128x128xbf16, #tpu.memory_space<vmem>>, vector<1x128x128xbf16>
    %393 = vector.shape_cast %392 : vector<1x128x128xbf16> to vector<128x128xbf16>
    %cst_365 = arith.constant dense<0.000000e+00> : vector<16x128xf32>
    %394 = tpu.matmul %391, %393, %cst_365 {dimension_numbers = #tpu.dot_dimension_numbers<[1], [0], [0], [1], [0, 0, 1, 1], [], []>} : vector<16x128xbf16>, vector<128x128xbf16>, vector<16x128xf32> -> vector<16x128xf32>
    %395 = arith.addf %389, %394 : vector<16x128xf32>
    %cst_366 = arith.constant 0.000000e+00 : f32
    %396 = vector.broadcast %cst_366 : f32 to vector<16x128xf32>
    %397 = arith.maximumf %395, %396 : vector<16x128xf32>
    %398 = arith.maximumf %377, %397 : vector<16x128xf32>
    %c48 = arith.constant 48 : index
    %c0_367 = arith.constant 0 : index
    %c0_368 = arith.constant 0 : index
    %399 = vector.load %arg15[%c48, %c0_367, %c0_368] : memref<49x16x128xbf16, #tpu.memory_space<vmem>>, vector<1x16x128xbf16>
    %400 = vector.shape_cast %399 : vector<1x16x128xbf16> to vector<16x128xbf16>
    %c0_369 = arith.constant 0 : index
    %c0_370 = arith.constant 0 : index
    %c0_371 = arith.constant 0 : index
    %401 = vector.load %arg4[%c0_369, %c0_370, %c0_371] : memref<9x128x128xbf16, #tpu.memory_space<vmem>>, vector<1x128x128xbf16>
    %402 = vector.shape_cast %401 : vector<1x128x128xbf16> to vector<128x128xbf16>
    %cst_372 = arith.constant dense<0.000000e+00> : vector<16x128xf32>
    %403 = tpu.matmul %400, %402, %cst_372 {dimension_numbers = #tpu.dot_dimension_numbers<[1], [0], [0], [1], [0, 0, 1, 1], [], []>} : vector<16x128xbf16>, vector<128x128xbf16>, vector<16x128xf32> -> vector<16x128xf32>
    %404 = arith.addf %69, %403 : vector<16x128xf32>
    %cst_373 = arith.constant 0.000000e+00 : f32
    %405 = vector.broadcast %cst_373 : f32 to vector<16x128xf32>
    %406 = arith.maximumf %404, %405 : vector<16x128xf32>
    %407 = arith.maximumf %398, %406 : vector<16x128xf32>
    %408 = arith.truncf %407 : vector<16x128xf32> to vector<16x128xbf16>
    %c3_374 = arith.constant 3 : index
    %c0_375 = arith.constant 0 : index
    %c0_376 = arith.constant 0 : index
    %409 = vector.load %arg16[%c3_374, %c0_375, %c0_376] : memref<4x16x128xbf16, #tpu.memory_space<vmem>>, vector<1x16x128xbf16>
    %410 = vector.shape_cast %409 : vector<1x16x128xbf16> to vector<16x128xbf16>
    %411 = vector.shape_cast %408 : vector<16x128xbf16> to vector<1x16x128xbf16>
    tpu.vector_store %arg16[%c3_374, %c0_375, %c0_376], %411 {strides = array<i32>} : memref<4x16x128xbf16, #tpu.memory_space<vmem>>, vector<1x16x128xbf16>,
    %c0_377 = arith.constant 0 : index
    %c0_378 = arith.constant 0 : index
    %412 = vector.load %arg7[%c0_377, %c0_378] : memref<1x64xf32, #tpu.memory_space<vmem>>, vector<1x64xf32>
    %413 = vector.shape_cast %412 : vector<1x64xf32> to vector<1x64xf32>
    %414 = vector.broadcast %413 : vector<1x64xf32> to vector<16x64xf32>
    %cst_379 = arith.constant 0.000000e+00 : f32
    %415 = vector.broadcast %cst_379 : f32 to vector<16x64xf32>
    %416 = arith.maximumf %414, %415 : vector<16x64xf32>
    %c0_380 = arith.constant 0 : index
    %c0_381 = arith.constant 0 : index
    %c0_382 = arith.constant 0 : index
    %417 = vector.load %arg16[%c0_380, %c0_381, %c0_382] : memref<4x16x128xbf16, #tpu.memory_space<vmem>>, vector<1x16x128xbf16>
    %418 = vector.shape_cast %417 : vector<1x16x128xbf16> to vector<16x128xbf16>
    %c0_383 = arith.constant 0 : index
    %c0_384 = arith.constant 0 : index
    %c0_385 = arith.constant 0 : index
    %419 = vector.load %arg6[%c0_383, %c0_384, %c0_385] : memref<9x128x64xbf16, #tpu.memory_space<vmem>>, vector<1x128x64xbf16>
    %420 = vector.shape_cast %419 : vector<1x128x64xbf16> to vector<128x64xbf16>
    %cst_386 = arith.constant dense<0.000000e+00> : vector<16x64xf32>
    %421 = tpu.matmul %418, %420, %cst_386 {dimension_numbers = #tpu.dot_dimension_numbers<[1], [0], [0], [1], [0, 0, 1, 1], [], []>} : vector<16x128xbf16>, vector<128x64xbf16>, vector<16x64xf32> -> vector<16x64xf32>
    %422 = arith.addf %414, %421 : vector<16x64xf32>
    %c1_387 = arith.constant 1 : index
    %c0_388 = arith.constant 0 : index
    %c0_389 = arith.constant 0 : index
    %423 = vector.load %arg16[%c1_387, %c0_388, %c0_389] : memref<4x16x128xbf16, #tpu.memory_space<vmem>>, vector<1x16x128xbf16>
    %424 = vector.shape_cast %423 : vector<1x16x128xbf16> to vector<16x128xbf16>
    %c1_390 = arith.constant 1 : index
    %c0_391 = arith.constant 0 : index
    %c0_392 = arith.constant 0 : index
    %425 = vector.load %arg6[%c1_390, %c0_391, %c0_392] : memref<9x128x64xbf16, #tpu.memory_space<vmem>>, vector<1x128x64xbf16>
    %426 = vector.shape_cast %425 : vector<1x128x64xbf16> to vector<128x64xbf16>
    %cst_393 = arith.constant dense<0.000000e+00> : vector<16x64xf32>
    %427 = tpu.matmul %424, %426, %cst_393 {dimension_numbers = #tpu.dot_dimension_numbers<[1], [0], [0], [1], [0, 0, 1, 1], [], []>} : vector<16x128xbf16>, vector<128x64xbf16>, vector<16x64xf32> -> vector<16x64xf32>
    %428 = arith.addf %422, %427 : vector<16x64xf32>
    %c2_394 = arith.constant 2 : index
    %c0_395 = arith.constant 0 : index
    %c0_396 = arith.constant 0 : index
    %429 = vector.load %arg16[%c2_394, %c0_395, %c0_396] : memref<4x16x128xbf16, #tpu.memory_space<vmem>>, vector<1x16x128xbf16>
    %430 = vector.shape_cast %429 : vector<1x16x128xbf16> to vector<16x128xbf16>
    %c3_397 = arith.constant 3 : index
    %c0_398 = arith.constant 0 : index
    %c0_399 = arith.constant 0 : index
    %431 = vector.load %arg6[%c3_397, %c0_398, %c0_399] : memref<9x128x64xbf16, #tpu.memory_space<vmem>>, vector<1x128x64xbf16>
    %432 = vector.shape_cast %431 : vector<1x128x64xbf16> to vector<128x64xbf16>
    %cst_400 = arith.constant dense<0.000000e+00> : vector<16x64xf32>
    %433 = tpu.matmul %430, %432, %cst_400 {dimension_numbers = #tpu.dot_dimension_numbers<[1], [0], [0], [1], [0, 0, 1, 1], [], []>} : vector<16x128xbf16>, vector<128x64xbf16>, vector<16x64xf32> -> vector<16x64xf32>
    %434 = arith.addf %428, %433 : vector<16x64xf32>
    %c3_401 = arith.constant 3 : index
    %c0_402 = arith.constant 0 : index
    %c0_403 = arith.constant 0 : index
    %435 = vector.load %arg16[%c3_401, %c0_402, %c0_403] : memref<4x16x128xbf16, #tpu.memory_space<vmem>>, vector<1x16x128xbf16>
    %436 = vector.shape_cast %435 : vector<1x16x128xbf16> to vector<16x128xbf16>
    %c4_404 = arith.constant 4 : index
    %c0_405 = arith.constant 0 : index
    %c0_406 = arith.constant 0 : index
    %437 = vector.load %arg6[%c4_404, %c0_405, %c0_406] : memref<9x128x64xbf16, #tpu.memory_space<vmem>>, vector<1x128x64xbf16>
    %438 = vector.shape_cast %437 : vector<1x128x64xbf16> to vector<128x64xbf16>
    %cst_407 = arith.constant dense<0.000000e+00> : vector<16x64xf32>
    %439 = tpu.matmul %436, %438, %cst_407 {dimension_numbers = #tpu.dot_dimension_numbers<[1], [0], [0], [1], [0, 0, 1, 1], [], []>} : vector<16x128xbf16>, vector<128x64xbf16>, vector<16x64xf32> -> vector<16x64xf32>
    %440 = arith.addf %434, %439 : vector<16x64xf32>
    %cst_408 = arith.constant 0.000000e+00 : f32
    %441 = vector.broadcast %cst_408 : f32 to vector<16x64xf32>
    %442 = arith.maximumf %440, %441 : vector<16x64xf32>
    %c0_409 = arith.constant 0 : index
    %c0_410 = arith.constant 0 : index
    %443 = vector.load %arg9[%c0_409, %c0_410] : memref<1x64xf32, #tpu.memory_space<vmem>>, vector<1x64xf32>
    %444 = vector.shape_cast %443 : vector<1x64xf32> to vector<1x64xf32>
    %445 = vector.broadcast %444 : vector<1x64xf32> to vector<16x64xf32>
    %cst_411 = arith.constant 0.000000e+00 : f32
    %446 = vector.broadcast %cst_411 : f32 to vector<16x64xf32>
    %447 = arith.maximumf %445, %446 : vector<16x64xf32>
    %448 = arith.truncf %416 : vector<16x64xf32> to vector<16x64xbf16>
    %c0_412 = arith.constant 0 : index
    %c0_413 = arith.constant 0 : index
    %c0_414 = arith.constant 0 : index
    %449 = vector.load %arg8[%c0_412, %c0_413, %c0_414] : memref<9x64x64xbf16, #tpu.memory_space<vmem>>, vector<1x64x64xbf16>
    %450 = vector.shape_cast %449 : vector<1x64x64xbf16> to vector<64x64xbf16>
    %cst_415 = arith.constant dense<0.000000e+00> : vector<16x64xf32>
    %451 = tpu.matmul %448, %450, %cst_415 {dimension_numbers = #tpu.dot_dimension_numbers<[1], [0], [0], [1], [0, 0, 1, 1], [], []>} : vector<16x64xbf16>, vector<64x64xbf16>, vector<16x64xf32> -> vector<16x64xf32>
    %452 = arith.addf %445, %451 : vector<16x64xf32>
    %453 = arith.truncf %416 : vector<16x64xf32> to vector<16x64xbf16>
    %c1_416 = arith.constant 1 : index
    %c0_417 = arith.constant 0 : index
    %c0_418 = arith.constant 0 : index
    %454 = vector.load %arg8[%c1_416, %c0_417, %c0_418] : memref<9x64x64xbf16, #tpu.memory_space<vmem>>, vector<1x64x64xbf16>
    %455 = vector.shape_cast %454 : vector<1x64x64xbf16> to vector<64x64xbf16>
    %cst_419 = arith.constant dense<0.000000e+00> : vector<16x64xf32>
    %456 = tpu.matmul %453, %455, %cst_419 {dimension_numbers = #tpu.dot_dimension_numbers<[1], [0], [0], [1], [0, 0, 1, 1], [], []>} : vector<16x64xbf16>, vector<64x64xbf16>, vector<16x64xf32> -> vector<16x64xf32>
    %457 = arith.addf %452, %456 : vector<16x64xf32>
    %458 = arith.truncf %416 : vector<16x64xf32> to vector<16x64xbf16>
    %c3_420 = arith.constant 3 : index
    %c0_421 = arith.constant 0 : index
    %c0_422 = arith.constant 0 : index
    %459 = vector.load %arg8[%c3_420, %c0_421, %c0_422] : memref<9x64x64xbf16, #tpu.memory_space<vmem>>, vector<1x64x64xbf16>
    %460 = vector.shape_cast %459 : vector<1x64x64xbf16> to vector<64x64xbf16>
    %cst_423 = arith.constant dense<0.000000e+00> : vector<16x64xf32>
    %461 = tpu.matmul %458, %460, %cst_423 {dimension_numbers = #tpu.dot_dimension_numbers<[1], [0], [0], [1], [0, 0, 1, 1], [], []>} : vector<16x64xbf16>, vector<64x64xbf16>, vector<16x64xf32> -> vector<16x64xf32>
    %462 = arith.addf %457, %461 : vector<16x64xf32>
    %463 = arith.truncf %442 : vector<16x64xf32> to vector<16x64xbf16>
    %c4_424 = arith.constant 4 : index
    %c0_425 = arith.constant 0 : index
    %c0_426 = arith.constant 0 : index
    %464 = vector.load %arg8[%c4_424, %c0_425, %c0_426] : memref<9x64x64xbf16, #tpu.memory_space<vmem>>, vector<1x64x64xbf16>
    %465 = vector.shape_cast %464 : vector<1x64x64xbf16> to vector<64x64xbf16>
    %cst_427 = arith.constant dense<0.000000e+00> : vector<16x64xf32>
    %466 = tpu.matmul %463, %465, %cst_427 {dimension_numbers = #tpu.dot_dimension_numbers<[1], [0], [0], [1], [0, 0, 1, 1], [], []>} : vector<16x64xbf16>, vector<64x64xbf16>, vector<16x64xf32> -> vector<16x64xf32>
    %467 = arith.addf %462, %466 : vector<16x64xf32>
    %cst_428 = arith.constant 0.000000e+00 : f32
    %468 = vector.broadcast %cst_428 : f32 to vector<16x64xf32>
    %469 = arith.maximumf %467, %468 : vector<16x64xf32>
    %470 = arith.maximumf %447, %447 : vector<16x64xf32>
    %471 = arith.maximumf %470, %447 : vector<16x64xf32>
    %472 = arith.maximumf %471, %469 : vector<16x64xf32>
    %c0_429 = arith.constant 0 : index
    %c0_430 = arith.constant 0 : index
    %473 = vector.load %arg10[%c0_429, %c0_430] : memref<64x32xf32, #tpu.memory_space<vmem>>, vector<64x32xf32>
    %cst_431 = arith.constant dense<0.000000e+00> : vector<16x32xf32>
    %474 = tpu.matmul %472, %473, %cst_431 {dimension_numbers = #tpu.dot_dimension_numbers<[1], [0], [0], [1], [0, 0, 1, 1], [], []>} : vector<16x64xf32>, vector<64x32xf32>, vector<16x32xf32> -> vector<16x32xf32>
    %c0_432 = arith.constant 0 : index
    %c0_433 = arith.constant 0 : index
    %475 = vector.load %arg11[%c0_432, %c0_433] : memref<1x32xf32, #tpu.memory_space<vmem>>, vector<1x32xf32>
    %476 = vector.broadcast %475 : vector<1x32xf32> to vector<16x32xf32>
    %477 = arith.addf %474, %476 : vector<16x32xf32>
    %c0_434 = arith.constant 0 : index
    %c0_435 = arith.constant 0 : index
    %478 = vector.load %arg12[%c0_434, %c0_435] : memref<32x128xf32, #tpu.memory_space<vmem>>, vector<32x128xf32>
    %cst_436 = arith.constant dense<0.000000e+00> : vector<16x128xf32>
    %479 = tpu.matmul %477, %478, %cst_436 {dimension_numbers = #tpu.dot_dimension_numbers<[1], [0], [0], [1], [0, 0, 1, 1], [], []>} : vector<16x32xf32>, vector<32x128xf32>, vector<16x128xf32> -> vector<16x128xf32>
    %c0_437 = arith.constant 0 : index
    %c0_438 = arith.constant 0 : index
    %480 = vector.load %arg13[%c0_437, %c0_438] : memref<1x128xf32, #tpu.memory_space<vmem>>, vector<1x128xf32>
    %481 = vector.broadcast %480 : vector<1x128xf32> to vector<16x128xf32>
    %482 = arith.addf %479, %481 : vector<16x128xf32>
    %483 = math.absf %482 : vector<16x128xf32>
    %cst_439 = arith.constant 0.000000e+00 : f32
    %484 = vector.broadcast %cst_439 : f32 to vector<16x128xf32>
    %485 = arith.subf %484, %483 : vector<16x128xf32>
    %486 = math.exp %485 : vector<16x128xf32>
    %cst_440 = arith.constant 0.000000e+00 : f32
    %487 = vector.broadcast %cst_440 : f32 to vector<16x128xf32>
    %488 = arith.cmpf oge, %482, %487 : vector<16x128xf32>
    %cst_441 = arith.constant 1.000000e+00 : f32
    %489 = vector.broadcast %cst_441 : f32 to vector<16x128xf32>
    %490 = arith.addf %489, %486 : vector<16x128xf32>
    %cst_442 = arith.constant 1.000000e+00 : f32
    %491 = vector.broadcast %cst_442 : f32 to vector<16x128xf32>
    %492 = arith.divf %491, %490 : vector<16x128xf32>
    %cst_443 = arith.constant 1.000000e+00 : f32
    %493 = vector.broadcast %cst_443 : f32 to vector<16x128xf32>
    %494 = arith.addf %493, %486 : vector<16x128xf32>
    %495 = arith.divf %486, %494 : vector<16x128xf32>
    %496 = arith.select %488, %492, %495 : vector<16x128xi1>, vector<16x128xf32>
    %c0_444 = arith.constant 0 : index
    %c0_445 = arith.constant 0 : index
    %497 = vector.load %arg14[%c0_444, %c0_445] : memref<16x128xf32, #tpu.memory_space<vmem>>, vector<16x128xf32>
    tpu.vector_store %arg14[%c0_444, %c0_445], %496 {strides = array<i32>} : memref<16x128xf32, #tpu.memory_space<vmem>>, vector<16x128xf32>,
    return
  }
  func.func @transform_0(%arg0: i32) -> (i32, i32, i32) {
    %c0_i32 = arith.constant 0 : i32
    %c0_i32_0 = arith.constant 0 : i32
    %c0_i32_1 = arith.constant 0 : i32
    return %c0_i32, %arg0, %c0_i32_0 : i32, i32, i32
  }
  func.func @transform_1(%arg0: i32) -> (i32, i32) {
    %c0_i32 = arith.constant 0 : i32
    %c0_i32_0 = arith.constant 0 : i32
    %c0_i32_1 = arith.constant 0 : i32
    return %c0_i32, %c0_i32_0 : i32, i32
  }
  func.func @transform_2(%arg0: i32) -> (i32, i32) {
    %c0_i32 = arith.constant 0 : i32
    %c0_i32_0 = arith.constant 0 : i32
    %c0_i32_1 = arith.constant 0 : i32
    return %c0_i32, %c0_i32_0 : i32, i32
  }
  func.func @transform_3(%arg0: i32) -> (i32, i32, i32) {
    %c0_i32 = arith.constant 0 : i32
    %c0_i32_0 = arith.constant 0 : i32
    %c0_i32_1 = arith.constant 0 : i32
    %c0_i32_2 = arith.constant 0 : i32
    return %c0_i32, %c0_i32_0, %c0_i32_1 : i32, i32, i32
  }
  func.func @transform_4(%arg0: i32) -> (i32, i32) {
    %c0_i32 = arith.constant 0 : i32
    %c0_i32_0 = arith.constant 0 : i32
    %c0_i32_1 = arith.constant 0 : i32
    return %c0_i32, %c0_i32_0 : i32, i32
  }
  func.func @transform_5(%arg0: i32) -> (i32, i32, i32) {
    %c0_i32 = arith.constant 0 : i32
    %c0_i32_0 = arith.constant 0 : i32
    %c0_i32_1 = arith.constant 0 : i32
    %c0_i32_2 = arith.constant 0 : i32
    return %c0_i32, %c0_i32_0, %c0_i32_1 : i32, i32, i32
  }
  func.func @transform_6(%arg0: i32) -> (i32, i32) {
    %c0_i32 = arith.constant 0 : i32
    %c0_i32_0 = arith.constant 0 : i32
    %c0_i32_1 = arith.constant 0 : i32
    return %c0_i32, %c0_i32_0 : i32, i32
  }
  func.func @transform_7(%arg0: i32) -> (i32, i32, i32) {
    %c0_i32 = arith.constant 0 : i32
    %c0_i32_0 = arith.constant 0 : i32
    %c0_i32_1 = arith.constant 0 : i32
    %c0_i32_2 = arith.constant 0 : i32
    return %c0_i32, %c0_i32_0, %c0_i32_1 : i32, i32, i32
  }
  func.func @transform_8(%arg0: i32) -> (i32, i32) {
    %c0_i32 = arith.constant 0 : i32
    %c0_i32_0 = arith.constant 0 : i32
    %c0_i32_1 = arith.constant 0 : i32
    return %c0_i32, %c0_i32_0 : i32, i32
  }
  func.func @transform_9(%arg0: i32) -> (i32, i32) {
    %c0_i32 = arith.constant 0 : i32
    %c0_i32_0 = arith.constant 0 : i32
    %c0_i32_1 = arith.constant 0 : i32
    return %c0_i32, %c0_i32_0 : i32, i32
  }
  func.func @transform_10(%arg0: i32) -> (i32, i32) {
    %c0_i32 = arith.constant 0 : i32
    %c0_i32_0 = arith.constant 0 : i32
    %c0_i32_1 = arith.constant 0 : i32
    return %c0_i32, %c0_i32_0 : i32, i32
  }
  func.func @transform_11(%arg0: i32) -> (i32, i32) {
    %c0_i32 = arith.constant 0 : i32
    %c0_i32_0 = arith.constant 0 : i32
    %c0_i32_1 = arith.constant 0 : i32
    return %c0_i32, %c0_i32_0 : i32, i32
  }
  func.func @transform_12(%arg0: i32) -> (i32, i32) {
    %c0_i32 = arith.constant 0 : i32
    %c0_i32_0 = arith.constant 0 : i32
    %c0_i32_1 = arith.constant 0 : i32
    return %c0_i32, %c0_i32_0 : i32, i32
  }
  func.func @transform_13(%arg0: i32) -> (i32, i32) {
    %c0_i32 = arith.constant 0 : i32
    %c0_i32_0 = arith.constant 0 : i32
    return %arg0, %c0_i32 : i32, i32
  }
}

</mosaic_0001>

<bundles_post_ra>
// kernel: classification_cnn_forward.1
= control target key start
LH: loop header
LB: loop body
LE: loop exit
PB: predicated region body
PF: predicated region fallthrough
CT: control target
= control target key end

     0   :  { %vm130_vm0 = vcmask 1043456   ;;  %vm131_vm1 = vcmask 1044480   ;;  %v11792_v0 = vmov 0.0   ;;  %v11793_v2 = vmov 65535   ;;  %s14380_s1 = inlined_call_operand.vmem [shape: bf16[9,128], index: 1, kind: input, shape index: {}]   ;;  %s14381_s0 = inlined_call_operand.vmem [shape: bf16[49,16,9], index: 0, kind: input, shape index: {}]   ;;  %s14382_s3 = inlined_call_operand.vmem [shape: bf16[9,128,128], index: 3, kind: input, shape index: {}]   ;;  %s14383_s2 = inlined_call_operand.vmem [shape: f32[1,128], index: 2, kind: input, shape index: {}]   ;;  %s14384_s4 = inlined_call_operand.vmem [shape: f32[1,128], index: 4, kind: input, shape index: {}]   ;;  %s14385_s5 = inlined_call_operand.vmem [shape: bf16[9,128,64], index: 5, kind: input, shape index: {}]   ;;  %s14386_s7 = inlined_call_operand.vmem [shape: bf16[9,64,64], index: 7, kind: input, shape index: {}]   ;;  %s14387_s6 = inlined_call_operand.vmem [shape: f32[1,64], index: 6, kind: input, shape index: {}]   ;;  %s14388_s9 = inlined_call_operand.vmem [shape: f32[64,32], index: 9, kind: input, shape index: {}]   ;;  %s14389_s8 = inlined_call_operand.vmem [shape: f32[1,64], index: 8, kind: input, shape index: {}]   ;;  %s14390_s11 = inlined_call_operand.vmem [shape: f32[32,128], index: 11, kind: input, shape index: {}]   ;;  %s14391_s10 = inlined_call_operand.vmem [shape: f32[1,32], index: 10, kind: input, shape index: {}]   ;;  %s14392_s12 = inlined_call_operand.vmem [shape: f32[1,128], index: 12, kind: input, shape index: {}]   ;;  %s14393_s13 = inlined_call_operand.vmem [shape: f32[16,128], index: 13, kind: output, shape index: {}]  }
   0x1   :  { %9990 = vmatprep.subr.bf16.mxu0 %v11792_v0  ;;  %v11341_v1 = vld [vmem:[%s14380_s1] sm:$0x1f]   ;;  %10020 = vmatprep.subr.bf16.mxu1 %v11792_v0  ;;  %v132_v3 = vsel %vm130_vm0, 4294967295, %v11793_v2  ;;  %vm11794_vm2 = vmmov 0   ;;  %vm108_vm3 = vcmask 72704   ;;  %v11347_v7 = vld [vmem:[%s14381_s0 + $0x38] sm:$0xff]  }
   0x2   :  { %v133_v4 = vsel %vm131_vm1, %v132_v3, 0  ;;  %9992 = vmatprep.mubr.msk.bf16.mxu0 %vm11794_vm2, %v11792_v0  ;;  %10022 = vmatprep.mubr.msk.bf16.mxu1 %vm11794_vm2, %v11792_v0  ;;  %v11342_v6 = vld [vmem:[%s14381_s0] sm:$0xff]   ;;  %v11343_v8 = vld [vmem:[%s14381_s0 + $0x8] sm:$0xff]   ;;  %v11344_v10 = vld [vmem:[%s14381_s0 + $0x10] sm:$0xff]   ;;  %vm7234_vm4 = vcmask 523264   ;;  %vm7624_vm5 = vcmask 261120  }
   0x3   :  { %v11874_v5 = vand.u32 %v11341_v1, %v133_v4  ;;  %v11349_v9 = vld [vmem:[%s14381_s0 + $0x40] sm:$0xff]   ;;  %v11351_v11 = vld [vmem:[%s14381_s0 + $0x48] sm:$0xff]   ;;  %v11345_v12 = vld [vmem:[%s14381_s0 + $0x18] sm:$0xff]  }
   0x4   :  { %v11353_v13 = vld [vmem:[%s14381_s0 + $0x50] sm:$0xff]   ;;  %v11346_v14 = vld [vmem:[%s14381_s0 + $0x20] sm:$0xff]   ;;  %v11355_v15 = vld [vmem:[%s14381_s0 + $0x58] sm:$0xff]  }
   0x5   :  { %9991 = vmatpush3.bf16.msra.mxu0 %v11874_v5  ;;  %10021 = vmatpush3.bf16.msra.mxu1 %v11874_v5  ;;  %v11348_v16 = vld [vmem:[%s14381_s0 + $0x28] sm:$0xff]   ;;  %v11357_v17 = vld [vmem:[%s14381_s0 + $0x60] sm:$0xff]   ;;  %v11350_v18 = vld [vmem:[%s14381_s0 + $0x30] sm:$0xff]  }
   0x6   :  { %10050 = vmatprep.subr.bf16.mxu0 %v11792_v0  ;;  %10080 = vmatprep.subr.bf16.mxu1 %v11792_v0  ;;  %v11359_v19 = vld [vmem:[%s14381_s0 + $0x68] sm:$0xff]   ;;  %v11352_v20 = vld [vmem:[%s14381_s0 + $0x70] sm:$0xff]   ;;  %v11354_v22 = vld [vmem:[%s14381_s0 + $0x78] sm:$0xff]  }
   0x7   :  { %v11361_v21 = vld [vmem:[%s14381_s0 + $0xa8] sm:$0xff]   ;;  %v11363_v23 = vld [vmem:[%s14381_s0 + $0xb0] sm:$0xff]   ;;  %v11356_v24 = vld [vmem:[%s14381_s0 + $0x80] sm:$0xff]  }
   0x8   :  { %9993 = vmatmul.mubr.msk.bf16.vlgmr.msra.gmra.mxu0 %vm108_vm3, %v11342_v6  ;;  %10023 = vmatmul.mubr.msk.bf16.vlgmr.msra.gmra.mxu1 %vm108_vm3, %v11347_v7  ;;  %v11365_v25 = vld [vmem:[%s14381_s0 + $0xb8] sm:$0xff]   ;;  %v11358_v26 = vld [vmem:[%s14381_s0 + $0x88] sm:$0xff]   ;;  %v11367_v27 = vld [vmem:[%s14381_s0 + $0xc0] sm:$0xff]  }
   0x9   :  { %9996 = vmatprep.mubr.msk.bf16.mxu0 %vm11794_vm2, %v11792_v0  ;;  %10051 = vmatpush3.bf16.msra.mxu0 %v11874_v5  ;;  %v11360_v28 = vld [vmem:[%s14381_s0 + $0x90] sm:$0xff]   ;;  %v11369_v29 = vld [vmem:[%s14381_s0 + $0xc8] sm:$0xff]   ;;  %v11362_v30 = vld [vmem:[%s14381_s0 + $0x98] sm:$0xff]  }
   0xa   :  { %10110 = vmatprep.subr.bf16.mxu0 %v11792_v0  ;;  %10081 = vmatpush3.bf16.msra.mxu1 %v11874_v5  ;;  %v11371_v31 = vld [vmem:[%s14381_s0 + $0xd0] sm:$0xff]   ;;  %v11364_v32 = vld [vmem:[%s14381_s0 + $0xa0] sm:$0xff]   ;;  %v11373_v33 = vld [vmem:[%s14381_s0 + $0xd8] sm:$0xff]  }
   0xb   :  { %10026 = vmatprep.mubr.msk.bf16.mxu1 %vm11794_vm2, %v11792_v0  ;;  %10140 = vmatprep.subr.bf16.mxu1 %v11792_v0  ;;  %v11366_v34 = vld [vmem:[%s14381_s0 + $0xe0] sm:$0xff]   ;;  %v11375_v35 = vld [vmem:[%s14381_s0 + $0x118] sm:$0xff]   ;;  %v11368_v37 = vld [vmem:[%s14381_s0 + $0xe8] sm:$0xff]  }
   0xc   :  { %v11377_v36 = vld [vmem:[%s14382_s3 + $0x38] sm:$0xff]   ;;  %v11379_v38 = vld [vmem:[%s14382_s3 + $0x30] sm:$0xff]   ;;  %v11378_v39 = vld [vmem:[%s14381_s0 + $0x120] sm:$0xff]  }
   0xd   :  { %v11382_v40 = vld [vmem:[%s14382_s3 + $0x28] sm:$0xff]   ;;  %v11370_v41 = vld [vmem:[%s14381_s0 + $0xf0] sm:$0xff]   ;;  %v11385_v42 = vld [vmem:[%s14382_s3 + $0x20] sm:$0xff]  }
   0xe   :  { %v11381_v43 = vld [vmem:[%s14381_s0 + $0x128] sm:$0xff]   ;;  %v11388_v44 = vld [vmem:[%s14382_s3 + $0x18] sm:$0xff]   ;;  %v11392_v46 = vld [vmem:[%s14382_s3 + $0x10] sm:$0xff]  }
   0xf   :  { %v11372_v45 = vld [vmem:[%s14381_s0 + $0xf8] sm:$0xff]   ;;  %v11384_v47 = vld [vmem:[%s14381_s0 + $0x130] sm:$0xff]   ;;  %v11396_v48 = vld [vmem:[%s14382_s3 + $0x8] sm:$0xff]  }
  0x10   :  { %9997 = vmatmul.mubr.msk.bf16.gmra.mxu0 %vm108_vm3, %v11343_v8  ;;  %10027 = vmatmul.mubr.msk.bf16.gmra.mxu1 %vm108_vm3, %v11349_v9  ;;  %v11374_v49 = vld [vmem:[%s14381_s0 + $0x100] sm:$0xff]   ;;  %v11387_v51 = vld [vmem:[%s14381_s0 + $0x138] sm:$0xff]   ;;  %v11376_v52 = vld [vmem:[%s14381_s0 + $0x108] sm:$0xff]  }
  0x11   :  { %10000 = vmatprep.mubr.msk.bf16.mxu0 %vm11794_vm2, %v11792_v0  ;;  %10030 = vmatprep.mubr.msk.bf16.mxu1 %vm11794_vm2, %v11792_v0  ;;  %v11399_v50 = vld [vmem:[%s14382_s3] sm:$0xff]   ;;  %v11380_v54 = vld [vmem:[%s14381_s0 + $0x110] sm:$0xff]   ;;  %v11395_v55 = vld [vmem:[%s14381_s0 + $0x148] sm:$0xff]  }
  0x12   :  { %v11390_v53 = vld [vmem:[%s14381_s0 + $0x140] sm:$0xff]   ;;  %v11383_v56 = vld [vmem:[%s14381_s0 + $0x150] sm:$0xff]   ;;  %v11391_v57 = vld [vmem:[%s14382_s3 + $0xb8] sm:$0xff]  }
  0x13   :  { %v11394_v58 = vld [vmem:[%s14382_s3 + $0xb0] sm:$0xff]   ;;  %v11386_v59 = vld [vmem:[%s14381_s0 + $0x158] sm:$0xff]   ;;  %v11398_v60 = vld [vmem:[%s14382_s3 + $0xa8] sm:$0xff]  }
  0x14   :  { %v11400_v61 = vld [vmem:[%s14382_s3 + $0xa0] sm:$0xff]   ;;  %v11404_v63 = vld [vmem:[%s14382_s3 + $0x98] sm:$0xff]   ;;  %v11406_v1 = vld [vmem:[%s14382_s3 + $0x90] sm:$0xff]  }
  0x15   :  { %v11389_v62 = vld [vmem:[%s14381_s0 + $0x160] sm:$0xff]   ;;  %v11393_v2 = vld [vmem:[%s14381_s0 + $0x168] sm:$0xff]  }
  0x16   :  { %v11409_v3 = vld [vmem:[%s14382_s3 + $0x88] sm:$0xff]   ;;  %v12224_v4 = vld [vmem:[%s14383_s2] ss:$0 sm:$0xff] }
  0x18   :  { %10001 = vmatmul.mubr.msk.bf16.gmra.mxu0 %vm108_vm3, %v11344_v10  ;;  %10031 = vmatmul.mubr.msk.bf16.gmra.mxu1 %vm108_vm3, %v11351_v11  ;;  %v11397_v10 = vld [vmem:[%s14381_s0 + $0x170] sm:$0xff]  }
  0x19   :  { %10004 = vmatprep.mubr.msk.bf16.mxu0 %vm11794_vm2, %v11792_v0  ;;  %10034 = vmatprep.mubr.msk.bf16.mxu1 %vm11794_vm2, %v11792_v0 }
  0x20   :  { %10005 = vmatmul.mubr.msk.bf16.gmra.mxu0 %vm108_vm3, %v11345_v12  ;;  %10035 = vmatmul.mubr.msk.bf16.gmra.mxu1 %vm108_vm3, %v11353_v13 }
  0x21   :  { %10008 = vmatprep.mubr.msk.bf16.mxu0 %vm11794_vm2, %v11792_v0  ;;  %10038 = vmatprep.mubr.msk.bf16.mxu1 %vm11794_vm2, %v11792_v0 }
  0x28   :  { %10009 = vmatmul.mubr.msk.bf16.gmra.mxu0 %vm108_vm3, %v11346_v14  ;;  %10039 = vmatmul.mubr.msk.bf16.gmra.mxu1 %vm108_vm3, %v11355_v15 }
  0x29   :  { %10012 = vmatprep.mubr.msk.bf16.mxu0 %vm11794_vm2, %v11792_v0  ;;  %10042 = vmatprep.mubr.msk.bf16.mxu1 %vm11794_vm2, %v11792_v0 }
  0x30   :  { %10013 = vmatmul.mubr.msk.bf16.gmra.mxu0 %vm108_vm3, %v11348_v16  ;;  %10043 = vmatmul.mubr.msk.bf16.gmra.mxu1 %vm108_vm3, %v11357_v17 }
  0x31   :  { %10016 = vmatprep.mubr.msk.bf16.mxu0 %vm11794_vm2, %v11792_v0  ;;  %10046 = vmatprep.mubr.msk.bf16.mxu1 %vm11794_vm2, %v11792_v0 }
  0x38   :  { %10017 = vmatmul.mubr.msk.bf16.gmra.mxu0 %vm108_vm3, %v11350_v18  ;;  %10047 = vmatmul.mubr.msk.bf16.gmra.mxu1 %vm108_vm3, %v11359_v19 }
  0x39   :  { %10052 = vmatprep.mubr.msk.bf16.mxu0 %vm11794_vm2, %v11792_v0  ;;  %10082 = vmatprep.mubr.msk.bf16.mxu1 %vm11794_vm2, %v11792_v0 }
  0x40   :  { %10053 = vmatmul.mubr.msk.bf16.vlgmr.msra.gmra.mxu0 %vm108_vm3, %v11352_v20  ;;  %10083 = vmatmul.mubr.msk.bf16.vlgmr.msra.gmra.mxu1 %vm108_vm3, %v11361_v21 }
  0x41   :  { %10056 = vmatprep.mubr.msk.bf16.mxu0 %vm11794_vm2, %v11792_v0  ;;  %10111 = vmatpush3.bf16.msra.mxu0 %v11874_v5 }
  0x42   :  { %10170 = vmatprep.subr.bf16.mxu0 %v11792_v0  ;;  %10141 = vmatpush3.bf16.msra.mxu1 %v11874_v5 }
  0x43   :  { %10086 = vmatprep.mubr.msk.bf16.mxu1 %vm11794_vm2, %v11792_v0  ;;  %10200 = vmatprep.subr.bf16.mxu1 %v11792_v0 }
  0x48   :  { %10057 = vmatmul.mubr.msk.bf16.gmra.mxu0 %vm108_vm3, %v11354_v22  ;;  %10087 = vmatmul.mubr.msk.bf16.gmra.mxu1 %vm108_vm3, %v11363_v23 }
  0x49   :  { %10060 = vmatprep.mubr.msk.bf16.mxu0 %vm11794_vm2, %v11792_v0  ;;  %10090 = vmatprep.mubr.msk.bf16.mxu1 %vm11794_vm2, %v11792_v0 }
  0x50   :  { %10061 = vmatmul.mubr.msk.bf16.gmra.mxu0 %vm108_vm3, %v11356_v24  ;;  %10091 = vmatmul.mubr.msk.bf16.gmra.mxu1 %vm108_vm3, %v11365_v25 }
  0x51   :  { %10064 = vmatprep.mubr.msk.bf16.mxu0 %vm11794_vm2, %v11792_v0  ;;  %10094 = vmatprep.mubr.msk.bf16.mxu1 %vm11794_vm2, %v11792_v0 }
  0x58   :  { %10065 = vmatmul.mubr.msk.bf16.gmra.mxu0 %vm108_vm3, %v11358_v26  ;;  %10095 = vmatmul.mubr.msk.bf16.gmra.mxu1 %vm108_vm3, %v11367_v27 }
  0x59   :  { %10068 = vmatprep.mubr.msk.bf16.mxu0 %vm11794_vm2, %v11792_v0  ;;  %10098 = vmatprep.mubr.msk.bf16.mxu1 %vm11794_vm2, %v11792_v0 }
  0x60   :  { %10069 = vmatmul.mubr.msk.bf16.gmra.mxu0 %vm108_vm3, %v11360_v28  ;;  %10099 = vmatmul.mubr.msk.bf16.gmra.mxu1 %vm108_vm3, %v11369_v29  ;;  %v11401_v28 = vld [vmem:[%s14381_s0 + $0x178] sm:$0xff]  }
  0x61   :  { %10072 = vmatprep.mubr.msk.bf16.mxu0 %vm11794_vm2, %v11792_v0  ;;  %10102 = vmatprep.mubr.msk.bf16.mxu1 %vm11794_vm2, %v11792_v0 }
  0x68   :  { %10073 = vmatmul.mubr.msk.bf16.gmra.mxu0 %vm108_vm3, %v11362_v30  ;;  %10103 = vmatmul.mubr.msk.bf16.gmra.mxu1 %vm108_vm3, %v11371_v31 }
  0x69   :  { %10076 = vmatprep.mubr.msk.bf16.mxu0 %vm11794_vm2, %v11792_v0  ;;  %10106 = vmatprep.mubr.msk.bf16.mxu1 %vm11794_vm2, %v11792_v0 }
  0x70   :  { %10077 = vmatmul.mubr.msk.bf16.gmra.mxu0 %vm108_vm3, %v11364_v32  ;;  %10107 = vmatmul.mubr.msk.bf16.gmra.mxu1 %vm108_vm3, %v11373_v33 }
  0x71   :  { %10112 = vmatprep.mubr.msk.bf16.mxu0 %vm11794_vm2, %v11792_v0  ;;  %10142 = vmatprep.mubr.msk.bf16.mxu1 %vm11794_vm2, %v11792_v0 }
  0x78   :  { %10113 = vmatmul.mubr.msk.bf16.vlgmr.msra.gmra.mxu0 %vm108_vm3, %v11366_v34  ;;  %10143 = vmatmul.mubr.msk.bf16.vlgmr.msra.gmra.mxu1 %vm108_vm3, %v11375_v35 }
  0x79   :  { %10116 = vmatprep.mubr.msk.bf16.mxu0 %vm11794_vm2, %v11792_v0  ;;  %10171 = vmatpush3.bf16.msra.mxu0 %v11874_v5  ;;  %v11411_v5 = vld [vmem:[%s14382_s3 + $0x80] sm:$0xff]  }
  0x7a   :  { %10240 = vmatprep.subr.bf16.mxu0 %v11792_v0  ;;  %10201 = vmatpush3.bf16.msra.mxu1 %v11377_v36 }
  0x7b   :  { %10146 = vmatprep.mubr.msk.bf16.mxu1 %vm11794_vm2, %v11792_v0  ;;  %10202 = vmatprep.subr.bf16.mxu1 %v11792_v0 }
  0x7e   :  { %10203 = vmatpush3.bf16.msra.mxu1 %v11379_v38 }
  0x7f   :  { %10204 = vmatprep.subr.bf16.mxu1 %v11792_v0 }
  0x80   :  { %10117 = vmatmul.mubr.msk.bf16.gmra.mxu0 %vm108_vm3, %v11368_v37  ;;  %10147 = vmatmul.mubr.msk.bf16.gmra.mxu1 %vm108_vm3, %v11378_v39 }
  0x81   :  { %10120 = vmatprep.mubr.msk.bf16.mxu0 %vm11794_vm2, %v11792_v0  ;;  %10150 = vmatprep.mubr.msk.bf16.mxu1 %vm11794_vm2, %v11792_v0 }
  0x82   :  { %10205 = vmatpush3.bf16.msra.mxu1 %v11382_v40 }
  0x83   :  { %10206 = vmatprep.subr.bf16.mxu1 %v11792_v0 }
  0x86   :  { %10207 = vmatpush3.bf16.msra.mxu1 %v11385_v42 }
  0x87   :  { %10208 = vmatprep.subr.bf16.mxu1 %v11792_v0 }
  0x88   :  { %10121 = vmatmul.mubr.msk.bf16.gmra.mxu0 %vm108_vm3, %v11370_v41  ;;  %10151 = vmatmul.mubr.msk.bf16.gmra.mxu1 %vm108_vm3, %v11381_v43 }
  0x89   :  { %10124 = vmatprep.mubr.msk.bf16.mxu0 %vm11794_vm2, %v11792_v0  ;;  %10154 = vmatprep.mubr.msk.bf16.mxu1 %vm11794_vm2, %v11792_v0 }
  0x8a   :  { %10209 = vmatpush3.bf16.msra.mxu1 %v11388_v44  ;;  %v11403_v44 = vld [vmem:[%s14382_s3 + $0x78] sm:$0xff]  }
  0x8b   :  { %10210 = vmatprep.subr.bf16.mxu1 %v11792_v0 }
  0x8e   :  { %10211 = vmatpush3.bf16.msra.mxu1 %v11392_v46 }
  0x8f   :  { %10212 = vmatprep.subr.bf16.mxu1 %v11792_v0 }
  0x90   :  { %10125 = vmatmul.mubr.msk.bf16.gmra.mxu0 %vm108_vm3, %v11372_v45  ;;  %10155 = vmatmul.mubr.msk.bf16.gmra.mxu1 %vm108_vm3, %v11384_v47 }
  0x91   :  { %10128 = vmatprep.mubr.msk.bf16.mxu0 %vm11794_vm2, %v11792_v0  ;;  %10158 = vmatprep.mubr.msk.bf16.mxu1 %vm11794_vm2, %v11792_v0 }
  0x92   :  { %10213 = vmatpush3.bf16.msra.mxu1 %v11396_v48 }
  0x93   :  { %10214 = vmatprep.subr.bf16.mxu1 %v11792_v0 }
  0x96   :  { %10215 = vmatpush3.bf16.msra.mxu1 %v11399_v50 }
  0x97   :  { %10220 = vmatprep.subr.bf16.mxu1 %v11792_v0 }
  0x98   :  { %10129 = vmatmul.mubr.msk.bf16.gmra.mxu0 %vm108_vm3, %v11374_v49  ;;  %10159 = vmatmul.mubr.msk.bf16.gmra.mxu1 %vm108_vm3, %v11387_v51 }
  0x99   :  { %10132 = vmatprep.mubr.msk.bf16.mxu0 %vm11794_vm2, %v11792_v0  ;;  %10162 = vmatprep.mubr.msk.bf16.mxu1 %vm11794_vm2, %v11792_v0 }
  0xa0   :  { %10133 = vmatmul.mubr.msk.bf16.gmra.mxu0 %vm108_vm3, %v11376_v52  ;;  %10163 = vmatmul.mubr.msk.bf16.gmra.mxu1 %vm108_vm3, %v11390_v53  ;;  %v11407_v52 = vld [vmem:[%s14381_s0 + $0x180] sm:$0xff]  }
  0xa1   :  { %10136 = vmatprep.mubr.msk.bf16.mxu0 %vm11794_vm2, %v11792_v0  ;;  %10166 = vmatprep.mubr.msk.bf16.mxu1 %vm11794_vm2, %v11792_v0 }
  0xa8   :  { %10137 = vmatmul.mubr.msk.bf16.gmra.mxu0 %vm108_vm3, %v11380_v54  ;;  %10167 = vmatmul.mubr.msk.bf16.gmra.mxu1 %vm108_vm3, %v11395_v55 }
  0xa9   :  { %10172 = vmatprep.mubr.msk.bf16.mxu0 %vm11794_vm2, %v11792_v0  ;;  %10216 = vmatprep.mubr.msk.bf16.mxu1 %vm11794_vm2, %v11792_v0 }
  0xb0   :  { %10173 = vmatmul.mubr.msk.bf16.vlgmr.msra.gmra.mxu0 %vm108_vm3, %v11383_v56  ;;  %v11405_v56 = vld [vmem:[%s14382_s3 + $0x70] sm:$0xff]  }
  0xb1   :  { %10176 = vmatprep.mubr.msk.bf16.mxu0 %vm11794_vm2, %v11792_v0  ;;  %10241 = vmatpush3.bf16.msra.mxu0 %v11391_v57 }
  0xb2   :  { %10242 = vmatprep.subr.bf16.mxu0 %v11792_v0 }
  0xb5   :  { %10243 = vmatpush3.bf16.msra.mxu0 %v11394_v58 }
  0xb6   :  { %10244 = vmatprep.subr.bf16.mxu0 %v11792_v0 }
  0xb8   :  { %10177 = vmatmul.mubr.msk.bf16.gmra.mxu0 %vm108_vm3, %v11386_v59 }
  0xb9   :  { %10180 = vmatprep.mubr.msk.bf16.mxu0 %vm11794_vm2, %v11792_v0  ;;  %10245 = vmatpush3.bf16.msra.mxu0 %v11398_v60 }
  0xba   :  { %10246 = vmatprep.subr.bf16.mxu0 %v11792_v0 }
  0xbd   :  { %10247 = vmatpush3.bf16.msra.mxu0 %v11400_v61 }
  0xbe   :  { %10248 = vmatprep.subr.bf16.mxu0 %v11792_v0 }
  0xc0   :  { %10181 = vmatmul.mubr.msk.bf16.gmra.mxu0 %vm108_vm3, %v11389_v62 }
  0xc1   :  { %10184 = vmatprep.mubr.msk.bf16.mxu0 %vm11794_vm2, %v11792_v0  ;;  %10249 = vmatpush3.bf16.msra.mxu0 %v11404_v63 }
  0xc2   :  { %10250 = vmatprep.subr.bf16.mxu0 %v11792_v0 }
  0xc5   :  { %10251 = vmatpush3.bf16.msra.mxu0 %v11406_v1 }
  0xc6   :  { %10252 = vmatprep.subr.bf16.mxu0 %v11792_v0 }
  0xc8   :  { %v171_v6 = vpop.f32.mrf.mxu0  ;;  %10185 = vmatmul.mubr.msk.bf16.gmra.mxu0 %vm108_vm3, %v11393_v2  ;;  %v415_v9 = vpop.f32.mrf.mxu1  ;;  %v11408_v2 = vld [vmem:[%s14382_s3 + $0x68] sm:$0xff]  }
  0xc9   :  { %10188 = vmatprep.mubr.msk.bf16.mxu0 %vm11794_vm2, %v11792_v0  ;;  %10253 = vmatpush3.bf16.msra.mxu0 %v11409_v3  ;;  %v172_v7 = vadd.f32 %v12224_v4, %v171_v6  ;;  %v416_v11 = vadd.f32 %v12224_v4, %v415_v9 }
  0xca   :  { %v9994_v8 = vpop.f32.mrf.mxu0  ;;  %10254 = vmatprep.subr.bf16.mxu0 %v11792_v0  ;;  %v10024_v13 = vpop.f32.mrf.mxu1 }
  0xcb   :  { %v226_v15 = vmax.f32 %v172_v7, 0.0  ;;  %v470_v19 = vmax.f32 %v416_v11, 0.0 }
  0xcc   :  { %v174_v12 = vpop.f32.mrf.mxu0  ;;  %v418_v17 = vpop.f32.mrf.mxu1 }
  0xcd   :  { %v175_v14 = vadd.f32 %v12224_v4, %v174_v12  ;;  %10255 = vmatpush3.bf16.msra.mxu0 %v11411_v5  ;;  %v419_v20 = vadd.f32 %v12224_v4, %v418_v17  ;;  %v11410_v12 = vld [vmem:[%s14382_s3 + $0x60] sm:$0xff]   ;;  %v11412_v17 = vld [vmem:[%s14382_s3 + $0x58] sm:$0xff]  }
  0xce   :  { %v9995_v16 = vpop.f32.mrf.mxu0  ;;  %10280 = vmatprep.subr.bf16.mxu0 %v11792_v0  ;;  %v10025_v22 = vpop.f32.mrf.mxu1 }
  0xcf   :  { %v227_v18 = vmax.f32 %v175_v14, 0.0  ;;  %v471_v25 = vmax.f32 %v419_v20, 0.0 }
  0xd0   :  { %v179_v21 = vpop.f32.mrf.mxu0  ;;  %10189 = vmatmul.mubr.msk.bf16.gmra.mxu0 %vm108_vm3, %v11397_v10  ;;  %v423_v27 = vpop.f32.mrf.mxu1 }
  0xd1   :  { %v9117_v23 = vpack.c.bf16 %v227_v18, %v226_v15  ;;  %v180_v24 = vadd.f32 %v12224_v4, %v179_v21  ;;  %10192 = vmatprep.mubr.msk.bf16.mxu0 %vm11794_vm2, %v11792_v0  ;;  %v9152_v29 = vpack.c.bf16 %v471_v25, %v470_v19  ;;  %v424_v30 = vadd.f32 %v12224_v4, %v423_v27 }
  0xd2   :  { %v9998_v26 = vpop.f32.mrf.mxu0  ;;  %v10028_v32 = vpop.f32.mrf.mxu1 }
  0xd3   :  { %9118 = vst [vmem:[#allocation2] sm:$0xff] %v9117_v23   ;;  %v228_v33 = vmax.f32 %v180_v24, 0.0  ;;  %9153 = vst [vmem:[#allocation2 + $0x38] sm:$0xff] %v9152_v29   ;;  %v472_v38 = vmax.f32 %v424_v30, 0.0  ;;  %v11414_v23 = vld [vmem:[%s14382_s3 + $0x138] sm:$0xff]   ;;  %v11415_v32 = vld [vmem:[%s14382_s3 + $0x50] sm:$0xff]  }
  0xd4   :  { %v182_v31 = vpop.f32.mrf.mxu0  ;;  %v426_v36 = vpop.f32.mrf.mxu1 }
  0xd5   :  { %v183_v34 = vadd.f32 %v12224_v4, %v182_v31  ;;  %v427_v39 = vadd.f32 %v12224_v4, %v426_v36 }
  0xd6   :  { %v9999_v35 = vpop.f32.mrf.mxu0  ;;  %v10029_v41 = vpop.f32.mrf.mxu1 }
  0xd7   :  { %v229_v37 = vmax.f32 %v183_v34, 0.0  ;;  %v473_v45 = vmax.f32 %v427_v39, 0.0  ;;  %v11416_v35 = vld [vmem:[%s14382_s3 + $0x130] sm:$0xff]  }
  0xd8   :  { %v187_v40 = vpop.f32.mrf.mxu0  ;;  %10193 = vmatmul.mubr.msk.bf16.gmra.mxu0 %vm108_vm3, %v11401_v28  ;;  %v431_v48 = vpop.f32.mrf.mxu1 }
  0xd9   :  { %v9122_v42 = vpack.c.bf16 %v229_v37, %v228_v33  ;;  %v188_v43 = vadd.f32 %v12224_v4, %v187_v40  ;;  %10196 = vmatprep.mubr.msk.bf16.mxu0 %vm11794_vm2, %v11792_v0  ;;  %v9157_v49 = vpack.c.bf16 %v473_v45, %v472_v38  ;;  %v432_v50 = vadd.f32 %v12224_v4, %v431_v48  ;;  %v11417_v40 = vld [vmem:[%s14382_s3 + $0x48] sm:$0xff]  }
  0xda   :  { %v10002_v46 = vpop.f32.mrf.mxu0  ;;  %v11402_v47 = vld [vmem:[#allocation2] sm:$0xff]   ;;  %v10032_v53 = vpop.f32.mrf.mxu1 }
  0xdb   :  { %9379 = vst [vmem:[#allocation2 + $0x8] sm:$0xff] %v9122_v42   ;;  %10217 = vmatmul.mubr.bf16.vlgmr.msra.gmra.mxu1 %v11402_v47  ;;  %v230_v54 = vmax.f32 %v188_v43, 0.0  ;;  %9385 = vst [vmem:[#allocation2 + $0x40] sm:$0xff] %v9157_v49   ;;  %v474_v60 = vmax.f32 %v432_v50, 0.0  ;;  %v11418_v46 = vld [vmem:[%s14382_s3 + $0x128] sm:$0xff]  }
  0xdc   :  { %v190_v51 = vpop.f32.mrf.mxu0  ;;  %10221 = vmatpush3.bf16.msra.mxu1 %v11403_v44  ;;  %10236 = vmatprep.mubr.msk.bf16.mxu1 %vm11794_vm2, %v11792_v0  ;;  %v434_v58 = vpop.f32.mrf.mxu1 }
  0xdd   :  { %v191_v55 = vadd.f32 %v12224_v4, %v190_v51  ;;  %10222 = vmatprep.subr.bf16.mxu1 %v11792_v0  ;;  %v435_v61 = vadd.f32 %v12224_v4, %v434_v58 }
  0xde   :  { %v10003_v57 = vpop.f32.mrf.mxu0  ;;  %v10033_v63 = vpop.f32.mrf.mxu1 }
  0xdf   :  { %v231_v59 = vmax.f32 %v191_v55, 0.0  ;;  %v475_v5 = vmax.f32 %v435_v61, 0.0  ;;  %v11420_v57 = vld [vmem:[%s14382_s3 + $0x120] sm:$0xff]  }
  0xe0   :  { %10197 = vmatmul.mubr.msk.bf16.gmra.mxu0 %vm108_vm3, %v11407_v52  ;;  %v195_v62 = vpop.f32.mrf.mxu0  ;;  %10223 = vmatpush3.bf16.msra.mxu1 %v11405_v56  ;;  %v439_v7 = vpop.f32.mrf.mxu1 }
  0xe1   :  { %v9127_v1 = vpack.c.bf16 %v231_v59, %v230_v54  ;;  %10256 = vmatprep.mubr.msk.bf16.mxu0 %vm11794_vm2, %v11792_v0  ;;  %v196_v3 = vadd.f32 %v12224_v4, %v195_v62  ;;  %10224 = vmatprep.subr.bf16.mxu1 %v11792_v0  ;;  %v9162_v8 = vpack.c.bf16 %v475_v5, %v474_v60  ;;  %v11419_v54 = vld [vmem:[%s14382_s3 + $0x40] sm:$0xff]   ;;  %v11422_v62 = vld [vmem:[%s14382_s3 + $0xf8] sm:$0xff]  }
  0xe2   :  { %v10006_v6 = vpop.f32.mrf.mxu0  ;;  %v440_v9 = vadd.f32 %v12224_v4, %v439_v7  ;;  %v10036_v11 = vpop.f32.mrf.mxu1 }
  0xe3   :  { %9380 = vst [vmem:[#allocation2 + $0x10] sm:$0xff] %v9127_v1   ;;  %v232_v13 = vmax.f32 %v196_v3, 0.0  ;;  %9386 = vst [vmem:[#allocation2 + $0x48] sm:$0xff] %v9162_v8   ;;  %v11423_v6 = vld [vmem:[%s14382_s3 + $0x118] sm:$0xff]  }
  0xe4   :  { %v198_v10 = vpop.f32.mrf.mxu0  ;;  %10225 = vmatpush3.bf16.msra.mxu1 %v11408_v2  ;;  %v442_v16 = vpop.f32.mrf.mxu1  ;;  %v476_v19 = vmax.f32 %v440_v9, 0.0 }
  0xe5   :  { %v199_v14 = vadd.f32 %v12224_v4, %v198_v10  ;;  %10226 = vmatprep.subr.bf16.mxu1 %v11792_v0  ;;  %v443_v20 = vadd.f32 %v12224_v4, %v442_v16  ;;  %v11421_v10 = vld [vmem:[#allocation2 + $0x8] sm:$0xff]  }
  0xe6   :  { %v10007_v15 = vpop.f32.mrf.mxu0  ;;  %v10037_v22 = vpop.f32.mrf.mxu1 }
  0xe7   :  { %v233_v18 = vmax.f32 %v199_v14, 0.0  ;;  %v477_v26 = vmax.f32 %v443_v20, 0.0  ;;  %v11424_v15 = vld [vmem:[%s14382_s3 + $0xf0] sm:$0xff]  }
  0xe8   :  { %v203_v21 = vpop.f32.mrf.mxu0  ;;  %10227 = vmatpush3.bf16.msra.mxu1 %v11410_v12  ;;  %v447_v29 = vpop.f32.mrf.mxu1 }
  0xe9   :  { %v9132_v24 = vpack.c.bf16 %v233_v18, %v232_v13  ;;  %v204_v25 = vadd.f32 %v12224_v4, %v203_v21  ;;  %10228 = vmatprep.subr.bf16.mxu1 %v11792_v0  ;;  %v9167_v30 = vpack.c.bf16 %v477_v26, %v476_v19  ;;  %v448_v31 = vadd.f32 %v12224_v4, %v447_v29  ;;  %v11425_v18 = vld [vmem:[%s14382_s3 + $0x110] sm:$0xff]   ;;  %v11427_v29 = vld [vmem:[%s14382_s3 + $0x108] sm:$0xff]  }
  0xea   :  { %v11413_v27 = vld [vmem:[#allocation2 + $0x10] sm:$0xff]   ;;  %v10010_v28 = vpop.f32.mrf.mxu0  ;;  %v10040_v34 = vpop.f32.mrf.mxu1 }
  0xeb   :  { %9381 = vst [vmem:[#allocation2 + $0x18] sm:$0xff] %v9132_v24   ;;  %10257 = vmatmul.mubr.bf16.vlgmr.msra.gmra.mxu0 %v11413_v27  ;;  %v234_v36 = vmax.f32 %v204_v25, 0.0  ;;  %9387 = vst [vmem:[#allocation2 + $0x50] sm:$0xff] %v9167_v30   ;;  %v478_v42 = vmax.f32 %v448_v31, 0.0 }
  0xec   :  { %v206_v33 = vpop.f32.mrf.mxu0  ;;  %10229 = vmatpush3.bf16.msra.mxu1 %v11412_v17  ;;  %10281 = vmatpush3.bf16.msra.mxu0 %v11414_v23  ;;  %v450_v39 = vpop.f32.mrf.mxu1  ;;  %v11426_v23 = vld [vmem:[%s14382_s3 + $0xe8] sm:$0xff]  }
  0xed   :  { %v207_v37 = vadd.f32 %v12224_v4, %v206_v33  ;;  %10230 = vmatprep.subr.bf16.mxu1 %v11792_v0  ;;  %10282 = vmatprep.subr.bf16.mxu0 %v11792_v0  ;;  %v451_v43 = vadd.f32 %v12224_v4, %v450_v39 }
  0xee   :  { %v10011_v38 = vpop.f32.mrf.mxu0  ;;  %10296 = vmatprep.mubr.msk.bf16.mxu0 %vm11794_vm2, %v11792_v0  ;;  %v10041_v45 = vpop.f32.mrf.mxu1 }
  0xef   :  { %v235_v41 = vmax.f32 %v207_v37, 0.0  ;;  %v479_v49 = vmax.f32 %v451_v43, 0.0  ;;  %v11428_v37 = vld [vmem:[%s14382_s3 + $0xe0] sm:$0xff]  }
  0xf0   :  { %v211_v44 = vpop.f32.mrf.mxu0  ;;  %10231 = vmatpush3.bf16.msra.mxu1 %v11415_v32  ;;  %10283 = vmatpush3.bf16.msra.mxu0 %v11416_v35  ;;  %v455_v51 = vpop.f32.mrf.mxu1  ;;  %v11430_v43 = vld [vmem:[#allocation2 + $0x40] sm:$0xff]  }
  0xf1   :  { %v9137_v47 = vpack.c.bf16 %v235_v41, %v234_v36  ;;  %v212_v48 = vadd.f32 %v12224_v4, %v211_v44  ;;  %10232 = vmatprep.subr.bf16.mxu1 %v11792_v0  ;;  %10284 = vmatprep.subr.bf16.mxu0 %v11792_v0  ;;  %v9172_v52 = vpack.c.bf16 %v479_v49, %v478_v42 }
  0xf2   :  { %v10014_v50 = vpop.f32.mrf.mxu0  ;;  %v456_v53 = vadd.f32 %v12224_v4, %v455_v51  ;;  %v10044_v56 = vpop.f32.mrf.mxu1 }
  0xf3   :  { %9382 = vst [vmem:[#allocation2 + $0x20] sm:$0xff] %v9137_v47   ;;  %v236_v58 = vmax.f32 %v212_v48, 0.0  ;;  %9388 = vst [vmem:[#allocation2 + $0x58] sm:$0xff] %v9172_v52   ;;  %v11432_v52 = vld [vmem:[%s14382_s3 + $0x1b8] sm:$0xff]  }
  0xf4   :  { %v214_v55 = vpop.f32.mrf.mxu0  ;;  %10233 = vmatpush3.bf16.msra.mxu1 %v11417_v40  ;;  %10285 = vmatpush3.bf16.msra.mxu0 %v11418_v46  ;;  %v458_v61 = vpop.f32.mrf.mxu1  ;;  %v480_v1 = vmax.f32 %v456_v53, 0.0  ;;  %v11429_v40 = vld [vmem:[%s14382_s3 + $0x100] sm:$0xff]   ;;  %v11431_v46 = vld [vmem:[%s14382_s3 + $0xd8] sm:$0xff]  }
  0xf5   :  { %v215_v59 = vadd.f32 %v12224_v4, %v214_v55  ;;  %10234 = vmatprep.subr.bf16.mxu1 %v11792_v0  ;;  %10286 = vmatprep.subr.bf16.mxu0 %v11792_v0  ;;  %v459_v2 = vadd.f32 %v12224_v4, %v458_v61 }
  0xf6   :  { %v10015_v60 = vpop.f32.mrf.mxu0  ;;  %v10045_v5 = vpop.f32.mrf.mxu1 }
  0xf7   :  { %v237_v63 = vmax.f32 %v215_v59, 0.0  ;;  %v481_v9 = vmax.f32 %v459_v2, 0.0  ;;  %v11433_v60 = vld [vmem:[%s14382_s3 + $0xd0] sm:$0xff]  }
  0xf8   :  { %v219_v3 = vpop.f32.mrf.mxu0  ;;  %10235 = vmatpush3.bf16.msra.mxu1 %v11419_v54  ;;  %10287 = vmatpush3.bf16.msra.mxu0 %v11420_v57  ;;  %v463_v12 = vpop.f32.mrf.mxu1 }
  0xf9   :  { %v9142_v7 = vpack.c.bf16 %v237_v63, %v236_v58  ;;  %v220_v8 = vadd.f32 %v12224_v4, %v219_v3  ;;  %10260 = vmatprep.subr.bf16.mxu1 %v11792_v0  ;;  %10288 = vmatprep.subr.bf16.mxu0 %v11792_v0  ;;  %v9177_v13 = vpack.c.bf16 %v481_v9, %v480_v1  ;;  %v11434_v63 = vld [vmem:[%s14382_s3 + $0x1b0] sm:$0xff]  }
  0xfa   :  { %v10018_v11 = vpop.f32.mrf.mxu0  ;;  %v464_v14 = vadd.f32 %v12224_v4, %v463_v12  ;;  %v10048_v17 = vpop.f32.mrf.mxu1  ;;  %v11436_v12 = vld [vmem:[%s14382_s3 + $0x1a8] sm:$0xff]  }
  0xfb   :  { %9383 = vst [vmem:[#allocation2 + $0x28] sm:$0xff] %v9142_v7   ;;  %10237 = vmatmul.mubr.bf16.vlgmr.msra.gmra.mxu1 %v11421_v10  ;;  %v238_v19 = vmax.f32 %v220_v8, 0.0  ;;  %9389 = vst [vmem:[#allocation2 + $0x60] sm:$0xff] %v9177_v13  }
  0xfc   :  { %v222_v16 = vpop.f32.mrf.mxu0  ;;  %10261 = vmatpush3.bf16.msra.mxu1 %v11422_v62  ;;  %10289 = vmatpush3.bf16.msra.mxu0 %v11423_v6  ;;  %v466_v22 = vpop.f32.mrf.mxu1  ;;  %v482_v25 = vmax.f32 %v464_v14, 0.0  ;;  %v11435_v6 = vld [vmem:[%s14382_s3 + $0xc8] sm:$0xff]  }
  0xfd   :  { %v223_v20 = vadd.f32 %v12224_v4, %v222_v16  ;;  %10262 = vmatprep.subr.bf16.mxu1 %v11792_v0  ;;  %10290 = vmatprep.subr.bf16.mxu0 %v11792_v0  ;;  %v467_v26 = vadd.f32 %v12224_v4, %v466_v22 }
  0xfe   :  { %v10019_v21 = vpop.f32.mrf.mxu0  ;;  %10276 = vmatprep.mubr.msk.bf16.mxu1 %vm11794_vm2, %v11792_v0  ;;  %v10049_v28 = vpop.f32.mrf.mxu1 }
  0xff   :  { %v239_v24 = vmax.f32 %v223_v20, 0.0  ;;  %v483_v32 = vmax.f32 %v467_v26, 0.0  ;;  %v11437_v20 = vld [vmem:[%s14382_s3 + $0xc0] sm:$0xff]   ;;  %v11440_v28 = vld [vmem:[%s14382_s3 + $0x178] sm:$0xff]  }
 0x100   :  { %v660_v27 = vpop.f32.mrf.mxu0  ;;  %10263 = vmatpush3.bf16.msra.mxu1 %v11424_v15  ;;  %10291 = vmatpush3.bf16.msra.mxu0 %v11425_v18  ;;  %v905_v34 = vpop.f32.mrf.mxu1 }
 0x101   :  { %v9147_v30 = vpack.c.bf16 %v239_v24, %v238_v19  ;;  %v661_v31 = vadd.f32 %v12224_v4, %v660_v27  ;;  %10264 = vmatprep.subr.bf16.mxu1 %v11792_v0  ;;  %10292 = vmatprep.subr.bf16.mxu0 %v11792_v0  ;;  %v9182_v35 = vpack.c.bf16 %v483_v32, %v482_v25 }
 0x102   :  { %v10054_v33 = vpop.f32.mrf.mxu0  ;;  %v906_v36 = vadd.f32 %v12224_v4, %v905_v34  ;;  %v10084_v39 = vpop.f32.mrf.mxu1  ;;  %v11441_v34 = vld [vmem:[%s14382_s3 + $0x198] sm:$0xff]  }
 0x103   :  { %9384 = vst [vmem:[#allocation2 + $0x30] sm:$0xff] %v9147_v30   ;;  %v715_v41 = vmax.f32 %v661_v31, 0.0  ;;  %9390 = vst [vmem:[#allocation2 + $0x68] sm:$0xff] %v9182_v35  }
 0x104   :  { %v663_v38 = vpop.f32.mrf.mxu0  ;;  %10265 = vmatpush3.bf16.msra.mxu1 %v11426_v23  ;;  %10293 = vmatpush3.bf16.msra.mxu0 %v11427_v29  ;;  %v908_v45 = vpop.f32.mrf.mxu1  ;;  %v960_v48 = vmax.f32 %v906_v36, 0.0  ;;  %v11438_v23 = vld [vmem:[%s14382_s3 + $0x1a0] sm:$0xff]  }
 0x105   :  { %v664_v42 = vadd.f32 %v12224_v4, %v663_v38  ;;  %10266 = vmatprep.subr.bf16.mxu1 %v11792_v0  ;;  %10294 = vmatprep.subr.bf16.mxu0 %v11792_v0  ;;  %v909_v49 = vadd.f32 %v12224_v4, %v908_v45  ;;  %v11439_v38 = vld [vmem:[#allocation2 + $0x38] sm:$0xff]   ;;  %v11442_v45 = vld [vmem:[%s14382_s3 + $0x170] sm:$0xff]  }
 0x106   :  { %v10055_v44 = vpop.f32.mrf.mxu0  ;;  %v10085_v51 = vpop.f32.mrf.mxu1 }
 0x107   :  { %v716_v47 = vmax.f32 %v664_v42, 0.0  ;;  %v961_v55 = vmax.f32 %v909_v49, 0.0  ;;  %v11444_v51 = vld [vmem:[%s14382_s3 + $0x168] sm:$0xff]  }
 0x108   :  { %v668_v50 = vpop.f32.mrf.mxu0  ;;  %10267 = vmatpush3.bf16.msra.mxu1 %v11428_v37  ;;  %10295 = vmatpush3.bf16.msra.mxu0 %v11429_v40  ;;  %v913_v57 = vpop.f32.mrf.mxu1 }
 0x109   :  { %v9187_v53 = vpack.c.bf16 %v716_v47, %v715_v41  ;;  %v669_v54 = vadd.f32 %v12224_v4, %v668_v50  ;;  %10268 = vmatprep.subr.bf16.mxu1 %v11792_v0  ;;  %10320 = vmatprep.subr.bf16.mxu0 %v11792_v0  ;;  %v9222_v58 = vpack.c.bf16 %v961_v55, %v960_v48 }
 0x10a   :  { %v10058_v56 = vpop.f32.mrf.mxu0  ;;  %v914_v59 = vadd.f32 %v12224_v4, %v913_v57  ;;  %v10088_v62 = vpop.f32.mrf.mxu1  ;;  %v11445_v57 = vld [vmem:[%s14382_s3 + $0x188] sm:$0xff]  }
 0x10b   :  { %9188 = vst [vmem:[#allocation2 + $0x70] sm:$0xff] %v9187_v53   ;;  %10297 = vmatmul.mubr.bf16.vlgmr.msra.gmra.mxu0 %v11430_v43  ;;  %v717_v1 = vmax.f32 %v669_v54, 0.0  ;;  %9223 = vst [vmem:[#allocation2 + $0xa8] sm:$0xff] %v9222_v58  }
 0x10c   :  { %v671_v61 = vpop.f32.mrf.mxu0  ;;  %10269 = vmatpush3.bf16.msra.mxu1 %v11431_v46  ;;  %10321 = vmatpush3.bf16.msra.mxu0 %v11432_v52  ;;  %v916_v5 = vpop.f32.mrf.mxu1  ;;  %v962_v8 = vmax.f32 %v914_v59, 0.0  ;;  %v11443_v46 = vld [vmem:[%s14382_s3 + $0x190] sm:$0xff]  }
 0x10d   :  { %v672_v2 = vadd.f32 %v12224_v4, %v671_v61  ;;  %10270 = vmatprep.subr.bf16.mxu1 %v11792_v0  ;;  %10322 = vmatprep.subr.bf16.mxu0 %v11792_v0  ;;  %v917_v9 = vadd.f32 %v12224_v4, %v916_v5 }
 0x10e   :  { %v10059_v3 = vpop.f32.mrf.mxu0  ;;  %10336 = vmatprep.mubr.msk.bf16.mxu0 %vm11794_vm2, %v11792_v0  ;;  %v10089_v11 = vpop.f32.mrf.mxu1 }
 0x10f   :  { %v718_v7 = vmax.f32 %v672_v2, 0.0  ;;  %v963_v15 = vmax.f32 %v917_v9, 0.0  ;;  %v11446_v2 = vld [vmem:[%s14382_s3 + $0x160] sm:$0xff]   ;;  %v11449_v11 = vld [vmem:[%s14382_s3 + $0x158] sm:$0xff]  }
 0x110   :  { %v676_v10 = vpop.f32.mrf.mxu0  ;;  %10271 = vmatpush3.bf16.msra.mxu1 %v11433_v60  ;;  %10323 = vmatpush3.bf16.msra.mxu0 %v11434_v63  ;;  %v921_v17 = vpop.f32.mrf.mxu1 }
 0x111   :  { %v9192_v13 = vpack.c.bf16 %v718_v7, %v717_v1  ;;  %v677_v14 = vadd.f32 %v12224_v4, %v676_v10  ;;  %10272 = vmatprep.subr.bf16.mxu1 %v11792_v0  ;;  %10324 = vmatprep.subr.bf16.mxu0 %v11792_v0  ;;  %v9227_v18 = vpack.c.bf16 %v963_v15, %v962_v8 }
 0x112   :  { %v10062_v16 = vpop.f32.mrf.mxu0  ;;  %v922_v19 = vadd.f32 %v12224_v4, %v921_v17  ;;  %v10092_v22 = vpop.f32.mrf.mxu1  ;;  %v11450_v17 = vld [vmem:[%s14382_s3 + $0x238] sm:$0xff]  }
 0x113   :  { %9391 = vst [vmem:[#allocation2 + $0x78] sm:$0xff] %v9192_v13   ;;  %v719_v24 = vmax.f32 %v677_v14, 0.0  ;;  %9397 = vst [vmem:[#allocation2 + $0xb0] sm:$0xff] %v9227_v18  }
 0x114   :  { %v679_v21 = vpop.f32.mrf.mxu0  ;;  %10273 = vmatpush3.bf16.msra.mxu1 %v11435_v6  ;;  %10325 = vmatpush3.bf16.msra.mxu0 %v11436_v12  ;;  %v924_v27 = vpop.f32.mrf.mxu1  ;;  %v964_v30 = vmax.f32 %v922_v19, 0.0  ;;  %v11447_v6 = vld [vmem:[%s14382_s3 + $0x180] sm:$0xff]  }
 0x115   :  { %v680_v25 = vadd.f32 %v12224_v4, %v679_v21  ;;  %10274 = vmatprep.subr.bf16.mxu1 %v11792_v0  ;;  %10326 = vmatprep.subr.bf16.mxu0 %v11792_v0  ;;  %v925_v31 = vadd.f32 %v12224_v4, %v924_v27  ;;  %v11448_v21 = vld [vmem:[#allocation2 + $0x70] sm:$0xff]  }
 0x116   :  { %v10063_v26 = vpop.f32.mrf.mxu0  ;;  %v10093_v33 = vpop.f32.mrf.mxu1 }
 0x117   :  { %v720_v29 = vmax.f32 %v680_v25, 0.0  ;;  %v965_v37 = vmax.f32 %v925_v31, 0.0  ;;  %v11451_v26 = vld [vmem:[%s14382_s3 + $0x150] sm:$0xff]  }
 0x118   :  { %v684_v32 = vpop.f32.mrf.mxu0  ;;  %10275 = vmatpush3.bf16.msra.mxu1 %v11437_v20  ;;  %10327 = vmatpush3.bf16.msra.mxu0 %v11438_v23  ;;  %v929_v40 = vpop.f32.mrf.mxu1 }
 0x119   :  { %v9197_v35 = vpack.c.bf16 %v720_v29, %v719_v24  ;;  %v685_v36 = vadd.f32 %v12224_v4, %v684_v32  ;;  %10300 = vmatprep.subr.bf16.mxu1 %v11792_v0  ;;  %10328 = vmatprep.subr.bf16.mxu0 %v11792_v0  ;;  %v9232_v41 = vpack.c.bf16 %v965_v37, %v964_v30  ;;  %v11452_v29 = vld [vmem:[%s14382_s3 + $0x230] sm:$0xff]  }
 0x11a   :  { %v10066_v39 = vpop.f32.mrf.mxu0  ;;  %v930_v42 = vadd.f32 %v12224_v4, %v929_v40  ;;  %v10096_v44 = vpop.f32.mrf.mxu1  ;;  %v11454_v40 = vld [vmem:[%s14382_s3 + $0x228] sm:$0xff]  }
 0x11b   :  { %9392 = vst [vmem:[#allocation2 + $0x80] sm:$0xff] %v9197_v35   ;;  %10277 = vmatmul.mubr.bf16.vlgmr.msra.gmra.mxu1 %v11439_v38  ;;  %v721_v47 = vmax.f32 %v685_v36, 0.0  ;;  %9398 = vst [vmem:[#allocation2 + $0xb8] sm:$0xff] %v9232_v41  }
 0x11c   :  { %v687_v43 = vpop.f32.mrf.mxu0  ;;  %10301 = vmatpush3.bf16.msra.mxu1 %v11440_v28  ;;  %10329 = vmatpush3.bf16.msra.mxu0 %v11441_v34  ;;  %v932_v50 = vpop.f32.mrf.mxu1  ;;  %v966_v53 = vmax.f32 %v930_v42, 0.0  ;;  %v11453_v34 = vld [vmem:[%s14382_s3 + $0x148] sm:$0xff]  }
 0x11d   :  { %v688_v48 = vadd.f32 %v12224_v4, %v687_v43  ;;  %10302 = vmatprep.subr.bf16.mxu1 %v11792_v0  ;;  %10330 = vmatprep.subr.bf16.mxu0 %v11792_v0  ;;  %v12438_v4 = vld [vmem:[%s14383_s2] ss:$0 sm:$0xff] }
 0x11e   :  { %v10067_v49 = vpop.f32.mrf.mxu0  ;;  %10316 = vmatprep.mubr.msk.bf16.mxu1 %vm11794_vm2, %v11792_v0  ;;  %v933_v54 = vadd.f32 %v12438_v4, %v932_v50  ;;  %v10097_v56 = vpop.f32.mrf.mxu1 }
 0x11f   :  { %v722_v52 = vmax.f32 %v688_v48, 0.0  ;;  %v11455_v48 = vld [vmem:[%s14382_s3 + $0x140] sm:$0xff]   ;;  %v11458_v56 = vld [vmem:[%s14382_s3 + $0x1f8] sm:$0xff]  }
 0x120   :  { %v692_v55 = vpop.f32.mrf.mxu0  ;;  %10303 = vmatpush3.bf16.msra.mxu1 %v11442_v45  ;;  %10331 = vmatpush3.bf16.msra.mxu0 %v11443_v46  ;;  %v967_v60 = vmax.f32 %v933_v54, 0.0  ;;  %v937_v62 = vpop.f32.mrf.mxu1 }
 0x121   :  { %v9202_v58 = vpack.c.bf16 %v722_v52, %v721_v47  ;;  %v693_v59 = vadd.f32 %v12438_v4, %v692_v55  ;;  %10304 = vmatprep.subr.bf16.mxu1 %v11792_v0  ;;  %10332 = vmatprep.subr.bf16.mxu0 %v11792_v0  ;;  %v938_v1 = vadd.f32 %v12438_v4, %v937_v62  ;;  %v11459_v62 = vld [vmem:[%s14382_s3 + $0x218] sm:$0xff]  }
 0x122   :  { %v10070_v61 = vpop.f32.mrf.mxu0  ;;  %v9237_v63 = vpack.c.bf16 %v967_v60, %v966_v53  ;;  %v10100_v5 = vpop.f32.mrf.mxu1 }
 0x123   :  { %9393 = vst [vmem:[#allocation2 + $0x88] sm:$0xff] %v9202_v58   ;;  %v723_v7 = vmax.f32 %v693_v59, 0.0  ;;  %v968_v13 = vmax.f32 %v938_v1, 0.0 }
 0x124   :  { %v695_v3 = vpop.f32.mrf.mxu0  ;;  %10305 = vmatpush3.bf16.msra.mxu1 %v11444_v51  ;;  %10333 = vmatpush3.bf16.msra.mxu0 %v11445_v57  ;;  %9399 = vst [vmem:[#allocation2 + $0xc0] sm:$0xff] %v9237_v63   ;;  %v940_v10 = vpop.f32.mrf.mxu1  ;;  %v11456_v51 = vld [vmem:[%s14382_s3 + $0x220] sm:$0xff]  }
 0x125   :  { %v696_v8 = vadd.f32 %v12438_v4, %v695_v3  ;;  %10306 = vmatprep.subr.bf16.mxu1 %v11792_v0  ;;  %10334 = vmatprep.subr.bf16.mxu0 %v11792_v0  ;;  %v941_v14 = vadd.f32 %v12438_v4, %v940_v10  ;;  %v11457_v3 = vld [vmem:[#allocation2 + $0x48] sm:$0xff]  }
 0x126   :  { %v10071_v9 = vpop.f32.mrf.mxu0  ;;  %v10101_v16 = vpop.f32.mrf.mxu1 }
 0x127   :  { %v724_v12 = vmax.f32 %v696_v8, 0.0  ;;  %v969_v20 = vmax.f32 %v941_v14, 0.0  ;;  %v11460_v9 = vld [vmem:[%s14382_s3 + $0x1f0] sm:$0xff]  }
 0x128   :  { %v700_v15 = vpop.f32.mrf.mxu0  ;;  %10307 = vmatpush3.bf16.msra.mxu1 %v11446_v2  ;;  %10335 = vmatpush3.bf16.msra.mxu0 %v11447_v6  ;;  %v945_v23 = vpop.f32.mrf.mxu1 }
 0x129   :  { %v9207_v18 = vpack.c.bf16 %v724_v12, %v723_v7  ;;  %v701_v19 = vadd.f32 %v12438_v4, %v700_v15  ;;  %10308 = vmatprep.subr.bf16.mxu1 %v11792_v0  ;;  %10360 = vmatprep.subr.bf16.mxu0 %v11792_v0  ;;  %v9242_v24 = vpack.c.bf16 %v969_v20, %v968_v13  ;;  %v11461_v12 = vld [vmem:[%s14382_s3 + $0x210] sm:$0xff]  }
 0x12a   :  { %v10074_v22 = vpop.f32.mrf.mxu0  ;;  %v946_v25 = vadd.f32 %v12438_v4, %v945_v23  ;;  %v10104_v28 = vpop.f32.mrf.mxu1  ;;  %v11463_v23 = vld [vmem:[%s14382_s3 + $0x208] sm:$0xff]  }
 0x12b   :  { %9394 = vst [vmem:[#allocation2 + $0x90] sm:$0xff] %v9207_v18   ;;  %10337 = vmatmul.mubr.bf16.vlgmr.msra.gmra.mxu0 %v11448_v21  ;;  %v725_v30 = vmax.f32 %v701_v19, 0.0  ;;  %9400 = vst [vmem:[#allocation2 + $0xc8] sm:$0xff] %v9242_v24   ;;  %v11462_v22 = vld [vmem:[%s14382_s3 + $0x1e8] sm:$0xff]  }
 0x12c   :  { %v703_v27 = vpop.f32.mrf.mxu0  ;;  %10309 = vmatpush3.bf16.msra.mxu1 %v11449_v11  ;;  %10361 = vmatpush3.bf16.msra.mxu0 %v11450_v17  ;;  %v948_v33 = vpop.f32.mrf.mxu1  ;;  %v970_v36 = vmax.f32 %v946_v25, 0.0 }
 0x12d   :  { %v704_v31 = vadd.f32 %v12438_v4, %v703_v27  ;;  %10310 = vmatprep.subr.bf16.mxu1 %v11792_v0  ;;  %10362 = vmatprep.subr.bf16.mxu0 %v11792_v0  ;;  %v949_v37 = vadd.f32 %v12438_v4, %v948_v33  ;;  %v11464_v33 = vld [vmem:[%s14382_s3 + $0x1e0] sm:$0xff]  }
 0x12e   :  { %v10075_v32 = vpop.f32.mrf.mxu0  ;;  %10376 = vmatprep.mubr.msk.bf16.mxu0 %vm11794_vm2, %v11792_v0  ;;  %v10105_v39 = vpop.f32.mrf.mxu1 }
 0x12f   :  { %v726_v35 = vmax.f32 %v704_v31, 0.0  ;;  %v971_v43 = vmax.f32 %v949_v37, 0.0 }
 0x130   :  { %v708_v38 = vpop.f32.mrf.mxu0  ;;  %10311 = vmatpush3.bf16.msra.mxu1 %v11451_v26  ;;  %10363 = vmatpush3.bf16.msra.mxu0 %v11452_v29  ;;  %v953_v45 = vpop.f32.mrf.mxu1 }
 0x131   :  { %v9212_v41 = vpack.c.bf16 %v726_v35, %v725_v30  ;;  %v709_v42 = vadd.f32 %v12438_v4, %v708_v38  ;;  %10312 = vmatprep.subr.bf16.mxu1 %v11792_v0  ;;  %10364 = vmatprep.subr.bf16.mxu0 %v11792_v0  ;;  %v9247_v46 = vpack.c.bf16 %v971_v43, %v970_v36 }
 0x132   :  { %v10078_v44 = vpop.f32.mrf.mxu0  ;;  %v954_v47 = vadd.f32 %v12438_v4, %v953_v45  ;;  %v10108_v50 = vpop.f32.mrf.mxu1  ;;  %v11468_v45 = vld [vmem:[%s14382_s3 + $0x78] sm:$0xff]  }
 0x133   :  { %9395 = vst [vmem:[#allocation2 + $0x98] sm:$0xff] %v9212_v41   ;;  %v727_v52 = vmax.f32 %v709_v42, 0.0  ;;  %9401 = vst [vmem:[#allocation2 + $0xd0] sm:$0xff] %v9247_v46   ;;  %v11467_v44 = vld [vmem:[%s14382_s3 + $0x1d8] sm:$0xff]  }
 0x134   :  { %v711_v49 = vpop.f32.mrf.mxu0  ;;  %10313 = vmatpush3.bf16.msra.mxu1 %v11453_v34  ;;  %10365 = vmatpush3.bf16.msra.mxu0 %v11454_v40  ;;  %v956_v55 = vpop.f32.mrf.mxu1  ;;  %v972_v58 = vmax.f32 %v954_v47, 0.0  ;;  %v11465_v34 = vld [vmem:[%s14382_s3 + $0x200] sm:$0xff]  }
 0x135   :  { %v712_v53 = vadd.f32 %v12438_v4, %v711_v49  ;;  %10314 = vmatprep.subr.bf16.mxu1 %v11792_v0  ;;  %10366 = vmatprep.subr.bf16.mxu0 %v11792_v0  ;;  %v957_v59 = vadd.f32 %v12438_v4, %v956_v55  ;;  %v11466_v49 = vld [vmem:[#allocation2 + $0x80] sm:$0xff]  }
 0x136   :  { %v10079_v54 = vpop.f32.mrf.mxu0  ;;  %v10109_v61 = vpop.f32.mrf.mxu1 }
 0x137   :  { %v728_v57 = vmax.f32 %v712_v53, 0.0  ;;  %v973_v2 = vmax.f32 %v957_v59, 0.0 }
 0x138   :  { %v1150_v60 = vpop.f32.mrf.mxu0  ;;  %10315 = vmatpush3.bf16.msra.mxu1 %v11455_v48  ;;  %10367 = vmatpush3.bf16.msra.mxu0 %v11456_v51  ;;  %v1395_v6 = vpop.f32.mrf.mxu1 }
 0x139   :  { %v9217_v63 = vpack.c.bf16 %v728_v57, %v727_v52  ;;  %v1151_v1 = vadd.f32 %v12438_v4, %v1150_v60  ;;  %10340 = vmatprep.subr.bf16.mxu1 %v11792_v0  ;;  %10368 = vmatprep.subr.bf16.mxu0 %v11792_v0  ;;  %v9252_v7 = vpack.c.bf16 %v973_v2, %v972_v58  ;;  %v11470_v57 = vld [vmem:[%s14382_s3 + $0x70] sm:$0xff]  }
 0x13a   :  { %v10114_v5 = vpop.f32.mrf.mxu0  ;;  %v1396_v8 = vadd.f32 %v12438_v4, %v1395_v6  ;;  %v10144_v11 = vpop.f32.mrf.mxu1  ;;  %v11472_v6 = vld [vmem:[%s14382_s3 + $0x68] sm:$0xff]  }
 0x13b   :  { %9396 = vst [vmem:[#allocation2 + $0xa0] sm:$0xff] %v9217_v63   ;;  %10317 = vmatmul.mubr.bf16.vlgmr.msra.gmra.mxu1 %v11457_v3  ;;  %v1205_v13 = vmax.f32 %v1151_v1, 0.0  ;;  %9402 = vst [vmem:[#allocation2 + $0xd8] sm:$0xff] %v9252_v7   ;;  %v11471_v5 = vld [vmem:[%s14382_s3 + $0x1c8] sm:$0xff]  }
 0x13c   :  { %v1153_v10 = vpop.f32.mrf.mxu0  ;;  %10341 = vmatpush3.bf16.msra.mxu1 %v11458_v56  ;;  %10369 = vmatpush3.bf16.msra.mxu0 %v11459_v62  ;;  %v1398_v16 = vpop.f32.mrf.mxu1  ;;  %v1450_v18 = vmax.f32 %v1396_v8, 0.0  ;;  %v11469_v56 = vld [vmem:[%s14382_s3 + $0x1d0] sm:$0xff]  }
 0x13d   :  { %v1154_v14 = vadd.f32 %v12438_v4, %v1153_v10  ;;  %10342 = vmatprep.subr.bf16.mxu1 %v11792_v0  ;;  %10370 = vmatprep.subr.bf16.mxu0 %v11792_v0  ;;  %v1399_v19 = vadd.f32 %v12438_v4, %v1398_v16  ;;  %v11473_v16 = vld [vmem:[%s14382_s3 + $0x1c0] sm:$0xff]  }
 0x13e   :  { %v10115_v15 = vpop.f32.mrf.mxu0  ;;  %10356 = vmatprep.mubr.msk.bf16.mxu1 %vm11794_vm2, %v11792_v0  ;;  %v10145_v21 = vpop.f32.mrf.mxu1 }
 0x13f   :  { %v1206_v17 = vmax.f32 %v1154_v14, 0.0  ;;  %v1451_v26 = vmax.f32 %v1399_v19, 0.0 }
 0x140   :  { %v1158_v20 = vpop.f32.mrf.mxu0  ;;  %10343 = vmatpush3.bf16.msra.mxu1 %v11460_v9  ;;  %10371 = vmatpush3.bf16.msra.mxu0 %v11461_v12  ;;  %v1403_v28 = vpop.f32.mrf.mxu1 }
 0x141   :  { %v9257_v24 = vpack.c.bf16 %v1206_v17, %v1205_v13  ;;  %v1159_v25 = vadd.f32 %v12438_v4, %v1158_v20  ;;  %10344 = vmatprep.subr.bf16.mxu1 %v11792_v0  ;;  %10372 = vmatprep.subr.bf16.mxu0 %v11792_v0  ;;  %v9292_v29 = vpack.c.bf16 %v1451_v26, %v1450_v18  ;;  %v11474_v17 = vld [vmem:[%s14382_s3 + $0x60] sm:$0xff]  }
 0x142   :  { %v10118_v27 = vpop.f32.mrf.mxu0  ;;  %v1404_v30 = vadd.f32 %v12438_v4, %v1403_v28  ;;  %v10148_v32 = vpop.f32.mrf.mxu1  ;;  %v11477_v28 = vld [vmem:[%s14382_s3 + $0x58] sm:$0xff]  }
 0x143   :  { %9258 = vst [vmem:[#allocation2 + $0xe0] sm:$0xff] %v9257_v24   ;;  %v1207_v35 = vmax.f32 %v1159_v25, 0.0  ;;  %9293 = vst [vmem:[#allocation2 + $0x118] sm:$0xff] %v9292_v29   ;;  %v12587_v27 = vld [vmem:[%s14382_s3 + $0x38] sm:$0xff]  }
 0x144   :  { %v1161_v31 = vpop.f32.mrf.mxu0  ;;  %10345 = vmatpush3.bf16.msra.mxu1 %v11462_v22  ;;  %10373 = vmatpush3.bf16.msra.mxu0 %v11463_v23  ;;  %v1406_v38 = vpop.f32.mrf.mxu1  ;;  %v1452_v40 = vmax.f32 %v1404_v30, 0.0  ;;  %v11475_v32 = vld [vmem:[#allocation2 + $0x78] sm:$0xff]  }
 0x145   :  { %v1162_v36 = vadd.f32 %v12438_v4, %v1161_v31  ;;  %10346 = vmatprep.subr.bf16.mxu1 %v11792_v0  ;;  %10374 = vmatprep.subr.bf16.mxu0 %v11792_v0  ;;  %v1407_v41 = vadd.f32 %v12438_v4, %v1406_v38 }
 0x146   :  { %v10119_v37 = vpop.f32.mrf.mxu0  ;;  %v10149_v43 = vpop.f32.mrf.mxu1 }
 0x147   :  { %v1208_v39 = vmax.f32 %v1162_v36, 0.0  ;;  %v1453_v48 = vmax.f32 %v1407_v41, 0.0 }
 0x148   :  { %v1166_v42 = vpop.f32.mrf.mxu0  ;;  %10347 = vmatpush3.bf16.msra.mxu1 %v11464_v33  ;;  %10375 = vmatpush3.bf16.msra.mxu0 %v11465_v34  ;;  %v1411_v51 = vpop.f32.mrf.mxu1 }
 0x149   :  { %v9262_v46 = vpack.c.bf16 %v1208_v39, %v1207_v35  ;;  %v1167_v47 = vadd.f32 %v12438_v4, %v1166_v42  ;;  %10348 = vmatprep.subr.bf16.mxu1 %v11792_v0  ;;  %10400 = vmatprep.subr.bf16.mxu0 %v11792_v0  ;;  %v9297_v52 = vpack.c.bf16 %v1453_v48, %v1452_v40  ;;  %v12600_v39 = vld [vmem:[%s14382_s3 + $0x30] sm:$0xff]  }
 0x14a   :  { %v10122_v50 = vpop.f32.mrf.mxu0  ;;  %v1412_v53 = vadd.f32 %v12438_v4, %v1411_v51  ;;  %v10152_v55 = vpop.f32.mrf.mxu1  ;;  %v11479_v40 = vld [vmem:[%s14382_s3 + $0x50] sm:$0xff]   ;;  %v11481_v51 = vld [vmem:[%s14382_s3 + $0x48] sm:$0xff]  }
 0x14b   :  { %9403 = vst [vmem:[#allocation2 + $0xe8] sm:$0xff] %v9262_v46   ;;  %10377 = vmatmul.mubr.bf16.vlgmr.msra.gmra.mxu0 %v11466_v49  ;;  %v1209_v58 = vmax.f32 %v1167_v47, 0.0  ;;  %9409 = vst [vmem:[#allocation2 + $0x120] sm:$0xff] %v9297_v52   ;;  %v12615_v50 = vld [vmem:[%s14382_s3 + $0x28] sm:$0xff]  }
 0x14c   :  { %v1169_v54 = vpop.f32.mrf.mxu0  ;;  %10349 = vmatpush3.bf16.msra.mxu1 %v11467_v44  ;;  %10401 = vmatpush3.bf16.msra.mxu0 %v11468_v45  ;;  %v1414_v61 = vpop.f32.mrf.mxu1  ;;  %v1454_v63 = vmax.f32 %v1412_v53, 0.0 }
 0x14d   :  { %v1170_v59 = vadd.f32 %v12438_v4, %v1169_v54  ;;  %10350 = vmatprep.subr.bf16.mxu1 %v11792_v0  ;;  %10402 = vmatprep.subr.bf16.mxu0 %v11792_v0  ;;  %v1415_v1 = vadd.f32 %v12438_v4, %v1414_v61  ;;  %v12628_v61 = vld [vmem:[%s14382_s3 + $0x20] sm:$0xff]  }
 0x14e   :  { %v10123_v60 = vpop.f32.mrf.mxu0  ;;  %10416 = vmatprep.mubr.msk.bf16.mxu0 %vm11794_vm2, %v11792_v0  ;;  %v10153_v3 = vpop.f32.mrf.mxu1 }
 0x14f   :  { %v1210_v62 = vmax.f32 %v1170_v59, 0.0  ;;  %v1455_v9 = vmax.f32 %v1415_v1, 0.0 }
 0x150   :  { %v1174_v2 = vpop.f32.mrf.mxu0  ;;  %10351 = vmatpush3.bf16.msra.mxu1 %v11469_v56  ;;  %10403 = vmatpush3.bf16.msra.mxu0 %v11470_v57  ;;  %v1419_v11 = vpop.f32.mrf.mxu1 }
 0x151   :  { %v9267_v7 = vpack.c.bf16 %v1210_v62, %v1209_v58  ;;  %v1175_v8 = vadd.f32 %v12438_v4, %v1174_v2  ;;  %10352 = vmatprep.subr.bf16.mxu1 %v11792_v0  ;;  %10404 = vmatprep.subr.bf16.mxu0 %v11792_v0  ;;  %v9302_v12 = vpack.c.bf16 %v1455_v9, %v1454_v63  ;;  %v11483_v62 = vld [vmem:[%s14382_s3 + $0x40] sm:$0xff]  }
 0x152   :  { %v10126_v10 = vpop.f32.mrf.mxu0  ;;  %v1420_v13 = vadd.f32 %v12438_v4, %v1419_v11  ;;  %v10156_v15 = vpop.f32.mrf.mxu1  ;;  %v12646_v11 = vld [vmem:[%s14382_s3 + $0xf8] sm:$0xff]  }
 0x153   :  { %9404 = vst [vmem:[#allocation2 + $0xf0] sm:$0xff] %v9267_v7   ;;  %v1211_v18 = vmax.f32 %v1175_v8, 0.0  ;;  %9410 = vst [vmem:[#allocation2 + $0x128] sm:$0xff] %v9302_v12   ;;  %v12641_v10 = vld [vmem:[%s14382_s3 + $0x18] sm:$0xff]   ;;  %v11484_v15 = vld [vmem:[#allocation2 + $0x20] sm:$0xff]  }
 0x154   :  { %v1177_v14 = vpop.f32.mrf.mxu0  ;;  %10353 = vmatpush3.bf16.msra.mxu1 %v11471_v5  ;;  %10405 = vmatpush3.bf16.msra.mxu0 %v11472_v6  ;;  %v1422_v21 = vpop.f32.mrf.mxu1  ;;  %v1456_v23 = vmax.f32 %v1420_v13, 0.0 }
 0x155   :  { %v1178_v19 = vadd.f32 %v12438_v4, %v1177_v14  ;;  %10354 = vmatprep.subr.bf16.mxu1 %v11792_v0  ;;  %10406 = vmatprep.subr.bf16.mxu0 %v11792_v0  ;;  %v1423_v24 = vadd.f32 %v12438_v4, %v1422_v21 }
 0x156   :  { %v10127_v20 = vpop.f32.mrf.mxu0  ;;  %v10157_v26 = vpop.f32.mrf.mxu1 }
 0x157   :  { %v1212_v22 = vmax.f32 %v1178_v19, 0.0  ;;  %v1457_v31 = vmax.f32 %v1423_v24, 0.0 }
 0x158   :  { %v1182_v25 = vpop.f32.mrf.mxu0  ;;  %10355 = vmatpush3.bf16.msra.mxu1 %v11473_v16  ;;  %10407 = vmatpush3.bf16.msra.mxu0 %v11474_v17  ;;  %v1427_v34 = vpop.f32.mrf.mxu1 }
 0x159   :  { %v9272_v29 = vpack.c.bf16 %v1212_v22, %v1211_v18  ;;  %v1183_v30 = vadd.f32 %v12438_v4, %v1182_v25  ;;  %10380 = vmatprep.subr.bf16.mxu1 %v11792_v0  ;;  %10408 = vmatprep.subr.bf16.mxu0 %v11792_v0  ;;  %v9307_v35 = vpack.c.bf16 %v1457_v31, %v1456_v23  ;;  %v12657_v22 = vld [vmem:[%s14382_s3 + $0x10] sm:$0xff]  }
 0x15a   :  { %v10130_v33 = vpop.f32.mrf.mxu0  ;;  %v1428_v36 = vadd.f32 %v12438_v4, %v1427_v34  ;;  %v10160_v38 = vpop.f32.mrf.mxu1  ;;  %v12662_v23 = vld [vmem:[%s14382_s3 + $0xf0] sm:$0xff]   ;;  %v12675_v34 = vld [vmem:[%s14382_s3 + $0x8] sm:$0xff]  }
 0x15b   :  { %9405 = vst [vmem:[#allocation2 + $0xf8] sm:$0xff] %v9272_v29   ;;  %10357 = vmatmul.mubr.bf16.vlgmr.msra.gmra.mxu1 %v11475_v32  ;;  %v1213_v41 = vmax.f32 %v1183_v30, 0.0  ;;  %9411 = vst [vmem:[#allocation2 + $0x130] sm:$0xff] %v9307_v35   ;;  %v12680_v35 = vld [vmem:[%s14382_s3 + $0xe8] sm:$0xff]  }
 0x15c   :  { %v1185_v37 = vpop.f32.mrf.mxu0  ;;  %10381 = vmatpush3.bf16.msra.mxu1 %v12587_v27  ;;  %10409 = vmatpush3.bf16.msra.mxu0 %v11477_v28  ;;  %v1430_v44 = vpop.f32.mrf.mxu1  ;;  %v1458_v46 = vmax.f32 %v1428_v36, 0.0 }
 0x15d   :  { %v1186_v42 = vadd.f32 %v12438_v4, %v1185_v37  ;;  %10382 = vmatprep.subr.bf16.mxu1 %v11792_v0  ;;  %10410 = vmatprep.subr.bf16.mxu0 %v11792_v0  ;;  %v1431_v47 = vadd.f32 %v12438_v4, %v1430_v44  ;;  %v12695_v44 = vld [vmem:[%s14382_s3 + $0xe0] sm:$0xff]  }
 0x15e   :  { %v10131_v43 = vpop.f32.mrf.mxu0  ;;  %10396 = vmatprep.mubr.msk.bf16.mxu1 %vm11794_vm2, %v11792_v0  ;;  %v10161_v49 = vpop.f32.mrf.mxu1 }
 0x15f   :  { %v1214_v45 = vmax.f32 %v1186_v42, 0.0  ;;  %v1459_v54 = vmax.f32 %v1431_v47, 0.0  ;;  %v12690_v43 = vld [vmem:[%s14382_s3] sm:$0xff]  }
 0x160   :  { %v1190_v48 = vpop.f32.mrf.mxu0  ;;  %10383 = vmatpush3.bf16.msra.mxu1 %v12600_v39  ;;  %10411 = vmatpush3.bf16.msra.mxu0 %v11479_v40  ;;  %v1435_v56 = vpop.f32.mrf.mxu1 }
 0x161   :  { %v9277_v52 = vpack.c.bf16 %v1214_v45, %v1213_v41  ;;  %v1191_v53 = vadd.f32 %v12438_v4, %v1190_v48  ;;  %10384 = vmatprep.subr.bf16.mxu1 %v11792_v0  ;;  %10412 = vmatprep.subr.bf16.mxu0 %v11792_v0  ;;  %v9312_v57 = vpack.c.bf16 %v1459_v54, %v1458_v46 }
 0x162   :  { %v10134_v55 = vpop.f32.mrf.mxu0  ;;  %v1436_v58 = vadd.f32 %v12438_v4, %v1435_v56  ;;  %v10164_v60 = vpop.f32.mrf.mxu1 }
 0x163   :  { %9406 = vst [vmem:[#allocation2 + $0x100] sm:$0xff] %v9277_v52   ;;  %v1215_v63 = vmax.f32 %v1191_v53, 0.0  ;;  %9412 = vst [vmem:[#allocation2 + $0x138] sm:$0xff] %v9312_v57   ;;  %v12708_v52 = vld [vmem:[%s14382_s3 + $0xd8] sm:$0xff]  }
 0x164   :  { %v1193_v59 = vpop.f32.mrf.mxu0  ;;  %10385 = vmatpush3.bf16.msra.mxu1 %v12615_v50  ;;  %10413 = vmatpush3.bf16.msra.mxu0 %v11481_v51  ;;  %v1438_v3 = vpop.f32.mrf.mxu1  ;;  %v1460_v6 = vmax.f32 %v1436_v58, 0.0  ;;  %v11494_v51 = vld [vmem:[%s14382_s3 + $0xb8] sm:$0xff]   ;;  %v11496_v58 = vld [vmem:[%s14382_s3 + $0xb0] sm:$0xff]  }
 0x165   :  { %v1194_v1 = vadd.f32 %v12438_v4, %v1193_v59  ;;  %10386 = vmatprep.subr.bf16.mxu1 %v11792_v0  ;;  %10414 = vmatprep.subr.bf16.mxu0 %v11792_v0  ;;  %v1439_v7 = vadd.f32 %v12438_v4, %v1438_v3  ;;  %v11493_v55 = vld [vmem:[#allocation2 + $0x18] sm:$0xff]   ;;  %v12720_v59 = vld [vmem:[%s14382_s3 + $0xd0] sm:$0xff]   ;;  %v11498_v3 = vld [vmem:[%s14382_s3 + $0xa8] sm:$0xff]  }
 0x166   :  { %v10135_v2 = vpop.f32.mrf.mxu0  ;;  %v10165_v9 = vpop.f32.mrf.mxu1 }
 0x167   :  { %v1216_v5 = vmax.f32 %v1194_v1, 0.0  ;;  %v1461_v14 = vmax.f32 %v1439_v7, 0.0 }
 0x168   :  { %v1198_v8 = vpop.f32.mrf.mxu0  ;;  %10387 = vmatpush3.bf16.msra.mxu1 %v12628_v61  ;;  %10415 = vmatpush3.bf16.msra.mxu0 %v11483_v62  ;;  %v1443_v17 = vpop.f32.mrf.mxu1 }
 0x169   :  { %v9282_v12 = vpack.c.bf16 %v1216_v5, %v1215_v63  ;;  %v1199_v13 = vadd.f32 %v12438_v4, %v1198_v8  ;;  %10388 = vmatprep.subr.bf16.mxu1 %v11792_v0  ;;  %10440 = vmatprep.subr.bf16.mxu0 %v11792_v0  ;;  %v9317_v18 = vpack.c.bf16 %v1461_v14, %v1460_v6  ;;  %v12734_v5 = vld [vmem:[%s14382_s3 + $0xc8] sm:$0xff]  }
 0x16a   :  { %v10138_v16 = vpop.f32.mrf.mxu0  ;;  %v1444_v19 = vadd.f32 %v12438_v4, %v1443_v17  ;;  %v10168_v21 = vpop.f32.mrf.mxu1 }
 0x16b   :  { %9407 = vst [vmem:[#allocation2 + $0x108] sm:$0xff] %v9282_v12   ;;  %10417 = vmatmul.mubr.bf16.vlgmr.msra.gmra.mxu0 %v11484_v15  ;;  %v1217_v24 = vmax.f32 %v1199_v13, 0.0  ;;  %9413 = vst [vmem:[#allocation2 + $0x140] sm:$0xff] %v9317_v18   ;;  %v11500_v12 = vld [vmem:[%s14382_s3 + $0xa0] sm:$0xff]  }
 0x16c   :  { %v1201_v20 = vpop.f32.mrf.mxu0  ;;  %10389 = vmatpush3.bf16.msra.mxu1 %v12641_v10  ;;  %10441 = vmatpush3.bf16.msra.mxu0 %v12646_v11  ;;  %v1446_v28 = vpop.f32.mrf.mxu1  ;;  %v1462_v30 = vmax.f32 %v1444_v19, 0.0  ;;  %v12746_v13 = vld [vmem:[%s14382_s3 + $0xc0] sm:$0xff]   ;;  %v11503_v19 = vld [vmem:[%s14382_s3 + $0x98] sm:$0xff]  }
 0x16d   :  { %v1202_v25 = vadd.f32 %v12438_v4, %v1201_v20  ;;  %10390 = vmatprep.subr.bf16.mxu1 %v11792_v0  ;;  %10442 = vmatprep.subr.bf16.mxu0 %v11792_v0  ;;  %v1447_v31 = vadd.f32 %v12438_v4, %v1446_v28  ;;  %v11504_v20 = vld [vmem:[%s14382_s3 + $0x178] sm:$0xff]  }
 0x16e   :  { %v10139_v26 = vpop.f32.mrf.mxu0  ;;  %10456 = vmatprep.mubr.msk.bf16.mxu0 %vm11794_vm2, %v11792_v0  ;;  %v10169_v33 = vpop.f32.mrf.mxu1 }
 0x16f   :  { %v1218_v29 = vmax.f32 %v1202_v25, 0.0  ;;  %v1463_v38 = vmax.f32 %v1447_v31, 0.0  ;;  %v11502_v25 = vld [vmem:[#allocation2 + $0x50] sm:$0xff]  }
 0x170   :  { %v1640_v32 = vpop.f32.mrf.mxu0  ;;  %10391 = vmatpush3.bf16.msra.mxu1 %v12657_v22  ;;  %10443 = vmatpush3.bf16.msra.mxu0 %v12662_v23 }
 0x171   :  { %v9287_v36 = vpack.c.bf16 %v1218_v29, %v1217_v24  ;;  %v1641_v37 = vadd.f32 %v12438_v4, %v1640_v32  ;;  %10392 = vmatprep.subr.bf16.mxu1 %v11792_v0  ;;  %10444 = vmatprep.subr.bf16.mxu0 %v11792_v0  ;;  %v9322_v41 = vpack.c.bf16 %v1463_v38, %v1462_v30  ;;  %v11505_v29 = vld [vmem:[%s14382_s3 + $0x90] sm:$0xff]   ;;  %v11507_v38 = vld [vmem:[%s14382_s3 + $0x88] sm:$0xff]  }
 0x172   :  { %v10174_v40 = vpop.f32.mrf.mxu0  ;;  %v11506_v30 = vld [vmem:[%s14382_s3 + $0x170] sm:$0xff]  }
 0x173   :  { %9408 = vst [vmem:[#allocation2 + $0x110] sm:$0xff] %v9287_v36   ;;  %v1695_v45 = vmax.f32 %v1641_v37, 0.0  ;;  %9414 = vst [vmem:[#allocation2 + $0x148] sm:$0xff] %v9322_v41   ;;  %v11508_v40 = vld [vmem:[%s14382_s3 + $0x168] sm:$0xff]  }
 0x174   :  { %v1643_v42 = vpop.f32.mrf.mxu0  ;;  %10393 = vmatpush3.bf16.msra.mxu1 %v12675_v34  ;;  %10445 = vmatpush3.bf16.msra.mxu0 %v12680_v35 }
 0x175   :  { %v1644_v46 = vadd.f32 %v12438_v4, %v1643_v42  ;;  %10394 = vmatprep.subr.bf16.mxu1 %v11792_v0  ;;  %10446 = vmatprep.subr.bf16.mxu0 %v11792_v0 }
 0x176   :  { %v10175_v47 = vpop.f32.mrf.mxu0 }
 0x177   :  { %v1696_v48 = vmax.f32 %v1644_v46, 0.0  ;;  %v11509_v47 = vld [vmem:[%s14382_s3 + $0x80] sm:$0xff]  }
 0x178   :  { %v1648_v49 = vpop.f32.mrf.mxu0  ;;  %10395 = vmatpush3.bf16.msra.mxu1 %v12690_v43  ;;  %10447 = vmatpush3.bf16.msra.mxu0 %v12695_v44 }
 0x179   :  { %v9327_v53 = vpack.c.bf16 %v1696_v48, %v1695_v45  ;;  %v1649_v54 = vadd.f32 %v12438_v4, %v1648_v49  ;;  %10420 = vmatprep.subr.bf16.mxu1 %v11792_v0  ;;  %10448 = vmatprep.subr.bf16.mxu0 %v11792_v0  ;;  %v11510_v48 = vld [vmem:[%s14382_s3 + $0x160] sm:$0xff]  }
 0x17a   :  { %v10178_v56 = vpop.f32.mrf.mxu0 }
 0x17b   :  { %9328 = vst [vmem:[#allocation2 + $0x150] sm:$0xff] %v9327_v53   ;;  %10397 = vmatmul.mubr.bf16.vlgmr.msra.gmra.mxu1 %v11493_v55  ;;  %v1697_v60 = vmax.f32 %v1649_v54, 0.0  ;;  %v11512_v56 = vld [vmem:[%s14382_s3 + $0x138] sm:$0xff]  }
 0x17c   :  { %v1651_v57 = vpop.f32.mrf.mxu0  ;;  %10421 = vmatpush3.bf16.msra.mxu1 %v11494_v51  ;;  %10449 = vmatpush3.bf16.msra.mxu0 %v12708_v52 }
 0x17d   :  { %v1652_v62 = vadd.f32 %v12438_v4, %v1651_v57  ;;  %10422 = vmatprep.subr.bf16.mxu1 %v11792_v0  ;;  %10450 = vmatprep.subr.bf16.mxu0 %v11792_v0  ;;  %v11513_v57 = vld [vmem:[%s14382_s3 + $0x158] sm:$0xff]  }
 0x17e   :  { %v10179_v63 = vpop.f32.mrf.mxu0  ;;  %10436 = vmatprep.mubr.msk.bf16.mxu1 %vm11794_vm2, %v11792_v0 }
 0x17f   :  { %v1698_v1 = vmax.f32 %v1652_v62, 0.0  ;;  %v11511_v62 = vld [vmem:[#allocation2 + $0x28] sm:$0xff]  }
 0x180   :  { %v1656_v2 = vpop.f32.mrf.mxu0  ;;  %10423 = vmatpush3.bf16.msra.mxu1 %v11496_v58  ;;  %10451 = vmatpush3.bf16.msra.mxu0 %v12720_v59 }
 0x181   :  { %v9332_v6 = vpack.c.bf16 %v1698_v1, %v1697_v60  ;;  %v1657_v7 = vadd.f32 %v12438_v4, %v1656_v2  ;;  %10424 = vmatprep.subr.bf16.mxu1 %v11792_v0  ;;  %10452 = vmatprep.subr.bf16.mxu0 %v11792_v0 }
 0x182   :  { %v10182_v8 = vpop.f32.mrf.mxu0 }
 0x183   :  { %9415 = vst [vmem:[#allocation2 + $0x158] sm:$0xff] %v9332_v6   ;;  %v1699_v14 = vmax.f32 %v1657_v7, 0.0  ;;  %v11515_v6 = vld [vmem:[%s14382_s3 + $0x150] sm:$0xff]  }
 0x184   :  { %v1659_v9 = vpop.f32.mrf.mxu0  ;;  %10425 = vmatpush3.bf16.msra.mxu1 %v11498_v3  ;;  %10453 = vmatpush3.bf16.msra.mxu0 %v12734_v5  ;;  %v11514_v3 = vld [vmem:[%s14382_s3 + $0x130] sm:$0xff]  }
 0x185   :  { %v1660_v15 = vadd.f32 %v12438_v4, %v1659_v9  ;;  %10426 = vmatprep.subr.bf16.mxu1 %v11792_v0  ;;  %10454 = vmatprep.subr.bf16.mxu0 %v11792_v0  ;;  %v12761_v4 = vld [vmem:[%s14383_s2] ss:$0 sm:$0xff] }
 0x186   :  { %v10183_v16 = vpop.f32.mrf.mxu0 }
 0x187   :  { %v1700_v17 = vmax.f32 %v1660_v15, 0.0 }
 0x188   :  { %v1664_v18 = vpop.f32.mrf.mxu0  ;;  %10427 = vmatpush3.bf16.msra.mxu1 %v11500_v12  ;;  %10455 = vmatpush3.bf16.msra.mxu0 %v12746_v13 }
 0x189   :  { %v9337_v21 = vpack.c.bf16 %v1700_v17, %v1699_v14  ;;  %v1665_v24 = vadd.f32 %v12761_v4, %v1664_v18  ;;  %10428 = vmatprep.subr.bf16.mxu1 %v11792_v0  ;;  %10480 = vmatprep.subr.bf16.mxu0 %v11792_v0  ;;  %v11516_v17 = vld [vmem:[%s14382_s3 + $0x128] sm:$0xff]  }
 0x18a   :  { %v10186_v26 = vpop.f32.mrf.mxu0  ;;  %v11517_v18 = vld [vmem:[%s14382_s3 + $0x148] sm:$0xff]  }
 0x18b   :  { %9416 = vst [vmem:[#allocation2 + $0x160] sm:$0xff] %v9337_v21   ;;  %10457 = vmatmul.mubr.bf16.vlgmr.msra.gmra.mxu0 %v11502_v25  ;;  %v1701_v31 = vmax.f32 %v1665_v24, 0.0  ;;  %v11518_v26 = vld [vmem:[%s14382_s3 + $0x120] sm:$0xff]  }
 0x18c   :  { %v1667_v28 = vpop.f32.mrf.mxu0  ;;  %10429 = vmatpush3.bf16.msra.mxu1 %v11503_v19  ;;  %10481 = vmatpush3.bf16.msra.mxu0 %v11504_v20 }
 0x18d   :  { %v1668_v32 = vadd.f32 %v12761_v4, %v1667_v28  ;;  %10430 = vmatprep.subr.bf16.mxu1 %v11792_v0  ;;  %10482 = vmatprep.subr.bf16.mxu0 %v11792_v0  ;;  %v11519_v28 = vld [vmem:[%s14382_s3 + $0x140] sm:$0xff]  }
 0x18e   :  { %v10187_v33 = vpop.f32.mrf.mxu0  ;;  %10496 = vmatprep.mubr.msk.bf16.mxu0 %vm11794_vm2, %v11792_v0 }
 0x18f   :  { %v1702_v36 = vmax.f32 %v1668_v32, 0.0  ;;  %v11521_v33 = vld [vmem:[%s14382_s3 + $0x118] sm:$0xff]  }
 0x190   :  { %v1672_v37 = vpop.f32.mrf.mxu0  ;;  %10431 = vmatpush3.bf16.msra.mxu1 %v11505_v29  ;;  %10483 = vmatpush3.bf16.msra.mxu0 %v11506_v30 }
 0x191   :  { %v9342_v41 = vpack.c.bf16 %v1702_v36, %v1701_v31  ;;  %v1673_v42 = vadd.f32 %v12761_v4, %v1672_v37  ;;  %10432 = vmatprep.subr.bf16.mxu1 %v11792_v0  ;;  %10484 = vmatprep.subr.bf16.mxu0 %v11792_v0  ;;  %v11522_v36 = vld [vmem:[%s14382_s3 + $0x1f8] sm:$0xff]  }
 0x192   :  { %v10190_v45 = vpop.f32.mrf.mxu0 }
 0x193   :  { %9417 = vst [vmem:[#allocation2 + $0x168] sm:$0xff] %v9342_v41   ;;  %v1703_v49 = vmax.f32 %v1673_v42, 0.0  ;;  %v11524_v41 = vld [vmem:[%s14382_s3 + $0x1f0] sm:$0xff]  }
 0x194   :  { %v1675_v46 = vpop.f32.mrf.mxu0  ;;  %10433 = vmatpush3.bf16.msra.mxu1 %v11507_v38  ;;  %10485 = vmatpush3.bf16.msra.mxu0 %v11508_v40  ;;  %v11523_v40 = vld [vmem:[%s14382_s3 + $0x110] sm:$0xff]  }
 0x195   :  { %v1676_v51 = vadd.f32 %v12761_v4, %v1675_v46  ;;  %10434 = vmatprep.subr.bf16.mxu1 %v11792_v0  ;;  %10486 = vmatprep.subr.bf16.mxu0 %v11792_v0  ;;  %v11525_v46 = vld [vmem:[%s14382_s3 + $0x108] sm:$0xff]  }
 0x196   :  { %v10191_v53 = vpop.f32.mrf.mxu0 }
 0x197   :  { %v1704_v54 = vmax.f32 %v1676_v51, 0.0  ;;  %v11528_v51 = vld [vmem:[%s14382_s3 + $0x1e0] sm:$0xff]  }
 0x198   :  { %v1680_v55 = vpop.f32.mrf.mxu0  ;;  %10435 = vmatpush3.bf16.msra.mxu1 %v11509_v47  ;;  %10487 = vmatpush3.bf16.msra.mxu0 %v11510_v48  ;;  %v11526_v47 = vld [vmem:[%s14382_s3 + $0x1e8] sm:$0xff]   ;;  %v12874_v53 = vld [vmem:[%s14384_s4] ss:$0 sm:$0xff] }
 0x199   :  { %v9347_v58 = vpack.c.bf16 %v1704_v54, %v1703_v49  ;;  %v1681_v60 = vadd.f32 %v12761_v4, %v1680_v55  ;;  %10460 = vmatprep.subr.bf16.mxu1 %v11792_v0  ;;  %10488 = vmatprep.subr.bf16.mxu0 %v11792_v0  ;;  %v11527_v49 = vld [vmem:[%s14382_s3 + $0x100] sm:$0xff]   ;;  %v12879_v54 = vld [vmem:[%s14382_s3 + $0x1b8] sm:$0xff]  }
 0x19a   :  { %v10194_v63 = vpop.f32.mrf.mxu0  ;;  %v11531_v55 = vld [vmem:[%s14382_s3 + $0x1d8] sm:$0xff]  }
 0x19b   :  { %9418 = vst [vmem:[#allocation2 + $0x170] sm:$0xff] %v9347_v58   ;;  %10437 = vmatmul.mubr.bf16.vlgmr.msra.gmra.mxu1 %v11511_v62  ;;  %v12804_v1 = vpop.f32.mrf.mxu1  ;;  %v1705_v7 = vmax.f32 %v1681_v60, 0.0  ;;  %v12892_v62 = vld [vmem:[%s14382_s3 + $0x1b0] sm:$0xff]  }
 0x19c   :  { %v1683_v2 = vpop.f32.mrf.mxu0  ;;  %10461 = vmatpush3.bf16.msra.mxu1 %v11512_v56  ;;  %10489 = vmatpush3.bf16.msra.mxu0 %v11513_v57  ;;  %v11529_v56 = vld [vmem:[#allocation2 + $0x58] sm:$0xff]   ;;  %v1901_v57 = vadd.f32 %v12874_v53, %v12804_v1  ;;  %v11533_v63 = vld [vmem:[%s14382_s3 + $0x1d0] sm:$0xff]  }
 0x19d   :  { %v1684_v8 = vadd.f32 %v12761_v4, %v1683_v2  ;;  %v10218_v9 = vpop.f32.mrf.mxu1  ;;  %10462 = vmatprep.subr.bf16.mxu1 %v11792_v0  ;;  %10490 = vmatprep.subr.bf16.mxu0 %v11792_v0 }
 0x19e   :  { %v10195_v12 = vpop.f32.mrf.mxu0  ;;  %10476 = vmatprep.mubr.msk.bf16.mxu1 %vm11794_vm2, %v11792_v0  ;;  %v11535_v9 = vld [vmem:[%s14382_s3 + $0x1c8] sm:$0xff]  }
 0x19f   :  { %v1706_v14 = vmax.f32 %v1684_v8, 0.0  ;;  %v12817_v15 = vpop.f32.mrf.mxu1  ;;  %v12907_v8 = vld [vmem:[%s14382_s3 + $0x1a8] sm:$0xff]  }
 0x1a0   :  { %v1688_v16 = vpop.f32.mrf.mxu0  ;;  %10463 = vmatpush3.bf16.msra.mxu1 %v11514_v3  ;;  %10491 = vmatpush3.bf16.msra.mxu0 %v11515_v6  ;;  %v1902_v1 = vadd.f32 %v12874_v53, %v12817_v15  ;;  %v12918_v15 = vld [vmem:[%s14382_s3 + $0x1a0] sm:$0xff]  }
 0x1a1   :  { %v9352_v19 = vpack.c.bf16 %v1706_v14, %v1705_v7  ;;  %v1689_v20 = vadd.f32 %v12761_v4, %v1688_v16  ;;  %v10219_v21 = vpop.f32.mrf.mxu1  ;;  %10464 = vmatprep.subr.bf16.mxu1 %v11792_v0  ;;  %10492 = vmatprep.subr.bf16.mxu0 %v11792_v0  ;;  %v11537_v16 = vld [vmem:[%s14382_s3 + $0x1c0] sm:$0xff]  }
 0x1a2   :  { %v10198_v24 = vpop.f32.mrf.mxu0 }
 0x1a3   :  { %9419 = vst [vmem:[#allocation2 + $0x178] sm:$0xff] %v9352_v19   ;;  %v1707_v29 = vmax.f32 %v1689_v20, 0.0  ;;  %v12938_v20 = vld [vmem:[%s14382_s3 + $0x190] sm:$0xff]  }
 0x1a4   :  { %v1691_v25 = vpop.f32.mrf.mxu0  ;;  %10465 = vmatpush3.bf16.msra.mxu1 %v11516_v17  ;;  %10493 = vmatpush3.bf16.msra.mxu0 %v11517_v18  ;;  %v12929_v17 = vld [vmem:[%s14382_s3 + $0x198] sm:$0xff]   ;;  %v11538_v18 = vld [vmem:[#allocation2 + $0x90] sm:$0xff]  }
 0x1a5   :  { %v1692_v30 = vadd.f32 %v12761_v4, %v1691_v25  ;;  %10466 = vmatprep.subr.bf16.mxu1 %v11792_v0  ;;  %10494 = vmatprep.subr.bf16.mxu0 %v11792_v0  ;;  %v11520_v4 = vld [vmem:[#allocation2 + $0x60] sm:$0xff]  }
 0x1a6   :  { %v10199_v31 = vpop.f32.mrf.mxu0 }
 0x1a7   :  { %v1708_v32 = vmax.f32 %v1692_v30, 0.0  ;;  %v11545_v30 = vld [vmem:[%s14382_s3 + $0x230] sm:$0xff]  }
 0x1a8   :  { %10467 = vmatpush3.bf16.msra.mxu1 %v11518_v26  ;;  %10495 = vmatpush3.bf16.msra.mxu0 %v11519_v28  ;;  %v12958_v26 = vld [vmem:[%s14382_s3 + $0x180] sm:$0xff]   ;;  %v11543_v28 = vld [vmem:[#allocation2 + $0x88] sm:$0xff]  }
 0x1a9   :  { %v9357_v37 = vpack.c.bf16 %v1708_v32, %v1707_v29  ;;  %10468 = vmatprep.subr.bf16.mxu1 %v11792_v0  ;;  %10520 = vmatprep.subr.bf16.mxu0 %v11792_v0 }
 0x1ab   :  { %9420 = vst [vmem:[#allocation2 + $0x180] sm:$0xff] %v9357_v37   ;;  %10497 = vmatmul.mubr.bf16.vlgmr.msra.gmra.mxu0 %v11520_v4  ;;  %v2128_v38 = vpop.f32.mrf.mxu0  ;;  %v11547_v4 = vld [vmem:[%s14382_s3 + $0x220] sm:$0xff]  }
 0x1ac   :  { %10469 = vmatpush3.bf16.msra.mxu1 %v11521_v33  ;;  %10521 = vmatpush3.bf16.msra.mxu0 %v11522_v36 }
 0x1ad   :  { %10470 = vmatprep.subr.bf16.mxu1 %v11792_v0  ;;  %10522 = vmatprep.subr.bf16.mxu0 %v11792_v0  ;;  %v10258_v42 = vpop.f32.mrf.mxu0 }
 0x1ae   :  { %10536 = vmatprep.mubr.msk.bf16.mxu0 %vm11794_vm2, %v11792_v0  ;;  %v11551_v42 = vld [vmem:[%s14382_s3 + $0x208] sm:$0xff]  }
 0x1af   :  { %v2131_v45 = vpop.f32.mrf.mxu0 }
 0x1b0   :  { %10471 = vmatpush3.bf16.msra.mxu1 %v11523_v40  ;;  %10523 = vmatpush3.bf16.msra.mxu0 %v11524_v41  ;;  %v11550_v40 = vld [vmem:[%s14382_s3 + $0x210] sm:$0xff]  }
 0x1b1   :  { %10472 = vmatprep.subr.bf16.mxu1 %v11792_v0  ;;  %10524 = vmatprep.subr.bf16.mxu0 %v11792_v0  ;;  %v10259_v48 = vpop.f32.mrf.mxu0 }
 0x1b4   :  { %10473 = vmatpush3.bf16.msra.mxu1 %v11525_v46  ;;  %10525 = vmatpush3.bf16.msra.mxu0 %v11526_v47  ;;  %v11552_v46 = vld [vmem:[%s14382_s3 + $0x200] sm:$0xff]   ;;  %v11553_v47 = vld [vmem:[#allocation2 + $0x98] sm:$0xff]  }
 0x1b5   :  { %10474 = vmatprep.subr.bf16.mxu1 %v11792_v0  ;;  %10526 = vmatprep.subr.bf16.mxu0 %v11792_v0 }
 0x1b8   :  { %10475 = vmatpush3.bf16.msra.mxu1 %v11527_v49  ;;  %10527 = vmatpush3.bf16.msra.mxu0 %v11528_v51 }
 0x1b9   :  { %10500 = vmatprep.subr.bf16.mxu1 %v11792_v0  ;;  %10528 = vmatprep.subr.bf16.mxu0 %v11792_v0 }
 0x1bb   :  { %v2011_v58 = vpop.f32.mrf.mxu1  ;;  %10477 = vmatmul.mubr.bf16.vlgmr.msra.gmra.mxu1 %v11529_v56 }
 0x1bc   :  { %v2018_v60 = vadd.f32 %v2011_v58, %v1901_v57  ;;  %10501 = vmatpush3.bf16.msra.mxu1 %v12879_v54  ;;  %10529 = vmatpush3.bf16.msra.mxu0 %v11531_v55 }
 0x1bd   :  { %v10238_v2 = vpop.f32.mrf.mxu1  ;;  %10502 = vmatprep.subr.bf16.mxu1 %v11792_v0  ;;  %10530 = vmatprep.subr.bf16.mxu0 %v11792_v0 }
 0x1be   :  { %10516 = vmatprep.mubr.msk.bf16.mxu1 %vm11794_vm2, %v11792_v0  ;;  %v2135_v3 = vadd.f32 %v2128_v38, %v2018_v60  ;;  %v11548_v38 = vld [vmem:[#allocation2 + $0x30] sm:$0xff]   ;;  %v13089_v60 = vld [vmem:[%s14382_s3 + $0x58] sm:$0xff]  }
 0x1bf   :  { %v2014_v6 = vpop.f32.mrf.mxu1 }
 0x1c0   :  { %v2019_v7 = vadd.f32 %v2014_v6, %v1902_v1  ;;  %10503 = vmatpush3.bf16.msra.mxu1 %v12892_v62  ;;  %10531 = vmatpush3.bf16.msra.mxu0 %v11533_v63  ;;  %v13105_v6 = vld [vmem:[%s14382_s3 + $0x50] sm:$0xff]  }
 0x1c1   :  { %v10239_v12 = vpop.f32.mrf.mxu1  ;;  %10504 = vmatprep.subr.bf16.mxu1 %v11792_v0  ;;  %10532 = vmatprep.subr.bf16.mxu0 %v11792_v0 }
 0x1c2   :  { %v2136_v14 = vadd.f32 %v2131_v45, %v2019_v7 }
 0x1c4   :  { %10505 = vmatpush3.bf16.msra.mxu1 %v12907_v8  ;;  %10533 = vmatpush3.bf16.msra.mxu0 %v11535_v9 }
 0x1c5   :  { %10506 = vmatprep.subr.bf16.mxu1 %v11792_v0  ;;  %10534 = vmatprep.subr.bf16.mxu0 %v11792_v0 }
 0x1c8   :  { %10507 = vmatpush3.bf16.msra.mxu1 %v12918_v15  ;;  %10535 = vmatpush3.bf16.msra.mxu0 %v11537_v16  ;;  %v13122_v16 = vld [vmem:[%s14382_s3 + $0x48] sm:$0xff]  }
 0x1c9   :  { %10508 = vmatprep.subr.bf16.mxu1 %v11792_v0  ;;  %10560 = vmatprep.subr.bf16.mxu0 %v11792_v0 }
 0x1cb   :  { %v2361_v19 = vpop.f32.mrf.mxu0  ;;  %10537 = vmatmul.mubr.bf16.vlgmr.msra.gmra.mxu0 %v11538_v18  ;;  %v13127_v18 = vmax.f32 %v12874_v53, 0.0 }
 0x1cc   :  { %10509 = vmatpush3.bf16.msra.mxu1 %v12929_v17  ;;  %10561 = vmatpush3.bf16.msra.mxu0 %v12587_v27  ;;  %v12949_v27 = vld [vmem:[%s14382_s3 + $0x188] sm:$0xff]  }
 0x1cd   :  { %v10298_v21 = vpop.f32.mrf.mxu0  ;;  %10510 = vmatprep.subr.bf16.mxu1 %v11792_v0  ;;  %10562 = vmatprep.subr.bf16.mxu0 %v11792_v0 }
 0x1ce   :  { %10576 = vmatprep.mubr.msk.bf16.mxu0 %vm11794_vm2, %v11792_v0 }
 0x1cf   :  { %v2364_v24 = vpop.f32.mrf.mxu0 }
 0x1d0   :  { %10511 = vmatpush3.bf16.msra.mxu1 %v12938_v20  ;;  %10563 = vmatpush3.bf16.msra.mxu0 %v12600_v39  ;;  %v11544_v39 = vld [vmem:[%s14382_s3 + $0x238] sm:$0xff]  }
 0x1d1   :  { %v10299_v25 = vpop.f32.mrf.mxu0  ;;  %10512 = vmatprep.subr.bf16.mxu1 %v11792_v0  ;;  %10564 = vmatprep.subr.bf16.mxu0 %v11792_v0 }
 0x1d4   :  { %10513 = vmatpush3.bf16.msra.mxu1 %v12949_v27  ;;  %10565 = vmatpush3.bf16.msra.mxu0 %v12615_v50 }
 0x1d5   :  { %10514 = vmatprep.subr.bf16.mxu1 %v11792_v0  ;;  %10566 = vmatprep.subr.bf16.mxu0 %v11792_v0 }
 0x1d8   :  { %10515 = vmatpush3.bf16.msra.mxu1 %v12958_v26  ;;  %10567 = vmatpush3.bf16.msra.mxu0 %v12628_v61 }
 0x1d9   :  { %10540 = vmatprep.subr.bf16.mxu1 %v11792_v0  ;;  %10568 = vmatprep.subr.bf16.mxu0 %v11792_v0 }
 0x1db   :  { %v2244_v50 = vpop.f32.mrf.mxu1  ;;  %10517 = vmatmul.mubr.bf16.vlgmr.msra.gmra.mxu1 %v11543_v28  ;;  %v13150_v28 = vld [vmem:[%s14382_s3 + $0x18] sm:$0xff]  }
 0x1dc   :  { %v2251_v29 = vadd.f32 %v2244_v50, %v2135_v3  ;;  %10541 = vmatpush3.bf16.msra.mxu1 %v11544_v39  ;;  %10569 = vmatpush3.bf16.msra.mxu0 %v12641_v10  ;;  %v11546_v10 = vld [vmem:[%s14382_s3 + $0x228] sm:$0xff]   ;;  %v13100_v3 = vld [vmem:[%s14382_s3 + $0x30] sm:$0xff]   ;;  %v11570_v50 = vld [vmem:[%s14382_s3 + $0xf8] sm:$0xff]  }
 0x1dd   :  { %v10278_v61 = vpop.f32.mrf.mxu1  ;;  %10542 = vmatprep.subr.bf16.mxu1 %v11792_v0  ;;  %10570 = vmatprep.subr.bf16.mxu0 %v11792_v0 }
 0x1de   :  { %10556 = vmatprep.mubr.msk.bf16.mxu1 %vm11794_vm2, %v11792_v0  ;;  %v12977_v31 = vadd.f32 %v2361_v19, %v2251_v29  ;;  %v11568_v29 = vld [vmem:[#allocation2 + $0xb0] sm:$0xff]  }
 0x1df   :  { %v2247_v32 = vpop.f32.mrf.mxu1  ;;  %v13161_v61 = vld [vmem:[%s14382_s3 + $0x10] sm:$0xff]  }
 0x1e0   :  { %v2252_v33 = vadd.f32 %v2247_v32, %v2136_v14  ;;  %10543 = vmatpush3.bf16.msra.mxu1 %v11545_v30  ;;  %10571 = vmatpush3.bf16.msra.mxu0 %v12657_v22  ;;  %v11549_v22 = vld [vmem:[%s14382_s3 + $0x218] sm:$0xff]  }
 0x1e1   :  { %v10279_v36 = vpop.f32.mrf.mxu1  ;;  %10544 = vmatprep.subr.bf16.mxu1 %v11792_v0  ;;  %10572 = vmatprep.subr.bf16.mxu0 %v11792_v0 }
 0x1e2   :  { %v12985_v37 = vadd.f32 %v2364_v24, %v2252_v33  ;;  %v13134_v24 = vld [vmem:[%s14382_s3 + $0x20] sm:$0xff]   ;;  %v11574_v36 = vld [vmem:[%s14382_s3 + $0xe8] sm:$0xff]  }
 0x1e4   :  { %10545 = vmatpush3.bf16.msra.mxu1 %v11546_v10  ;;  %10573 = vmatpush3.bf16.msra.mxu0 %v12675_v34  ;;  %v13174_v10 = vld [vmem:[%s14382_s3 + $0x8] sm:$0xff]  }
 0x1e5   :  { %10546 = vmatprep.subr.bf16.mxu1 %v11792_v0  ;;  %10574 = vmatprep.subr.bf16.mxu0 %v11792_v0 }
 0x1e8   :  { %10547 = vmatpush3.bf16.msra.mxu1 %v11547_v4  ;;  %10575 = vmatpush3.bf16.msra.mxu0 %v12690_v43  ;;  %v13185_v4 = vld [vmem:[%s14382_s3] sm:$0xff]  }
 0x1e9   :  { %10548 = vmatprep.subr.bf16.mxu1 %v11792_v0  ;;  %10600 = vmatprep.subr.bf16.mxu0 %v11792_v0 }
 0x1eb   :  { %v12999_v34 = vpop.f32.mrf.mxu0  ;;  %10577 = vmatmul.mubr.bf16.vlgmr.msra.gmra.mxu0 %v11548_v38  ;;  %v13196_v38 = vld [vmem:[%s14382_s3 + $0xb8] sm:$0xff]  }
 0x1ec   :  { %10549 = vmatpush3.bf16.msra.mxu1 %v11549_v22  ;;  %10601 = vmatpush3.bf16.msra.mxu0 %v12879_v54  ;;  %v11576_v22 = vld [vmem:[%s14382_s3 + $0xe0] sm:$0xff]  }
 0x1ed   :  { %v10338_v43 = vpop.f32.mrf.mxu0  ;;  %10550 = vmatprep.subr.bf16.mxu1 %v11792_v0  ;;  %10602 = vmatprep.subr.bf16.mxu0 %v11792_v0 }
 0x1ee   :  { %10616 = vmatprep.mubr.msk.bf16.mxu0 %vm11794_vm2, %v11792_v0 }
 0x1ef   :  { %v13009_v41 = vpop.f32.mrf.mxu0 }
 0x1f0   :  { %10551 = vmatpush3.bf16.msra.mxu1 %v11550_v40  ;;  %10603 = vmatpush3.bf16.msra.mxu0 %v12892_v62  ;;  %v11559_v62 = vld [vmem:[#allocation2 + $0x68] sm:$0xff]  }
 0x1f1   :  { %v10339_v45 = vpop.f32.mrf.mxu0  ;;  %10552 = vmatprep.subr.bf16.mxu1 %v11792_v0  ;;  %10604 = vmatprep.subr.bf16.mxu0 %v11792_v0  ;;  %v11577_v40 = vld [vmem:[#allocation2 + $0xa8] sm:$0xff]  }
 0x1f2   :  { %v11581_v45 = vld [vmem:[%s14382_s3 + $0xd0] sm:$0xff]  }
 0x1f4   :  { %10553 = vmatpush3.bf16.msra.mxu1 %v11551_v42  ;;  %10605 = vmatpush3.bf16.msra.mxu0 %v12907_v8  ;;  %v13208_v42 = vld [vmem:[%s14382_s3 + $0xb0] sm:$0xff]  }
 0x1f5   :  { %10554 = vmatprep.subr.bf16.mxu1 %v11792_v0  ;;  %10606 = vmatprep.subr.bf16.mxu0 %v11792_v0 }
 0x1f8   :  { %10555 = vmatpush3.bf16.msra.mxu1 %v11552_v46  ;;  %10607 = vmatpush3.bf16.msra.mxu0 %v12918_v15  ;;  %v13117_v15 = vld [vmem:[%s14382_s3 + $0x28] sm:$0xff]  }
 0x1f9   :  { %10580 = vmatprep.subr.bf16.mxu1 %v11792_v0  ;;  %10608 = vmatprep.subr.bf16.mxu0 %v11792_v0 }
 0x1fb   :  { %v2478_v48 = vpop.f32.mrf.mxu1  ;;  %10557 = vmatmul.mubr.bf16.vlgmr.msra.gmra.mxu1 %v11553_v47 }
 0x1fc   :  { %10581 = vmatpush3.bf16.msra.mxu1 %v12646_v11  ;;  %10609 = vmatpush3.bf16.msra.mxu0 %v12929_v17  ;;  %v13045_v11 = vld [vmem:[%s14382_s3 + $0x78] sm:$0xff]   ;;  %v2485_v58 = vadd.f32 %v2478_v48, %v12977_v31  ;;  %v11572_v31 = vld [vmem:[%s14382_s3 + $0xf0] sm:$0xff]  }
 0x1fd   :  { %v10318_v49 = vpop.f32.mrf.mxu1  ;;  %10582 = vmatprep.subr.bf16.mxu1 %v11792_v0  ;;  %10610 = vmatprep.subr.bf16.mxu0 %v11792_v0 }
 0x1fe   :  { %10596 = vmatprep.mubr.msk.bf16.mxu1 %vm11794_vm2, %v11792_v0 }
 0x1ff   :  { %v2481_v51 = vpop.f32.mrf.mxu1 }
 0x200   :  { %10583 = vmatpush3.bf16.msra.mxu1 %v12662_v23  ;;  %10611 = vmatpush3.bf16.msra.mxu0 %v12938_v20  ;;  %v11554_v23 = vld [vmem:[#allocation2 + $0xa0] sm:$0xff]   ;;  %v2486_v63 = vadd.f32 %v2481_v51, %v12985_v37  ;;  %v13222_v51 = vld [vmem:[%s14382_s3 + $0xa8] sm:$0xff]  }
 0x201   :  { %v10319_v54 = vpop.f32.mrf.mxu1  ;;  %10584 = vmatprep.subr.bf16.mxu1 %v11792_v0  ;;  %10612 = vmatprep.subr.bf16.mxu0 %v11792_v0 }
 0x202   :  { %v2602_v9 = vadd.f32 %v13009_v41, %v2486_v63  ;;  %v11583_v54 = vld [vmem:[%s14382_s3 + $0xc8] sm:$0xff]   ;;  %v13255_v63 = vld [vmem:[%s14382_s3 + $0x90] sm:$0xff]  }
 0x204   :  { %10585 = vmatpush3.bf16.msra.mxu1 %v12680_v35  ;;  %10613 = vmatpush3.bf16.msra.mxu0 %v12949_v27  ;;  %v13139_v27 = vld [vmem:[%s14382_s3 + $0x40] sm:$0xff]  }
 0x205   :  { %10586 = vmatprep.subr.bf16.mxu1 %v11792_v0  ;;  %10614 = vmatprep.subr.bf16.mxu0 %v11792_v0 }
 0x208   :  { %10587 = vmatpush3.bf16.msra.mxu1 %v12695_v44  ;;  %10615 = vmatpush3.bf16.msra.mxu0 %v12958_v26  ;;  %v13054_v44 = vld [vmem:[%s14382_s3 + $0x70] sm:$0xff]  }
 0x209   :  { %10588 = vmatprep.subr.bf16.mxu1 %v11792_v0  ;;  %10640 = vmatprep.subr.bf16.mxu0 %v11792_v0 }
 0x20b   :  { %v2828_v35 = vpop.f32.mrf.mxu0  ;;  %10617 = vmatmul.mubr.bf16.vlgmr.msra.gmra.mxu0 %v11554_v23 }
 0x20c   :  { %10589 = vmatpush3.bf16.msra.mxu1 %v12708_v52  ;;  %10641 = vmatpush3.bf16.msra.mxu0 %v13045_v11  ;;  %v13065_v52 = vld [vmem:[%s14382_s3 + $0x68] sm:$0xff]  }
 0x20d   :  { %v10378_v55 = vpop.f32.mrf.mxu0  ;;  %10590 = vmatprep.subr.bf16.mxu1 %v11792_v0  ;;  %10642 = vmatprep.subr.bf16.mxu0 %v11792_v0 }
 0x20e   :  { %10656 = vmatprep.mubr.msk.bf16.mxu0 %vm11794_vm2, %v11792_v0  ;;  %v11585_v55 = vld [vmem:[%s14382_s3 + $0xc0] sm:$0xff]  }
 0x20f   :  { %v2831_v56 = vpop.f32.mrf.mxu0 }
 0x210   :  { %10591 = vmatpush3.bf16.msra.mxu1 %v12720_v59  ;;  %10643 = vmatpush3.bf16.msra.mxu0 %v13054_v44  ;;  %v13074_v59 = vld [vmem:[%s14382_s3 + $0x60] sm:$0xff]  }
 0x211   :  { %v10379_v57 = vpop.f32.mrf.mxu0  ;;  %10592 = vmatprep.subr.bf16.mxu1 %v11792_v0  ;;  %10644 = vmatprep.subr.bf16.mxu0 %v11792_v0 }
 0x212   :  { %v11588_v57 = vld [vmem:[%s14382_s3 + $0x178] sm:$0xff]  }
 0x214   :  { %10593 = vmatpush3.bf16.msra.mxu1 %v12734_v5  ;;  %10645 = vmatpush3.bf16.msra.mxu0 %v13065_v52  ;;  %v13084_v5 = vld [vmem:[%s14382_s3 + $0x38] sm:$0xff]  }
 0x215   :  { %10594 = vmatprep.subr.bf16.mxu1 %v11792_v0  ;;  %10646 = vmatprep.subr.bf16.mxu0 %v11792_v0 }
 0x218   :  { %10595 = vmatpush3.bf16.msra.mxu1 %v12746_v13  ;;  %10647 = vmatpush3.bf16.msra.mxu0 %v13074_v59  ;;  %v2601_v13 = vadd.f32 %v12999_v34, %v2485_v58  ;;  %v11579_v34 = vld [vmem:[%s14382_s3 + $0xd8] sm:$0xff]   ;;  %v11586_v58 = vld [vmem:[#allocation2 + $0xe0] sm:$0xff]  }
 0x219   :  { %10620 = vmatprep.subr.bf16.mxu1 %v11792_v0  ;;  %10648 = vmatprep.subr.bf16.mxu0 %v11792_v0 }
 0x21b   :  { %v2711_v2 = vpop.f32.mrf.mxu1  ;;  %10597 = vmatmul.mubr.bf16.vlgmr.msra.gmra.mxu1 %v11559_v62 }
 0x21c   :  { %v2718_v1 = vadd.f32 %v2711_v2, %v2601_v13  ;;  %10621 = vmatpush3.bf16.msra.mxu1 %v13084_v5  ;;  %10649 = vmatpush3.bf16.msra.mxu0 %v13089_v60  ;;  %v11590_v13 = vld [vmem:[%s14382_s3 + $0x170] sm:$0xff]  }
 0x21d   :  { %v10358_v7 = vpop.f32.mrf.mxu1  ;;  %10622 = vmatprep.subr.bf16.mxu1 %v11792_v0  ;;  %10650 = vmatprep.subr.bf16.mxu0 %v11792_v0 }
 0x21e   :  { %v2835_v8 = vadd.f32 %v2828_v35, %v2718_v1  ;;  %10636 = vmatprep.mubr.msk.bf16.mxu1 %vm11794_vm2, %v11792_v0  ;;  %v13268_v7 = vld [vmem:[%s14382_s3 + $0x88] sm:$0xff]  }
 0x21f   :  { %v2714_v12 = vpop.f32.mrf.mxu1 }
 0x220   :  { %v2719_v14 = vadd.f32 %v2714_v12, %v2602_v9  ;;  %10623 = vmatpush3.bf16.msra.mxu1 %v13100_v3  ;;  %10651 = vmatpush3.bf16.msra.mxu0 %v13105_v6  ;;  %v2837_v19 = vmax.f32 %v2835_v8, 0.0  ;;  %v11592_v8 = vld [vmem:[%s14382_s3 + $0x168] sm:$0xff]   ;;  %v13279_v12 = vld [vmem:[%s14382_s3 + $0x80] sm:$0xff]  }
 0x221   :  { %v10359_v17 = vpop.f32.mrf.mxu1  ;;  %10624 = vmatprep.subr.bf16.mxu1 %v11792_v0  ;;  %10652 = vmatprep.subr.bf16.mxu0 %v11792_v0 }
 0x222   :  { %v2836_v20 = vadd.f32 %v2831_v56, %v2719_v14  ;;  %v2839_v25 = vmax.f32 %v13127_v18, %v2837_v19  ;;  %v13244_v56 = vld [vmem:[%s14382_s3 + $0x98] sm:$0xff]   ;;  %v11594_v14 = vld [vmem:[%s14382_s3 + $0x160] sm:$0xff]  }
 0x223   :  { %v11596_v17 = vld [vmem:[%s14382_s3 + $0x138] sm:$0xff]  }
 0x224   :  { %v2838_v21 = vmax.f32 %v2836_v20, 0.0  ;;  %10625 = vmatpush3.bf16.msra.mxu1 %v13117_v15  ;;  %10653 = vmatpush3.bf16.msra.mxu0 %v13122_v16  ;;  %v11597_v19 = vld [vmem:[%s14382_s3 + $0x158] sm:$0xff]  }
 0x225   :  { %10626 = vmatprep.subr.bf16.mxu1 %v11792_v0  ;;  %10654 = vmatprep.subr.bf16.mxu0 %v11792_v0  ;;  %v11595_v20 = vld [vmem:[#allocation2 + $0xb8] sm:$0xff]  }
 0x226   :  { %v2840_v26 = vmax.f32 %v13127_v18, %v2838_v21 }
 0x228   :  { %v9362_v39 = vpack.c.bf16 %v2840_v26, %v2839_v25  ;;  %10627 = vmatpush3.bf16.msra.mxu1 %v13134_v24  ;;  %10655 = vmatpush3.bf16.msra.mxu0 %v13139_v27  ;;  %v11598_v26 = vld [vmem:[%s14382_s3 + $0x130] sm:$0xff]  }
 0x229   :  { %10628 = vmatprep.subr.bf16.mxu1 %v11792_v0  ;;  %10680 = vmatprep.subr.bf16.mxu0 %v11792_v0 }
 0x22a   :  { %9363 = vst [vmem:[#allocation3] sm:$0xff] %v9362_v39   ;;  %v11599_v39 = vld [vmem:[%s14382_s3 + $0x150] sm:$0xff]  }
 0x22b   :  { %v3074_v30 = vpop.f32.mrf.mxu0  ;;  %10657 = vmatmul.mubr.bf16.vlgmr.msra.gmra.mxu0 %v11568_v29 }
 0x22c   :  { %10629 = vmatpush3.bf16.msra.mxu1 %v13150_v28  ;;  %10681 = vmatpush3.bf16.msra.mxu0 %v11570_v50 }
 0x22d   :  { %v10418_v32 = vpop.f32.mrf.mxu0  ;;  %10630 = vmatprep.subr.bf16.mxu1 %v11792_v0  ;;  %10682 = vmatprep.subr.bf16.mxu0 %v11792_v0 }
 0x22e   :  { %10696 = vmatprep.mubr.msk.bf16.mxu0 %vm11794_vm2, %v11792_v0  ;;  %v11600_v32 = vld [vmem:[%s14382_s3 + $0x128] sm:$0xff]  }
 0x22f   :  { %v3077_v33 = vpop.f32.mrf.mxu0 }
 0x230   :  { %10631 = vmatpush3.bf16.msra.mxu1 %v13161_v61  ;;  %10683 = vmatpush3.bf16.msra.mxu0 %v11572_v31 }
 0x231   :  { %v10419_v37 = vpop.f32.mrf.mxu0  ;;  %10632 = vmatprep.subr.bf16.mxu1 %v11792_v0  ;;  %10684 = vmatprep.subr.bf16.mxu0 %v11792_v0 }
 0x234   :  { %10633 = vmatpush3.bf16.msra.mxu1 %v13174_v10  ;;  %10685 = vmatpush3.bf16.msra.mxu0 %v11574_v36 }
 0x235   :  { %10634 = vmatprep.subr.bf16.mxu1 %v11792_v0  ;;  %10686 = vmatprep.subr.bf16.mxu0 %v11792_v0 }
 0x238   :  { %10635 = vmatpush3.bf16.msra.mxu1 %v13185_v4  ;;  %10687 = vmatpush3.bf16.msra.mxu0 %v11576_v22  ;;  %v11602_v22 = vld [vmem:[%s14382_s3 + $0x120] sm:$0xff]  }
 0x239   :  { %10660 = vmatprep.subr.bf16.mxu1 %v11792_v0  ;;  %10688 = vmatprep.subr.bf16.mxu0 %v11792_v0 }
 0x23b   :  { %v2958_v43 = vpop.f32.mrf.mxu1  ;;  %10637 = vmatmul.mubr.bf16.vlgmr.msra.gmra.mxu1 %v11577_v40  ;;  %v11605_v40 = vld [vmem:[%s14382_s3 + $0x118] sm:$0xff]  }
 0x23c   :  { %v2965_v41 = vadd.f32 %v12874_v53, %v2958_v43  ;;  %10661 = vmatpush3.bf16.msra.mxu1 %v13196_v38  ;;  %10689 = vmatpush3.bf16.msra.mxu0 %v11579_v34  ;;  %v11603_v34 = vld [vmem:[%s14382_s3 + $0x140] sm:$0xff]   ;;  %v11606_v43 = vld [vmem:[%s14382_s3 + $0x1f8] sm:$0xff]  }
 0x23d   :  { %v10398_v46 = vpop.f32.mrf.mxu1  ;;  %10662 = vmatprep.subr.bf16.mxu1 %v11792_v0  ;;  %10690 = vmatprep.subr.bf16.mxu0 %v11792_v0 }
 0x23e   :  { %10676 = vmatprep.mubr.msk.bf16.mxu1 %vm11794_vm2, %v11792_v0  ;;  %v3081_v47 = vadd.f32 %v3074_v30, %v2965_v41  ;;  %v11604_v41 = vld [vmem:[#allocation2 + $0xf0] sm:$0xff]  }
 0x23f   :  { %v2961_v48 = vpop.f32.mrf.mxu1  ;;  %v11607_v46 = vld [vmem:[%s14382_s3 + $0x110] sm:$0xff]  }
 0x240   :  { %v2966_v49 = vadd.f32 %v12874_v53, %v2961_v48  ;;  %10663 = vmatpush3.bf16.msra.mxu1 %v13208_v42  ;;  %10691 = vmatpush3.bf16.msra.mxu0 %v11581_v45  ;;  %v13233_v53 = vld [vmem:[%s14382_s3 + $0xa0] sm:$0xff]  }
 0x241   :  { %v10399_v23 = vpop.f32.mrf.mxu1  ;;  %10664 = vmatprep.subr.bf16.mxu1 %v11792_v0  ;;  %10692 = vmatprep.subr.bf16.mxu0 %v11792_v0 }
 0x242   :  { %v3082_v35 = vadd.f32 %v3077_v33, %v2966_v49  ;;  %v11601_v33 = vld [vmem:[%s14382_s3 + $0x148] sm:$0xff]  }
 0x243   :  { %v11610_v23 = vld [vmem:[%s14382_s3 + $0x1e8] sm:$0xff]  }
 0x244   :  { %10665 = vmatpush3.bf16.msra.mxu1 %v13222_v51  ;;  %10693 = vmatpush3.bf16.msra.mxu0 %v11583_v54  ;;  %v11609_v54 = vld [vmem:[%s14382_s3 + $0x108] sm:$0xff]  }
 0x245   :  { %10666 = vmatprep.subr.bf16.mxu1 %v11792_v0  ;;  %10694 = vmatprep.subr.bf16.mxu0 %v11792_v0 }
 0x248   :  { %10667 = vmatpush3.bf16.msra.mxu1 %v13233_v53  ;;  %10695 = vmatpush3.bf16.msra.mxu0 %v11585_v55  ;;  %v11611_v55 = vld [vmem:[%s14382_s3 + $0x100] sm:$0xff]  }
 0x249   :  { %10668 = vmatprep.subr.bf16.mxu1 %v11792_v0  ;;  %10720 = vmatprep.subr.bf16.mxu0 %v11792_v0 }
 0x24b   :  { %v3306_v62 = vpop.f32.mrf.mxu0  ;;  %10697 = vmatmul.mubr.bf16.vlgmr.msra.gmra.mxu0 %v11586_v58  ;;  %v11614_v58 = vld [vmem:[%s14382_s3 + $0x1b8] sm:$0xff]  }
 0x24c   :  { %10669 = vmatpush3.bf16.msra.mxu1 %v13244_v56  ;;  %10721 = vmatpush3.bf16.msra.mxu0 %v11588_v57  ;;  %v11612_v57 = vld [vmem:[%s14382_s3 + $0x1e0] sm:$0xff]  }
 0x24d   :  { %v10458_v2 = vpop.f32.mrf.mxu0  ;;  %10670 = vmatprep.subr.bf16.mxu1 %v11792_v0  ;;  %10722 = vmatprep.subr.bf16.mxu0 %v11792_v0 }
 0x24e   :  { %10736 = vmatprep.mubr.msk.bf16.mxu0 %vm11794_vm2, %v11792_v0 }
 0x24f   :  { %v3309_v1 = vpop.f32.mrf.mxu0 }
 0x250   :  { %10671 = vmatpush3.bf16.msra.mxu1 %v13255_v63  ;;  %10723 = vmatpush3.bf16.msra.mxu0 %v11590_v13  ;;  %v11613_v13 = vld [vmem:[#allocation2 + $0xe8] sm:$0xff]  }
 0x251   :  { %v10459_v9 = vpop.f32.mrf.mxu0  ;;  %10672 = vmatprep.subr.bf16.mxu1 %v11792_v0  ;;  %10724 = vmatprep.subr.bf16.mxu0 %v11792_v0 }
 0x252   :  { %v11617_v9 = vld [vmem:[%s14382_s3 + $0x1d0] sm:$0xff]  }
 0x254   :  { %10673 = vmatpush3.bf16.msra.mxu1 %v13268_v7  ;;  %10725 = vmatpush3.bf16.msra.mxu0 %v11592_v8  ;;  %v11616_v8 = vld [vmem:[%s14382_s3 + $0x1b0] sm:$0xff]  }
 0x255   :  { %10674 = vmatprep.subr.bf16.mxu1 %v11792_v0  ;;  %10726 = vmatprep.subr.bf16.mxu0 %v11792_v0 }
 0x258   :  { %10675 = vmatpush3.bf16.msra.mxu1 %v13279_v12  ;;  %10727 = vmatpush3.bf16.msra.mxu0 %v11594_v14 }
 0x259   :  { %10700 = vmatprep.subr.bf16.mxu1 %v11792_v0  ;;  %10728 = vmatprep.subr.bf16.mxu0 %v11792_v0 }
 0x25b   :  { %v3190_v21 = vpop.f32.mrf.mxu1  ;;  %10677 = vmatmul.mubr.bf16.vlgmr.msra.gmra.mxu1 %v11595_v20 }
 0x25c   :  { %v3197_v25 = vadd.f32 %v3190_v21, %v3081_v47  ;;  %10701 = vmatpush3.bf16.msra.mxu1 %v11596_v17  ;;  %10729 = vmatpush3.bf16.msra.mxu0 %v11597_v19  ;;  %v11608_v47 = vld [vmem:[%s14382_s3 + $0x1f0] sm:$0xff]   ;;  %v11618_v21 = vld [vmem:[%s14382_s3 + $0x1a8] sm:$0xff]  }
 0x25d   :  { %v10438_v50 = vpop.f32.mrf.mxu1  ;;  %10702 = vmatprep.subr.bf16.mxu1 %v11792_v0  ;;  %10730 = vmatprep.subr.bf16.mxu0 %v11792_v0 }
 0x25e   :  { %10716 = vmatprep.mubr.msk.bf16.mxu1 %vm11794_vm2, %v11792_v0  ;;  %v3313_v29 = vadd.f32 %v3306_v62, %v3197_v25  ;;  %v11615_v62 = vld [vmem:[%s14382_s3 + $0x1d8] sm:$0xff]   ;;  %v11619_v25 = vld [vmem:[%s14382_s3 + $0x1c8] sm:$0xff]   ;;  %v11620_v50 = vld [vmem:[%s14382_s3 + $0x1a0] sm:$0xff]  }
 0x25f   :  { %v3193_v30 = vpop.f32.mrf.mxu1 }
 0x260   :  { %v3198_v31 = vadd.f32 %v3193_v30, %v3082_v35  ;;  %10703 = vmatpush3.bf16.msra.mxu1 %v11598_v26  ;;  %10731 = vmatpush3.bf16.msra.mxu0 %v11599_v39  ;;  %v11623_v30 = vld [vmem:[%s14382_s3 + $0x198] sm:$0xff]  }
 0x261   :  { %v10439_v36 = vpop.f32.mrf.mxu1  ;;  %10704 = vmatprep.subr.bf16.mxu1 %v11792_v0  ;;  %10732 = vmatprep.subr.bf16.mxu0 %v11792_v0 }
 0x262   :  { %v3314_v37 = vadd.f32 %v3309_v1, %v3198_v31  ;;  %v11622_v31 = vld [vmem:[#allocation2 + $0x120] sm:$0xff]  }
 0x264   :  { %10705 = vmatpush3.bf16.msra.mxu1 %v11600_v32  ;;  %10733 = vmatpush3.bf16.msra.mxu0 %v11601_v33  ;;  %v11624_v33 = vld [vmem:[%s14382_s3 + $0x190] sm:$0xff]  }
 0x265   :  { %10706 = vmatprep.subr.bf16.mxu1 %v11792_v0  ;;  %10734 = vmatprep.subr.bf16.mxu0 %v11792_v0 }
 0x268   :  { %10707 = vmatpush3.bf16.msra.mxu1 %v11602_v22  ;;  %10735 = vmatpush3.bf16.msra.mxu0 %v11603_v34  ;;  %v11626_v34 = vld [vmem:[%s14382_s3 + $0x180] sm:$0xff]  }
 0x269   :  { %10708 = vmatprep.subr.bf16.mxu1 %v11792_v0  ;;  %10760 = vmatprep.subr.bf16.mxu0 %v11792_v0 }
 0x26b   :  { %v3538_v45 = vpop.f32.mrf.mxu0  ;;  %10737 = vmatmul.mubr.bf16.vlgmr.msra.gmra.mxu0 %v11604_v41  ;;  %v11629_v41 = vld [vmem:[%s14382_s3 + $0x230] sm:$0xff]  }
 0x26c   :  { %10709 = vmatpush3.bf16.msra.mxu1 %v11605_v40  ;;  %10761 = vmatpush3.bf16.msra.mxu0 %v11606_v43  ;;  %v11627_v40 = vld [vmem:[#allocation2 + $0x118] sm:$0xff]  }
 0x26d   :  { %v10498_v48 = vpop.f32.mrf.mxu0  ;;  %10710 = vmatprep.subr.bf16.mxu1 %v11792_v0  ;;  %10762 = vmatprep.subr.bf16.mxu0 %v11792_v0 }
 0x26e   :  { %10776 = vmatprep.mubr.msk.bf16.mxu0 %vm11794_vm2, %v11792_v0 }
 0x26f   :  { %v3541_v49 = vpop.f32.mrf.mxu0 }
 0x270   :  { %10711 = vmatpush3.bf16.msra.mxu1 %v11607_v46  ;;  %10763 = vmatpush3.bf16.msra.mxu0 %v11608_v47 }
 0x271   :  { %v10499_v35 = vpop.f32.mrf.mxu0  ;;  %10712 = vmatprep.subr.bf16.mxu1 %v11792_v0  ;;  %10764 = vmatprep.subr.bf16.mxu0 %v11792_v0 }
 0x272   :  { %v11634_v35 = vld [vmem:[%s14382_s3 + $0x210] sm:$0xff]  }
 0x274   :  { %10713 = vmatpush3.bf16.msra.mxu1 %v11609_v54  ;;  %10765 = vmatpush3.bf16.msra.mxu0 %v11610_v23  ;;  %v11631_v54 = vld [vmem:[%s14382_s3 + $0x220] sm:$0xff]   ;;  %v11632_v23 = vld [vmem:[#allocation2 + $0x150] sm:$0xff]  }
 0x275   :  { %10714 = vmatprep.subr.bf16.mxu1 %v11792_v0  ;;  %10766 = vmatprep.subr.bf16.mxu0 %v11792_v0 }
 0x278   :  { %10715 = vmatpush3.bf16.msra.mxu1 %v11611_v55  ;;  %10767 = vmatpush3.bf16.msra.mxu0 %v11612_v57 }
 0x279   :  { %10740 = vmatprep.subr.bf16.mxu1 %v11792_v0  ;;  %10768 = vmatprep.subr.bf16.mxu0 %v11792_v0 }
 0x27b   :  { %v3422_v2 = vpop.f32.mrf.mxu1  ;;  %10717 = vmatmul.mubr.bf16.vlgmr.msra.gmra.mxu1 %v11613_v13 }
 0x27c   :  { %v3429_v1 = vadd.f32 %v3422_v2, %v3313_v29  ;;  %10741 = vmatpush3.bf16.msra.mxu1 %v11614_v58  ;;  %10769 = vmatpush3.bf16.msra.mxu0 %v11615_v62  ;;  %v11621_v29 = vld [vmem:[%s14382_s3 + $0x1c0] sm:$0xff]   ;;  %v11643_v2 = vld [vmem:[#allocation2 + $0x158] sm:$0xff]  }
 0x27d   :  { %v10478_v14 = vpop.f32.mrf.mxu1  ;;  %10742 = vmatprep.subr.bf16.mxu1 %v11792_v0  ;;  %10770 = vmatprep.subr.bf16.mxu0 %v11792_v0  ;;  %v11636_v58 = vld [vmem:[%s14382_s3 + $0x200] sm:$0xff]  }
 0x27e   :  { %10756 = vmatprep.mubr.msk.bf16.mxu1 %vm11794_vm2, %v11792_v0  ;;  %v3545_v17 = vadd.f32 %v3538_v45, %v3429_v1 }
 0x27f   :  { %v3425_v19 = vpop.f32.mrf.mxu1 }
 0x280   :  { %v3430_v20 = vadd.f32 %v3425_v19, %v3314_v37  ;;  %10743 = vmatpush3.bf16.msra.mxu1 %v11616_v8  ;;  %10771 = vmatpush3.bf16.msra.mxu0 %v11617_v9  ;;  %v13557_v19 = vld [vmem:[%s14382_s3 + $0x30] sm:$0xff]  }
 0x281   :  { %v10479_v26 = vpop.f32.mrf.mxu1  ;;  %10744 = vmatprep.subr.bf16.mxu1 %v11792_v0  ;;  %10772 = vmatprep.subr.bf16.mxu0 %v11792_v0 }
 0x282   :  { %v3546_v39 = vadd.f32 %v3541_v49, %v3430_v20  ;;  %v13562_v20 = vld [vmem:[%s14382_s3 + $0x50] sm:$0xff]  }
 0x284   :  { %10745 = vmatpush3.bf16.msra.mxu1 %v11618_v21  ;;  %10773 = vmatpush3.bf16.msra.mxu0 %v11619_v25 }
 0x285   :  { %10746 = vmatprep.subr.bf16.mxu1 %v11792_v0  ;;  %10774 = vmatprep.subr.bf16.mxu0 %v11792_v0 }
 0x288   :  { %10747 = vmatpush3.bf16.msra.mxu1 %v11620_v50  ;;  %10775 = vmatpush3.bf16.msra.mxu0 %v11621_v29 }
 0x289   :  { %10748 = vmatprep.subr.bf16.mxu1 %v11792_v0  ;;  %10800 = vmatprep.subr.bf16.mxu0 %v11792_v0 }
 0x28b   :  { %v3770_v32 = vpop.f32.mrf.mxu0  ;;  %10777 = vmatmul.mubr.bf16.vlgmr.msra.gmra.mxu0 %v11622_v31  ;;  %v13575_v31 = vld [vmem:[%s14382_s3 + $0x28] sm:$0xff]  }
 0x28c   :  { %10749 = vmatpush3.bf16.msra.mxu1 %v11623_v30  ;;  %10801 = vmatpush3.bf16.msra.mxu0 %v13084_v5  ;;  %v11625_v5 = vld [vmem:[%s14382_s3 + $0x188] sm:$0xff]  }
 0x28d   :  { %v10538_v36 = vpop.f32.mrf.mxu0  ;;  %10750 = vmatprep.subr.bf16.mxu1 %v11792_v0  ;;  %10802 = vmatprep.subr.bf16.mxu0 %v11792_v0 }
 0x28e   :  { %10816 = vmatprep.mubr.msk.bf16.mxu0 %vm11794_vm2, %v11792_v0 }
 0x28f   :  { %v3773_v37 = vpop.f32.mrf.mxu0 }
 0x290   :  { %10751 = vmatpush3.bf16.msra.mxu1 %v11624_v33  ;;  %10803 = vmatpush3.bf16.msra.mxu0 %v13100_v3  ;;  %v11628_v3 = vld [vmem:[%s14382_s3 + $0x238] sm:$0xff]  }
 0x291   :  { %v10539_v22 = vpop.f32.mrf.mxu0  ;;  %10752 = vmatprep.subr.bf16.mxu1 %v11792_v0  ;;  %10804 = vmatprep.subr.bf16.mxu0 %v11792_v0 }
 0x294   :  { %10753 = vmatpush3.bf16.msra.mxu1 %v11625_v5  ;;  %10805 = vmatpush3.bf16.msra.mxu0 %v13117_v15 }
 0x295   :  { %10754 = vmatprep.subr.bf16.mxu1 %v11792_v0  ;;  %10806 = vmatprep.subr.bf16.mxu0 %v11792_v0 }
 0x298   :  { %10755 = vmatpush3.bf16.msra.mxu1 %v11626_v34  ;;  %10807 = vmatpush3.bf16.msra.mxu0 %v13134_v24 }
 0x299   :  { %10780 = vmatprep.subr.bf16.mxu1 %v11792_v0  ;;  %10808 = vmatprep.subr.bf16.mxu0 %v11792_v0 }
 0x29b   :  { %v3654_v15 = vpop.f32.mrf.mxu1  ;;  %10757 = vmatmul.mubr.bf16.vlgmr.msra.gmra.mxu1 %v11627_v40  ;;  %v13596_v40 = vld [vmem:[%s14382_s3 + $0x40] sm:$0xff]  }
 0x29c   :  { %v3661_v43 = vadd.f32 %v3654_v15, %v3545_v17  ;;  %10781 = vmatpush3.bf16.msra.mxu1 %v11628_v3  ;;  %10809 = vmatpush3.bf16.msra.mxu0 %v13150_v28  ;;  %v11630_v28 = vld [vmem:[%s14382_s3 + $0x228] sm:$0xff]   ;;  %v13591_v3 = vld [vmem:[%s14382_s3 + $0x20] sm:$0xff]  }
 0x29d   :  { %v10518_v24 = vpop.f32.mrf.mxu1  ;;  %10782 = vmatprep.subr.bf16.mxu1 %v11792_v0  ;;  %10810 = vmatprep.subr.bf16.mxu0 %v11792_v0 }
 0x29e   :  { %10796 = vmatprep.mubr.msk.bf16.mxu1 %vm11794_vm2, %v11792_v0  ;;  %v13428_v45 = vadd.f32 %v3770_v32, %v3661_v43  ;;  %v13580_v32 = vld [vmem:[%s14382_s3 + $0x48] sm:$0xff]   ;;  %v13605_v24 = vld [vmem:[%s14382_s3 + $0x18] sm:$0xff]  }
 0x29f   :  { %v3657_v46 = vpop.f32.mrf.mxu1 }
 0x2a0   :  { %v3662_v47 = vadd.f32 %v3657_v46, %v3546_v39  ;;  %10783 = vmatpush3.bf16.msra.mxu1 %v11629_v41  ;;  %10811 = vmatpush3.bf16.msra.mxu0 %v13161_v61  ;;  %v11633_v61 = vld [vmem:[%s14382_s3 + $0x218] sm:$0xff]   ;;  %v11652_v46 = vld [vmem:[#allocation2 + $0xc8] sm:$0xff]  }
 0x2a1   :  { %v10519_v48 = vpop.f32.mrf.mxu1  ;;  %10784 = vmatprep.subr.bf16.mxu1 %v11792_v0  ;;  %10812 = vmatprep.subr.bf16.mxu0 %v11792_v0 }
 0x2a2   :  { %v13436_v49 = vadd.f32 %v3773_v37, %v3662_v47  ;;  %v13624_v48 = vld [vmem:[%s14382_s3 + $0xf0] sm:$0xff]  }
 0x2a4   :  { %10785 = vmatpush3.bf16.msra.mxu1 %v11630_v28  ;;  %10813 = vmatpush3.bf16.msra.mxu0 %v13174_v10  ;;  %v13619_v28 = vld [vmem:[%s14382_s3 + $0x10] sm:$0xff]  }
 0x2a5   :  { %10786 = vmatprep.subr.bf16.mxu1 %v11792_v0  ;;  %10814 = vmatprep.subr.bf16.mxu0 %v11792_v0 }
 0x2a8   :  { %10787 = vmatpush3.bf16.msra.mxu1 %v11631_v54  ;;  %10815 = vmatpush3.bf16.msra.mxu0 %v13185_v4 }
 0x2a9   :  { %10788 = vmatprep.subr.bf16.mxu1 %v11792_v0  ;;  %10840 = vmatprep.subr.bf16.mxu0 %v11792_v0 }
 0x2ab   :  { %v13450_v10 = vpop.f32.mrf.mxu0  ;;  %10817 = vmatmul.mubr.bf16.vlgmr.msra.gmra.mxu0 %v11632_v23  ;;  %v13640_v23 = vld [vmem:[%s14382_s3 + $0xe8] sm:$0xff]  }
 0x2ac   :  { %10789 = vmatpush3.bf16.msra.mxu1 %v11633_v61  ;;  %10841 = vmatpush3.bf16.msra.mxu0 %v13196_v38  ;;  %v11635_v38 = vld [vmem:[%s14382_s3 + $0x208] sm:$0xff]  }
 0x2ad   :  { %v10578_v4 = vpop.f32.mrf.mxu0  ;;  %10790 = vmatprep.subr.bf16.mxu1 %v11792_v0  ;;  %10842 = vmatprep.subr.bf16.mxu0 %v11792_v0  ;;  %v13635_v61 = vld [vmem:[%s14382_s3 + $0x8] sm:$0xff]  }
 0x2ae   :  { %10856 = vmatprep.mubr.msk.bf16.mxu0 %vm11794_vm2, %v11792_v0  ;;  %v13654_v4 = vld [vmem:[%s14382_s3 + $0xe0] sm:$0xff]  }
 0x2af   :  { %v13460_v55 = vpop.f32.mrf.mxu0 }
 0x2b0   :  { %10791 = vmatpush3.bf16.msra.mxu1 %v11634_v35  ;;  %10843 = vmatpush3.bf16.msra.mxu0 %v13208_v42  ;;  %v11637_v42 = vld [vmem:[#allocation2 + $0x128] sm:$0xff]   ;;  %v13649_v35 = vld [vmem:[%s14382_s3] sm:$0xff]  }
 0x2b1   :  { %v10579_v57 = vpop.f32.mrf.mxu0  ;;  %10792 = vmatprep.subr.bf16.mxu1 %v11792_v0  ;;  %10844 = vmatprep.subr.bf16.mxu0 %v11792_v0 }
 0x2b2   :  { %v11661_v57 = vld [vmem:[#allocation2 + $0xc0] sm:$0xff]  }
 0x2b4   :  { %10793 = vmatpush3.bf16.msra.mxu1 %v11635_v38  ;;  %10845 = vmatpush3.bf16.msra.mxu0 %v13222_v51  ;;  %v13668_v38 = vld [vmem:[%s14382_s3 + $0xd8] sm:$0xff]  }
 0x2b5   :  { %10794 = vmatprep.subr.bf16.mxu1 %v11792_v0  ;;  %10846 = vmatprep.subr.bf16.mxu0 %v11792_v0 }
 0x2b8   :  { %10795 = vmatpush3.bf16.msra.mxu1 %v11636_v58  ;;  %10847 = vmatpush3.bf16.msra.mxu0 %v13233_v53 }
 0x2b9   :  { %10820 = vmatprep.subr.bf16.mxu1 %v11792_v0  ;;  %10848 = vmatprep.subr.bf16.mxu0 %v11792_v0 }
 0x2bb   :  { %v3886_v62 = vpop.f32.mrf.mxu1  ;;  %10797 = vmatmul.mubr.bf16.vlgmr.msra.gmra.mxu1 %v11637_v42 }
 0x2bc   :  { %10821 = vmatpush3.bf16.msra.mxu1 %v13045_v11  ;;  %10849 = vmatpush3.bf16.msra.mxu0 %v13244_v56  ;;  %v13496_v11 = vld [vmem:[%s14382_s3 + $0x78] sm:$0xff]   ;;  %v3893_v9 = vadd.f32 %v3886_v62, %v13428_v45  ;;  %v13678_v62 = vld [vmem:[%s14382_s3 + $0xb0] sm:$0xff]  }
 0x2bd   :  { %v10558_v51 = vpop.f32.mrf.mxu1  ;;  %10822 = vmatprep.subr.bf16.mxu1 %v11792_v0  ;;  %10850 = vmatprep.subr.bf16.mxu0 %v11792_v0  ;;  %v13610_v45 = vld [vmem:[%s14382_s3 + $0xf8] sm:$0xff]  }
 0x2be   :  { %10836 = vmatprep.mubr.msk.bf16.mxu1 %vm11794_vm2, %v11792_v0  ;;  %v3895_v50 = vmax.f32 %v3893_v9, 0.0  ;;  %v13683_v51 = vld [vmem:[%s14382_s3 + $0xd0] sm:$0xff]   ;;  %v13723_v9 = vld [vmem:[%s14382_s3 + $0x98] sm:$0xff]  }
 0x2bf   :  { %v3889_v53 = vpop.f32.mrf.mxu1 }
 0x2c0   :  { %10823 = vmatpush3.bf16.msra.mxu1 %v13054_v44  ;;  %10851 = vmatpush3.bf16.msra.mxu0 %v13255_v63  ;;  %v11638_v44 = vld [vmem:[#allocation2 + $0x160] sm:$0xff]   ;;  %v3894_v14 = vadd.f32 %v3889_v53, %v13436_v49  ;;  %v3897_v5 = vmax.f32 %v13127_v18, %v3895_v50 }
 0x2c1   :  { %v10559_v13 = vpop.f32.mrf.mxu1  ;;  %10824 = vmatprep.subr.bf16.mxu1 %v11792_v0  ;;  %10852 = vmatprep.subr.bf16.mxu0 %v11792_v0 }
 0x2c2   :  { %v3896_v29 = vmax.f32 %v3894_v14, 0.0  ;;  %v11672_v14 = vld [vmem:[%s14382_s3 + $0x178] sm:$0xff]  }
 0x2c4   :  { %10825 = vmatpush3.bf16.msra.mxu1 %v13065_v52  ;;  %10853 = vmatpush3.bf16.msra.mxu0 %v13268_v7  ;;  %v3898_v22 = vmax.f32 %v13127_v18, %v3896_v29  ;;  %v13747_v29 = vld [vmem:[%s14382_s3 + $0x88] sm:$0xff]  }
 0x2c5   :  { %10826 = vmatprep.subr.bf16.mxu1 %v11792_v0  ;;  %10854 = vmatprep.subr.bf16.mxu0 %v11792_v0 }
 0x2c8   :  { %10827 = vmatpush3.bf16.msra.mxu1 %v13074_v59  ;;  %10855 = vmatpush3.bf16.msra.mxu0 %v13279_v12  ;;  %v13505_v59 = vld [vmem:[%s14382_s3 + $0x70] sm:$0xff]   ;;  %v13534_v12 = vld [vmem:[%s14382_s3 + $0x38] sm:$0xff]  }
 0x2c9   :  { %10828 = vmatprep.subr.bf16.mxu1 %v11792_v0  ;;  %10880 = vmatprep.subr.bf16.mxu0 %v11792_v0 }
 0x2cb   :  { %v4046_v52 = vpop.f32.mrf.mxu0  ;;  %10857 = vmatmul.mubr.bf16.vlgmr.msra.gmra.mxu0 %v11638_v44 }
 0x2cc   :  { %10829 = vmatpush3.bf16.msra.mxu1 %v13089_v60  ;;  %10881 = vmatpush3.bf16.msra.mxu0 %v13496_v11  ;;  %v13516_v60 = vld [vmem:[%s14382_s3 + $0x68] sm:$0xff]  }
 0x2cd   :  { %v10618_v56 = vpop.f32.mrf.mxu0  ;;  %10830 = vmatprep.subr.bf16.mxu1 %v11792_v0  ;;  %10882 = vmatprep.subr.bf16.mxu0 %v11792_v0 }
 0x2ce   :  { %10896 = vmatprep.mubr.msk.bf16.mxu0 %vm11794_vm2, %v11792_v0  ;;  %v13695_v56 = vld [vmem:[%s14382_s3 + $0xa8] sm:$0xff]  }
 0x2cf   :  { %v4049_v63 = vpop.f32.mrf.mxu0 }
 0x2d0   :  { %10831 = vmatpush3.bf16.msra.mxu1 %v13105_v6  ;;  %10883 = vmatpush3.bf16.msra.mxu0 %v13505_v59  ;;  %v13525_v6 = vld [vmem:[%s14382_s3 + $0x60] sm:$0xff]  }
 0x2d1   :  { %v10619_v7 = vpop.f32.mrf.mxu0  ;;  %10832 = vmatprep.subr.bf16.mxu1 %v11792_v0  ;;  %10884 = vmatprep.subr.bf16.mxu0 %v11792_v0 }
 0x2d4   :  { %10833 = vmatpush3.bf16.msra.mxu1 %v13122_v16  ;;  %10885 = vmatpush3.bf16.msra.mxu0 %v13516_v60  ;;  %v13539_v16 = vld [vmem:[%s14382_s3 + $0x58] sm:$0xff]  }
 0x2d5   :  { %10834 = vmatprep.subr.bf16.mxu1 %v11792_v0  ;;  %10886 = vmatprep.subr.bf16.mxu0 %v11792_v0 }
 0x2d8   :  { %10835 = vmatpush3.bf16.msra.mxu1 %v13139_v27  ;;  %10887 = vmatpush3.bf16.msra.mxu0 %v13525_v6  ;;  %v13546_v27 = vld [vmem:[%s14384_s4] ss:$0 sm:$0xff] }
 0x2d9   :  { %10860 = vmatprep.subr.bf16.mxu1 %v11792_v0  ;;  %10888 = vmatprep.subr.bf16.mxu0 %v11792_v0  ;;  %v3949_v1 = vadd.f32 %v13546_v27, %v13450_v10  ;;  %v3950_v25 = vadd.f32 %v13546_v27, %v13460_v55  ;;  %v13663_v55 = vld [vmem:[%s14382_s3 + $0xb8] sm:$0xff]  }
 0x2db   :  { %v3994_v8 = vpop.f32.mrf.mxu1  ;;  %10837 = vmatmul.mubr.bf16.vlgmr.msra.gmra.mxu1 %v11643_v2 }
 0x2dc   :  { %v4001_v17 = vadd.f32 %v3994_v8, %v3949_v1  ;;  %10861 = vmatpush3.bf16.msra.mxu1 %v13534_v12  ;;  %10889 = vmatpush3.bf16.msra.mxu0 %v13539_v16  ;;  %v13709_v1 = vld [vmem:[%s14382_s3 + $0xa0] sm:$0xff]  }
 0x2dd   :  { %v10598_v21 = vpop.f32.mrf.mxu1  ;;  %10862 = vmatprep.subr.bf16.mxu1 %v11792_v0  ;;  %10890 = vmatprep.subr.bf16.mxu0 %v11792_v0  ;;  %v13714_v8 = vld [vmem:[%s14382_s3 + $0xc0] sm:$0xff]  }
 0x2de   :  { %v4053_v26 = vadd.f32 %v4046_v52, %v4001_v17  ;;  %10876 = vmatprep.mubr.msk.bf16.mxu1 %vm11794_vm2, %v11792_v0  ;;  %v11670_v17 = vld [vmem:[#allocation2 + $0xf8] sm:$0xff]  }
 0x2df   :  { %v3997_v39 = vpop.f32.mrf.mxu1 }
 0x2e0   :  { %v4002_v30 = vadd.f32 %v3997_v39, %v3950_v25  ;;  %10863 = vmatpush3.bf16.msra.mxu1 %v13557_v19  ;;  %10891 = vmatpush3.bf16.msra.mxu0 %v13562_v20  ;;  %v4055_v36 = vmax.f32 %v4053_v26, 0.0  ;;  %v13734_v25 = vld [vmem:[%s14382_s3 + $0x90] sm:$0xff]  }
 0x2e1   :  { %v10599_v33 = vpop.f32.mrf.mxu1  ;;  %10864 = vmatprep.subr.bf16.mxu1 %v11792_v0  ;;  %10892 = vmatprep.subr.bf16.mxu0 %v11792_v0  ;;  %v11674_v26 = vld [vmem:[%s14382_s3 + $0x170] sm:$0xff]  }
 0x2e2   :  { %v4054_v37 = vadd.f32 %v4049_v63, %v4002_v30  ;;  %v4057_v15 = vmax.f32 %v3897_v5, %v4055_v36  ;;  %v13700_v63 = vld [vmem:[%s14382_s3 + $0xc8] sm:$0xff]   ;;  %v13758_v36 = vld [vmem:[%s14382_s3 + $0x80] sm:$0xff]   ;;  %v11680_v5 = vld [vmem:[%s14382_s3 + $0x138] sm:$0xff]  }
 0x2e3   :  { %v11676_v30 = vld [vmem:[%s14382_s3 + $0x168] sm:$0xff]  }
 0x2e4   :  { %v4056_v34 = vmax.f32 %v4054_v37, 0.0  ;;  %10865 = vmatpush3.bf16.msra.mxu1 %v13575_v31  ;;  %10893 = vmatpush3.bf16.msra.mxu0 %v13580_v32  ;;  %v11678_v37 = vld [vmem:[%s14382_s3 + $0x160] sm:$0xff]  }
 0x2e5   :  { %10866 = vmatprep.subr.bf16.mxu1 %v11792_v0  ;;  %10894 = vmatprep.subr.bf16.mxu0 %v11792_v0 }
 0x2e6   :  { %v4058_v43 = vmax.f32 %v3898_v22, %v4056_v34  ;;  %v11681_v22 = vld [vmem:[%s14382_s3 + $0x158] sm:$0xff]   ;;  %v11679_v34 = vld [vmem:[#allocation2 + $0xd0] sm:$0xff]  }
 0x2e8   :  { %v9367_v41 = vpack.c.bf16 %v4058_v43, %v4057_v15  ;;  %10867 = vmatpush3.bf16.msra.mxu1 %v13591_v3  ;;  %10895 = vmatpush3.bf16.msra.mxu0 %v13596_v40 }
 0x2e9   :  { %10868 = vmatprep.subr.bf16.mxu1 %v11792_v0  ;;  %10920 = vmatprep.subr.bf16.mxu0 %v11792_v0 }
 0x2ea   :  { %9368 = vst [vmem:[#allocation3 + $0x8] sm:$0xff] %v9367_v41   ;;  %v11682_v41 = vld [vmem:[%s14382_s3 + $0x130] sm:$0xff]  }
 0x2eb   :  { %v4292_v47 = vpop.f32.mrf.mxu0  ;;  %10897 = vmatmul.mubr.bf16.vlgmr.msra.gmra.mxu0 %v11652_v46  ;;  %v11683_v46 = vld [vmem:[%s14382_s3 + $0x150] sm:$0xff]  }
 0x2ec   :  { %10869 = vmatpush3.bf16.msra.mxu1 %v13605_v24  ;;  %10921 = vmatpush3.bf16.msra.mxu0 %v13610_v45 }
 0x2ed   :  { %v10658_v49 = vpop.f32.mrf.mxu0  ;;  %10870 = vmatprep.subr.bf16.mxu1 %v11792_v0  ;;  %10922 = vmatprep.subr.bf16.mxu0 %v11792_v0 }
 0x2ee   :  { %10936 = vmatprep.mubr.msk.bf16.mxu0 %vm11794_vm2, %v11792_v0 }
 0x2ef   :  { %v4295_v54 = vpop.f32.mrf.mxu0 }
 0x2f0   :  { %10871 = vmatpush3.bf16.msra.mxu1 %v13619_v28  ;;  %10923 = vmatpush3.bf16.msra.mxu0 %v13624_v48 }
 0x2f1   :  { %v10659_v10 = vpop.f32.mrf.mxu0  ;;  %10872 = vmatprep.subr.bf16.mxu1 %v11792_v0  ;;  %10924 = vmatprep.subr.bf16.mxu0 %v11792_v0 }
 0x2f4   :  { %10873 = vmatpush3.bf16.msra.mxu1 %v13635_v61  ;;  %10925 = vmatpush3.bf16.msra.mxu0 %v13640_v23 }
 0x2f5   :  { %10874 = vmatprep.subr.bf16.mxu1 %v11792_v0  ;;  %10926 = vmatprep.subr.bf16.mxu0 %v11792_v0 }
 0x2f8   :  { %10875 = vmatpush3.bf16.msra.mxu1 %v13649_v35  ;;  %10927 = vmatpush3.bf16.msra.mxu0 %v13654_v4 }
 0x2f9   :  { %10900 = vmatprep.subr.bf16.mxu1 %v11792_v0  ;;  %10928 = vmatprep.subr.bf16.mxu0 %v11792_v0 }
 0x2fb   :  { %v4176_v58 = vpop.f32.mrf.mxu1  ;;  %10877 = vmatmul.mubr.bf16.vlgmr.msra.gmra.mxu1 %v11661_v57  ;;  %v11684_v57 = vld [vmem:[%s14382_s3 + $0x128] sm:$0xff]  }
 0x2fc   :  { %v4183_v42 = vadd.f32 %v13546_v27, %v4176_v58  ;;  %10901 = vmatpush3.bf16.msra.mxu1 %v13663_v55  ;;  %10929 = vmatpush3.bf16.msra.mxu0 %v13668_v38  ;;  %v11685_v58 = vld [vmem:[%s14382_s3 + $0x148] sm:$0xff]  }
 0x2fd   :  { %v10638_v53 = vpop.f32.mrf.mxu1  ;;  %10902 = vmatprep.subr.bf16.mxu1 %v11792_v0  ;;  %10930 = vmatprep.subr.bf16.mxu0 %v11792_v0 }
 0x2fe   :  { %10916 = vmatprep.mubr.msk.bf16.mxu1 %vm11794_vm2, %v11792_v0  ;;  %v4299_v13 = vadd.f32 %v4292_v47, %v4183_v42 }
 0x2ff   :  { %v4179_v44 = vpop.f32.mrf.mxu1 }
 0x300   :  { %v4184_v52 = vadd.f32 %v13546_v27, %v4179_v44  ;;  %10903 = vmatpush3.bf16.msra.mxu1 %v13678_v62  ;;  %10931 = vmatpush3.bf16.msra.mxu0 %v13683_v51  ;;  %v11687_v44 = vld [vmem:[%s14382_s3 + $0x140] sm:$0xff]  }
 0x301   :  { %v10639_v7 = vpop.f32.mrf.mxu1  ;;  %10904 = vmatprep.subr.bf16.mxu1 %v11792_v0  ;;  %10932 = vmatprep.subr.bf16.mxu0 %v11792_v0 }
 0x302   :  { %v4300_v2 = vadd.f32 %v4295_v54, %v4184_v52  ;;  %v11689_v52 = vld [vmem:[%s14382_s3 + $0x118] sm:$0xff]  }
 0x303   :  { %v11690_v7 = vld [vmem:[%s14382_s3 + $0x1f8] sm:$0xff]  }
 0x304   :  { %10905 = vmatpush3.bf16.msra.mxu1 %v13695_v56  ;;  %10933 = vmatpush3.bf16.msra.mxu0 %v13700_v63 }
 0x305   :  { %10906 = vmatprep.subr.bf16.mxu1 %v11792_v0  ;;  %10934 = vmatprep.subr.bf16.mxu0 %v11792_v0 }
 0x308   :  { %10907 = vmatpush3.bf16.msra.mxu1 %v13709_v1  ;;  %10935 = vmatpush3.bf16.msra.mxu0 %v13714_v8 }
 0x309   :  { %10908 = vmatprep.subr.bf16.mxu1 %v11792_v0  ;;  %10960 = vmatprep.subr.bf16.mxu0 %v11792_v0 }
 0x30b   :  { %v4523_v21 = vpop.f32.mrf.mxu0  ;;  %10937 = vmatmul.mubr.bf16.vlgmr.msra.gmra.mxu0 %v11670_v17  ;;  %v11691_v17 = vld [vmem:[%s14382_s3 + $0x110] sm:$0xff]  }
 0x30c   :  { %10909 = vmatpush3.bf16.msra.mxu1 %v13723_v9  ;;  %10961 = vmatpush3.bf16.msra.mxu0 %v11672_v14 }
 0x30d   :  { %v10698_v39 = vpop.f32.mrf.mxu0  ;;  %10910 = vmatprep.subr.bf16.mxu1 %v11792_v0  ;;  %10962 = vmatprep.subr.bf16.mxu0 %v11792_v0 }
 0x30e   :  { %10976 = vmatprep.mubr.msk.bf16.mxu0 %vm11794_vm2, %v11792_v0 }
 0x30f   :  { %v4526_v50 = vpop.f32.mrf.mxu0 }
 0x310   :  { %10911 = vmatpush3.bf16.msra.mxu1 %v13734_v25  ;;  %10963 = vmatpush3.bf16.msra.mxu0 %v11674_v26 }
 0x311   :  { %v10699_v33 = vpop.f32.mrf.mxu0  ;;  %10912 = vmatprep.subr.bf16.mxu1 %v11792_v0  ;;  %10964 = vmatprep.subr.bf16.mxu0 %v11792_v0 }
 0x314   :  { %10913 = vmatpush3.bf16.msra.mxu1 %v13747_v29  ;;  %10965 = vmatpush3.bf16.msra.mxu0 %v11676_v30  ;;  %v11694_v30 = vld [vmem:[%s14382_s3 + $0x1e8] sm:$0xff]  }
 0x315   :  { %10914 = vmatprep.subr.bf16.mxu1 %v11792_v0  ;;  %10966 = vmatprep.subr.bf16.mxu0 %v11792_v0 }
 0x318   :  { %10915 = vmatpush3.bf16.msra.mxu1 %v13758_v36  ;;  %10967 = vmatpush3.bf16.msra.mxu0 %v11678_v37  ;;  %v11695_v37 = vld [vmem:[%s14382_s3 + $0x100] sm:$0xff]  }
 0x319   :  { %10940 = vmatprep.subr.bf16.mxu1 %v11792_v0  ;;  %10968 = vmatprep.subr.bf16.mxu0 %v11792_v0 }
 0x31b   :  { %v4408_v15 = vpop.f32.mrf.mxu1  ;;  %10917 = vmatmul.mubr.bf16.vlgmr.msra.gmra.mxu1 %v11679_v34  ;;  %v11699_v34 = vld [vmem:[%s14382_s3 + $0x1d8] sm:$0xff]  }
 0x31c   :  { %v4415_v43 = vadd.f32 %v4408_v15, %v4299_v13  ;;  %10941 = vmatpush3.bf16.msra.mxu1 %v11680_v5  ;;  %10969 = vmatpush3.bf16.msra.mxu0 %v11681_v22  ;;  %v11686_v13 = vld [vmem:[%s14382_s3 + $0x120] sm:$0xff]   ;;  %v13837_v22 = vld [vmem:[%s14382_s3 + $0x1b8] sm:$0xff]  }
 0x31d   :  { %v10678_v47 = vpop.f32.mrf.mxu1  ;;  %10942 = vmatprep.subr.bf16.mxu1 %v11792_v0  ;;  %10970 = vmatprep.subr.bf16.mxu0 %v11792_v0  ;;  %v11696_v5 = vld [vmem:[%s14382_s3 + $0x1e0] sm:$0xff]  }
 0x31e   :  { %10956 = vmatprep.mubr.msk.bf16.mxu1 %vm11794_vm2, %v11792_v0  ;;  %v4530_v49 = vadd.f32 %v4523_v21, %v4415_v43  ;;  %v11692_v21 = vld [vmem:[%s14382_s3 + $0x1f0] sm:$0xff]   ;;  %v11697_v15 = vld [vmem:[#allocation2 + $0x100] sm:$0xff]  }
 0x31f   :  { %v4411_v54 = vpop.f32.mrf.mxu1  ;;  %v11701_v47 = vld [vmem:[%s14382_s3 + $0x1d0] sm:$0xff]  }
 0x320   :  { %v4416_v10 = vadd.f32 %v4411_v54, %v4300_v2  ;;  %10943 = vmatpush3.bf16.msra.mxu1 %v11682_v41  ;;  %10971 = vmatpush3.bf16.msra.mxu0 %v11683_v46  ;;  %v11688_v2 = vld [vmem:[#allocation2 + $0x108] sm:$0xff]   ;;  %v13848_v46 = vld [vmem:[%s14382_s3 + $0x1b0] sm:$0xff]  }
 0x321   :  { %v10679_v42 = vpop.f32.mrf.mxu1  ;;  %10944 = vmatprep.subr.bf16.mxu1 %v11792_v0  ;;  %10972 = vmatprep.subr.bf16.mxu0 %v11792_v0 }
 0x322   :  { %v4531_v53 = vadd.f32 %v4526_v50, %v4416_v10  ;;  %v11693_v50 = vld [vmem:[%s14382_s3 + $0x108] sm:$0xff]  }
 0x323   :  { %v11703_v42 = vld [vmem:[%s14382_s3 + $0x1c8] sm:$0xff]  }
 0x324   :  { %10945 = vmatpush3.bf16.msra.mxu1 %v11684_v57  ;;  %10973 = vmatpush3.bf16.msra.mxu0 %v11685_v58  ;;  %v13861_v58 = vld [vmem:[%s14382_s3 + $0x1a8] sm:$0xff]  }
 0x325   :  { %10946 = vmatprep.subr.bf16.mxu1 %v11792_v0  ;;  %10974 = vmatprep.subr.bf16.mxu0 %v11792_v0 }
 0x328   :  { %10947 = vmatpush3.bf16.msra.mxu1 %v11686_v13  ;;  %10975 = vmatpush3.bf16.msra.mxu0 %v11687_v44 }
 0x329   :  { %10948 = vmatprep.subr.bf16.mxu1 %v11792_v0  ;;  %11000 = vmatprep.subr.bf16.mxu0 %v11792_v0 }
 0x32b   :  { %v4755_v14 = vpop.f32.mrf.mxu0  ;;  %10977 = vmatmul.mubr.bf16.vlgmr.msra.gmra.mxu0 %v11688_v2  ;;  %v11706_v2 = vld [vmem:[#allocation2 + $0x138] sm:$0xff]  }
 0x32c   :  { %10949 = vmatpush3.bf16.msra.mxu1 %v11689_v52  ;;  %11001 = vmatpush3.bf16.msra.mxu0 %v11690_v7  ;;  %v11705_v52 = vld [vmem:[%s14382_s3 + $0x1c0] sm:$0xff]   ;;  %v13883_v7 = vld [vmem:[%s14382_s3 + $0x198] sm:$0xff]  }
 0x32d   :  { %v10738_v26 = vpop.f32.mrf.mxu0  ;;  %10950 = vmatprep.subr.bf16.mxu1 %v11792_v0  ;;  %11002 = vmatprep.subr.bf16.mxu0 %v11792_v0 }
 0x32e   :  { %11016 = vmatprep.mubr.msk.bf16.mxu0 %vm11794_vm2, %v11792_v0  ;;  %v13899_v26 = vld [vmem:[%s14382_s3 + $0x188] sm:$0xff]  }
 0x32f   :  { %v4758_v39 = vpop.f32.mrf.mxu0 }
 0x330   :  { %10951 = vmatpush3.bf16.msra.mxu1 %v11691_v17  ;;  %11003 = vmatpush3.bf16.msra.mxu0 %v11692_v21 }
 0x331   :  { %v10739_v33 = vpop.f32.mrf.mxu0  ;;  %10952 = vmatprep.subr.bf16.mxu1 %v11792_v0  ;;  %11004 = vmatprep.subr.bf16.mxu0 %v11792_v0 }
 0x332   :  { %v11712_v33 = vld [vmem:[%s14382_s3 + $0x238] sm:$0xff]  }
 0x334   :  { %10953 = vmatpush3.bf16.msra.mxu1 %v11693_v50  ;;  %11005 = vmatpush3.bf16.msra.mxu0 %v11694_v30  ;;  %v13910_v30 = vld [vmem:[%s14382_s3 + $0x180] sm:$0xff]  }
 0x335   :  { %10954 = vmatprep.subr.bf16.mxu1 %v11792_v0  ;;  %11006 = vmatprep.subr.bf16.mxu0 %v11792_v0 }
 0x338   :  { %10955 = vmatpush3.bf16.msra.mxu1 %v11695_v37  ;;  %11007 = vmatpush3.bf16.msra.mxu0 %v11696_v5  ;;  %v11711_v37 = vld [vmem:[#allocation2 + $0x130] sm:$0xff]  }
 0x339   :  { %10980 = vmatprep.subr.bf16.mxu1 %v11792_v0  ;;  %11008 = vmatprep.subr.bf16.mxu0 %v11792_v0  ;;  %v11713_v5 = vld [vmem:[%s14382_s3 + $0x230] sm:$0xff]  }
 0x33b   :  { %v4639_v43 = vpop.f32.mrf.mxu1  ;;  %10957 = vmatmul.mubr.bf16.vlgmr.msra.gmra.mxu1 %v11697_v15 }
 0x33c   :  { %v4646_v41 = vadd.f32 %v4639_v43, %v4530_v49  ;;  %10981 = vmatpush3.bf16.msra.mxu1 %v13837_v22  ;;  %11009 = vmatpush3.bf16.msra.mxu0 %v11699_v34 }
 0x33d   :  { %v10718_v54 = vpop.f32.mrf.mxu1  ;;  %10982 = vmatprep.subr.bf16.mxu1 %v11792_v0  ;;  %11010 = vmatprep.subr.bf16.mxu0 %v11792_v0 }
 0x33e   :  { %10996 = vmatprep.mubr.msk.bf16.mxu1 %vm11794_vm2, %v11792_v0  ;;  %v4762_v49 = vadd.f32 %v4755_v14, %v4646_v41  ;;  %v13890_v14 = vld [vmem:[%s14382_s3 + $0x190] sm:$0xff]   ;;  %v11714_v41 = vld [vmem:[%s14382_s3 + $0x228] sm:$0xff]  }
 0x33f   :  { %v4642_v10 = vpop.f32.mrf.mxu1 }
 0x340   :  { %v4647_v57 = vadd.f32 %v4642_v10, %v4531_v53  ;;  %10983 = vmatpush3.bf16.msra.mxu1 %v13848_v46  ;;  %11011 = vmatpush3.bf16.msra.mxu0 %v11701_v47  ;;  %v13872_v53 = vld [vmem:[%s14382_s3 + $0x1a0] sm:$0xff]  }
 0x341   :  { %v10719_v13 = vpop.f32.mrf.mxu1  ;;  %10984 = vmatprep.subr.bf16.mxu1 %v11792_v0  ;;  %11012 = vmatprep.subr.bf16.mxu0 %v11792_v0 }
 0x342   :  { %v4763_v44 = vadd.f32 %v4758_v39, %v4647_v57  ;;  %v11717_v13 = vld [vmem:[%s14382_s3 + $0x218] sm:$0xff]  }
 0x344   :  { %10985 = vmatpush3.bf16.msra.mxu1 %v13861_v58  ;;  %11013 = vmatpush3.bf16.msra.mxu0 %v11703_v42  ;;  %v11715_v42 = vld [vmem:[%s14382_s3 + $0x220] sm:$0xff]  }
 0x345   :  { %10986 = vmatprep.subr.bf16.mxu1 %v11792_v0  ;;  %11014 = vmatprep.subr.bf16.mxu0 %v11792_v0 }
 0x348   :  { %10987 = vmatpush3.bf16.msra.mxu1 %v13872_v53  ;;  %11015 = vmatpush3.bf16.msra.mxu0 %v11705_v52 }
 0x349   :  { %10988 = vmatprep.subr.bf16.mxu1 %v11792_v0  ;;  %11040 = vmatprep.subr.bf16.mxu0 %v11792_v0 }
 0x34b   :  { %v4986_v17 = vpop.f32.mrf.mxu0  ;;  %11017 = vmatmul.mubr.bf16.vlgmr.msra.gmra.mxu0 %v11706_v2  ;;  %v11718_v2 = vld [vmem:[%s14382_s3 + $0x210] sm:$0xff]  }
 0x34c   :  { %10989 = vmatpush3.bf16.msra.mxu1 %v13883_v7  ;;  %11041 = vmatpush3.bf16.msra.mxu0 %v13534_v12 }
 0x34d   :  { %v10778_v21 = vpop.f32.mrf.mxu0  ;;  %10990 = vmatprep.subr.bf16.mxu1 %v11792_v0  ;;  %11042 = vmatprep.subr.bf16.mxu0 %v11792_v0 }
 0x34e   :  { %11056 = vmatprep.mubr.msk.bf16.mxu0 %vm11794_vm2, %v11792_v0 }
 0x34f   :  { %v4989_v39 = vpop.f32.mrf.mxu0 }
 0x350   :  { %10991 = vmatpush3.bf16.msra.mxu1 %v13890_v14  ;;  %11043 = vmatpush3.bf16.msra.mxu0 %v13557_v19 }
 0x351   :  { %v10779_v50 = vpop.f32.mrf.mxu0  ;;  %10992 = vmatprep.subr.bf16.mxu1 %v11792_v0  ;;  %11044 = vmatprep.subr.bf16.mxu0 %v11792_v0 }
 0x352   :  { %v11720_v50 = vld [vmem:[%s14382_s3 + $0x200] sm:$0xff]  }
 0x354   :  { %10993 = vmatpush3.bf16.msra.mxu1 %v13899_v26  ;;  %11045 = vmatpush3.bf16.msra.mxu0 %v13575_v31 }
 0x355   :  { %10994 = vmatprep.subr.bf16.mxu1 %v11792_v0  ;;  %11046 = vmatprep.subr.bf16.mxu0 %v11792_v0 }
 0x358   :  { %10995 = vmatpush3.bf16.msra.mxu1 %v13910_v30  ;;  %11047 = vmatpush3.bf16.msra.mxu0 %v13591_v3 }
 0x359   :  { %11020 = vmatprep.subr.bf16.mxu1 %v11792_v0  ;;  %11048 = vmatprep.subr.bf16.mxu0 %v11792_v0 }
 0x35b   :  { %v4870_v34 = vpop.f32.mrf.mxu1  ;;  %10997 = vmatmul.mubr.bf16.vlgmr.msra.gmra.mxu1 %v11711_v37 }
 0x35c   :  { %v4877_v15 = vadd.f32 %v4870_v34, %v4762_v49  ;;  %11021 = vmatpush3.bf16.msra.mxu1 %v11712_v33  ;;  %11049 = vmatpush3.bf16.msra.mxu0 %v13605_v24 }
 0x35d   :  { %v10758_v43 = vpop.f32.mrf.mxu1  ;;  %11022 = vmatprep.subr.bf16.mxu1 %v11792_v0  ;;  %11050 = vmatprep.subr.bf16.mxu0 %v11792_v0 }
 0x35e   :  { %11036 = vmatprep.mubr.msk.bf16.mxu1 %vm11794_vm2, %v11792_v0  ;;  %v13934_v47 = vadd.f32 %v4986_v17, %v4877_v15 }
 0x35f   :  { %v4873_v54 = vpop.f32.mrf.mxu1 }
 0x360   :  { %v4878_v10 = vadd.f32 %v4873_v54, %v4763_v44  ;;  %11023 = vmatpush3.bf16.msra.mxu1 %v11713_v5  ;;  %11051 = vmatpush3.bf16.msra.mxu0 %v13619_v28  ;;  %v11716_v44 = vld [vmem:[#allocation2 + $0xd8] sm:$0xff]  }
 0x361   :  { %v10759_v49 = vpop.f32.mrf.mxu1  ;;  %11024 = vmatprep.subr.bf16.mxu1 %v11792_v0  ;;  %11052 = vmatprep.subr.bf16.mxu0 %v11792_v0 }
 0x362   :  { %v13939_v57 = vadd.f32 %v4989_v39, %v4878_v10 }
 0x364   :  { %11025 = vmatpush3.bf16.msra.mxu1 %v11714_v41  ;;  %11053 = vmatpush3.bf16.msra.mxu0 %v13635_v61 }
 0x365   :  { %11026 = vmatprep.subr.bf16.mxu1 %v11792_v0  ;;  %11054 = vmatprep.subr.bf16.mxu0 %v11792_v0 }
 0x368   :  { %11027 = vmatpush3.bf16.msra.mxu1 %v11715_v42  ;;  %11055 = vmatpush3.bf16.msra.mxu0 %v13649_v35  ;;  %v11724_v42 = vld [vmem:[#allocation2 + $0x170] sm:$0xff]  }
 0x369   :  { %11028 = vmatprep.subr.bf16.mxu1 %v11792_v0  ;;  %11080 = vmatprep.subr.bf16.mxu0 %v11792_v0 }
 0x36b   :  { %v13953_v52 = vpop.f32.mrf.mxu0  ;;  %11057 = vmatmul.mubr.bf16.vlgmr.msra.gmra.mxu0 %v11716_v44  ;;  %v14065_v44 = vld [vmem:[%s14384_s4] ss:$0 sm:$0xff] }
 0x36c   :  { %11029 = vmatpush3.bf16.msra.mxu1 %v11717_v13  ;;  %11081 = vmatpush3.bf16.msra.mxu0 %v13837_v22  ;;  %v11719_v22 = vld [vmem:[%s14382_s3 + $0x208] sm:$0xff]  }
 0x36d   :  { %v10818_v17 = vpop.f32.mrf.mxu0  ;;  %11030 = vmatprep.subr.bf16.mxu1 %v11792_v0  ;;  %11082 = vmatprep.subr.bf16.mxu0 %v11792_v0 }
 0x36e   :  { %11096 = vmatprep.mubr.msk.bf16.mxu0 %vm11794_vm2, %v11792_v0 }
 0x36f   :  { %v13963_v21 = vpop.f32.mrf.mxu0 }
 0x370   :  { %11031 = vmatpush3.bf16.msra.mxu1 %v11718_v2  ;;  %11083 = vmatpush3.bf16.msra.mxu0 %v13848_v46  ;;  %v11721_v46 = vld [vmem:[#allocation2 + $0x140] sm:$0xff]  }
 0x371   :  { %v10819_v39 = vpop.f32.mrf.mxu0  ;;  %11032 = vmatprep.subr.bf16.mxu1 %v11792_v0  ;;  %11084 = vmatprep.subr.bf16.mxu0 %v11792_v0 }
 0x372   :  { %v11731_v39 = vld [vmem:[#allocation2 + $0x178] sm:$0xff]  }
 0x374   :  { %11033 = vmatpush3.bf16.msra.mxu1 %v11719_v22  ;;  %11085 = vmatpush3.bf16.msra.mxu0 %v13861_v58  ;;  %v11730_v22 = vld [vmem:[%s14385_s5 + $0x60] sm:$0xff]  }
 0x375   :  { %11034 = vmatprep.subr.bf16.mxu1 %v11792_v0  ;;  %11086 = vmatprep.subr.bf16.mxu0 %v11792_v0 }
 0x378   :  { %11035 = vmatpush3.bf16.msra.mxu1 %v11720_v50  ;;  %11087 = vmatpush3.bf16.msra.mxu0 %v13872_v53 }
 0x379   :  { %11060 = vmatprep.subr.bf16.mxu1 %v11792_v0  ;;  %11088 = vmatprep.subr.bf16.mxu0 %v11792_v0 }
 0x37b   :  { %v5102_v33 = vpop.f32.mrf.mxu1  ;;  %11037 = vmatmul.mubr.bf16.vlgmr.msra.gmra.mxu1 %v11721_v46 }
 0x37c   :  { %11061 = vmatpush3.bf16.msra.mxu1 %v13610_v45  ;;  %11089 = vmatpush3.bf16.msra.mxu0 %v13883_v7  ;;  %v11722_v45 = vld [vmem:[#allocation2 + $0x148] sm:$0xff]  }
 0x37d   :  { %v10798_v58 = vpop.f32.mrf.mxu1  ;;  %11062 = vmatprep.subr.bf16.mxu1 %v11792_v0  ;;  %11090 = vmatprep.subr.bf16.mxu0 %v11792_v0 }
 0x37e   :  { %11076 = vmatprep.mubr.msk.bf16.mxu1 %vm11794_vm2, %v11792_v0 }
 0x37f   :  { %v5105_v53 = vpop.f32.mrf.mxu1 }
 0x380   :  { %11063 = vmatpush3.bf16.msra.mxu1 %v13624_v48  ;;  %11091 = vmatpush3.bf16.msra.mxu0 %v13890_v14 }
 0x381   :  { %v10799_v37 = vpop.f32.mrf.mxu1  ;;  %11064 = vmatprep.subr.bf16.mxu1 %v11792_v0  ;;  %11092 = vmatprep.subr.bf16.mxu0 %v11792_v0 }
 0x384   :  { %11065 = vmatpush3.bf16.msra.mxu1 %v13640_v23  ;;  %11093 = vmatpush3.bf16.msra.mxu0 %v13899_v26 }
 0x385   :  { %11066 = vmatprep.subr.bf16.mxu1 %v11792_v0  ;;  %11094 = vmatprep.subr.bf16.mxu0 %v11792_v0 }
 0x388   :  { %11067 = vmatpush3.bf16.msra.mxu1 %v13654_v4  ;;  %11095 = vmatpush3.bf16.msra.mxu0 %v13910_v30 }
 0x389   :  { %11068 = vmatprep.subr.bf16.mxu1 %v11792_v0  ;;  %11120 = vmatprep.subr.bf16.mxu0 %v11792_v0 }
 0x38b   :  { %v5263_v48 = vpop.f32.mrf.mxu0  ;;  %11097 = vmatmul.mubr.bf16.vlgmr.msra.gmra.mxu0 %v11722_v45 }
 0x38c   :  { %11069 = vmatpush3.bf16.msra.mxu1 %v13668_v38  ;;  %11121 = vmatpush3.bf16.msra.mxu0 %v13496_v11  ;;  %v5109_v11 = vadd.f32 %v5102_v33, %v13934_v47  ;;  %v5110_v38 = vadd.f32 %v5105_v53, %v13939_v57  ;;  %v11735_v33 = vld [vmem:[%s14385_s5 + $0x50] sm:$0xff]  }
 0x38d   :  { %v10858_v23 = vpop.f32.mrf.mxu0  ;;  %11070 = vmatprep.subr.bf16.mxu1 %v11792_v0  ;;  %11122 = vmatprep.subr.bf16.mxu0 %v11792_v0 }
 0x38e   :  { %11136 = vmatprep.mubr.msk.bf16.mxu0 %vm11794_vm2, %v11792_v0  ;;  %v5112_v14 = vmax.f32 %v5110_v38, 0.0  ;;  %v11737_v23 = vld [vmem:[%s14385_s5 + $0x48] sm:$0xff]   ;;  %v11739_v38 = vld [vmem:[%s14385_s5 + $0x40] sm:$0xff]  }
 0x38f   :  { %v5266_v4 = vpop.f32.mrf.mxu0 }
 0x390   :  { %11071 = vmatpush3.bf16.msra.mxu1 %v13683_v51  ;;  %11123 = vmatpush3.bf16.msra.mxu0 %v13505_v59  ;;  %v11723_v59 = vld [vmem:[#allocation2 + $0x110] sm:$0xff]   ;;  %v5114_v15 = vmax.f32 %v13127_v18, %v5112_v14 }
 0x391   :  { %v10859_v7 = vpop.f32.mrf.mxu0  ;;  %11072 = vmatprep.subr.bf16.mxu1 %v11792_v0  ;;  %11124 = vmatprep.subr.bf16.mxu0 %v11792_v0 }
 0x392   :  { %v5116_v54 = vmax.f32 %v5114_v15, %v13127_v18 }
 0x394   :  { %11073 = vmatpush3.bf16.msra.mxu1 %v13700_v63  ;;  %11125 = vmatpush3.bf16.msra.mxu0 %v13516_v60  ;;  %v5166_v60 = vadd.f32 %v13546_v27, %v13953_v52  ;;  %v5111_v63 = vmax.f32 %v5109_v11, 0.0  ;;  %v11738_v11 = vld [vmem:[%s14385_s5 + $0x20] sm:$0xff]  }
 0x395   :  { %11074 = vmatprep.subr.bf16.mxu1 %v11792_v0  ;;  %11126 = vmatprep.subr.bf16.mxu0 %v11792_v0 }
 0x396   :  { %v5113_v34 = vmax.f32 %v13127_v18, %v5111_v63  ;;  %v11742_v63 = vld [vmem:[%s14385_s5 + $0x10] sm:$0xff]  }
 0x398   :  { %11075 = vmatpush3.bf16.msra.mxu1 %v13714_v8  ;;  %11127 = vmatpush3.bf16.msra.mxu0 %v13525_v6  ;;  %v5167_v6 = vadd.f32 %v13546_v27, %v13963_v21  ;;  %v5115_v47 = vmax.f32 %v5113_v34, %v13127_v18  ;;  %v11745_v34 = vld [vmem:[#allocation3] sm:$0xff]  }
 0x399   :  { %11100 = vmatprep.subr.bf16.mxu1 %v11792_v0  ;;  %11128 = vmatprep.subr.bf16.mxu0 %v11792_v0 }
 0x39b   :  { %v5211_v51 = vpop.f32.mrf.mxu1  ;;  %11077 = vmatmul.mubr.bf16.vlgmr.msra.gmra.mxu1 %v11723_v59  ;;  %v11741_v59 = vld [vmem:[%s14385_s5 + $0x18] sm:$0xff]  }
 0x39c   :  { %v5218_v26 = vadd.f32 %v5211_v51, %v5166_v60  ;;  %11101 = vmatpush3.bf16.msra.mxu1 %v13534_v12  ;;  %11129 = vmatpush3.bf16.msra.mxu0 %v13539_v16  ;;  %v11740_v60 = vld [vmem:[#allocation3 + $0x8] sm:$0xff]  }
 0x39d   :  { %v10838_v8 = vpop.f32.mrf.mxu1  ;;  %11102 = vmatprep.subr.bf16.mxu1 %v11792_v0  ;;  %11130 = vmatprep.subr.bf16.mxu0 %v11792_v0 }
 0x39e   :  { %v5270_v30 = vadd.f32 %v5263_v48, %v5218_v26  ;;  %11116 = vmatprep.mubr.msk.bf16.mxu1 %vm11794_vm2, %v11792_v0  ;;  %v11736_v48 = vld [vmem:[%s14385_s5 + $0x28] sm:$0xff]  }
 0x39f   :  { %v5214_v5 = vpop.f32.mrf.mxu1  ;;  %v11743_v8 = vld [vmem:[%s14385_s5 + $0x8] sm:$0xff]  }
 0x3a0   :  { %v5219_v43 = vadd.f32 %v5214_v5, %v5167_v6  ;;  %11103 = vmatpush3.bf16.msra.mxu1 %v13557_v19  ;;  %11131 = vmatpush3.bf16.msra.mxu0 %v13562_v20  ;;  %v5272_v27 = vmax.f32 %v5270_v30, 0.0  ;;  %v11744_v30 = vld [vmem:[%s14385_s5] sm:$0xff]   ;;  %v11746_v5 = vld [vmem:[%s14385_s5 + $0xf8] sm:$0xff]  }
 0x3a1   :  { %v10839_v16 = vpop.f32.mrf.mxu1  ;;  %11104 = vmatprep.subr.bf16.mxu1 %v11792_v0  ;;  %11132 = vmatprep.subr.bf16.mxu0 %v11792_v0 }
 0x3a2   :  { %v5271_v41 = vadd.f32 %v5266_v4, %v5219_v43  ;;  %v5274_v20 = vmax.f32 %v5115_v47, %v5272_v27  ;;  %v11747_v16 = vld [vmem:[%s14385_s5 + $0xf0] sm:$0xff]  }
 0x3a4   :  { %v5273_v10 = vmax.f32 %v5271_v41, 0.0  ;;  %11105 = vmatpush3.bf16.msra.mxu1 %v13575_v31  ;;  %11133 = vmatpush3.bf16.msra.mxu0 %v13580_v32 }
 0x3a5   :  { %11106 = vmatprep.subr.bf16.mxu1 %v11792_v0  ;;  %11134 = vmatprep.subr.bf16.mxu0 %v11792_v0 }
 0x3a6   :  { %v5275_v49 = vmax.f32 %v5116_v54, %v5273_v10  ;;  %v11748_v10 = vld [vmem:[%s14385_s5 + $0xe8] sm:$0xff]  }
 0x3a8   :  { %v9372_v57 = vpack.c.bf16 %v5275_v49, %v5274_v20  ;;  %11107 = vmatpush3.bf16.msra.mxu1 %v13591_v3  ;;  %11135 = vmatpush3.bf16.msra.mxu0 %v13596_v40 }
 0x3a9   :  { %11108 = vmatprep.subr.bf16.mxu1 %v11792_v0  ;;  %11160 = vmatprep.subr.bf16.mxu0 %v11792_v0 }
 0x3aa   :  { %9373 = vst [vmem:[#allocation3 + $0x10] sm:$0xff] %v9372_v57   ;;  %v11749_v57 = vld [vmem:[%s14385_s5 + $0xe0] sm:$0xff]  }
 0x3ab   :  { %v5510_v18 = vpop.f32.mrf.mxu0  ;;  %11137 = vmatmul.mubr.bf16.vlgmr.msra.gmra.mxu0 %v11724_v42  ;;  %v11750_v42 = vld [vmem:[%s14385_s5 + $0xd8] sm:$0xff]  }
 0x3ac   :  { %11109 = vmatpush3.bf16.msra.mxu1 %v13605_v24  ;;  %11161 = vmatpush3.bf16.msra.mxu0 %v13534_v12  ;;  %v11725_v12 = vld [vmem:[#allocation2 + $0x168] sm:$0xff]  }
 0x3ad   :  { %v10898_v32 = vpop.f32.mrf.mxu0  ;;  %11110 = vmatprep.subr.bf16.mxu1 %v11792_v0  ;;  %11162 = vmatprep.subr.bf16.mxu0 %v11792_v0 }
 0x3ae   :  { %11176 = vmatprep.mubr.msk.bf16.mxu0 %vm11794_vm2, %v11792_v0  ;;  %v11751_v32 = vld [vmem:[%s14385_s5 + $0xd0] sm:$0xff]  }
 0x3af   :  { %v5513_v40 = vpop.f32.mrf.mxu0 }
 0x3b0   :  { %11111 = vmatpush3.bf16.msra.mxu1 %v13619_v28  ;;  %11163 = vmatpush3.bf16.msra.mxu0 %v13557_v19 }
 0x3b1   :  { %v10899_v13 = vpop.f32.mrf.mxu0  ;;  %11112 = vmatprep.subr.bf16.mxu1 %v11792_v0  ;;  %11164 = vmatprep.subr.bf16.mxu0 %v11792_v0 }
 0x3b4   :  { %11113 = vmatpush3.bf16.msra.mxu1 %v13635_v61  ;;  %11165 = vmatpush3.bf16.msra.mxu0 %v13575_v31 }
 0x3b5   :  { %11114 = vmatprep.subr.bf16.mxu1 %v11792_v0  ;;  %11166 = vmatprep.subr.bf16.mxu0 %v11792_v0 }
 0x3b8   :  { %11115 = vmatpush3.bf16.msra.mxu1 %v13649_v35  ;;  %11167 = vmatpush3.bf16.msra.mxu0 %v13591_v3 }
 0x3b9   :  { %11140 = vmatprep.subr.bf16.mxu1 %v11792_v0  ;;  %11168 = vmatprep.subr.bf16.mxu0 %v11792_v0 }
 0x3bb   :  { %v5394_v19 = vpop.f32.mrf.mxu1  ;;  %11117 = vmatmul.mubr.bf16.vlgmr.msra.gmra.mxu1 %v11725_v12  ;;  %v11752_v12 = vld [vmem:[%s14385_s5 + $0xc8] sm:$0xff]  }
 0x3bc   :  { %v5401_v31 = vadd.f32 %v14065_v44, %v5394_v19  ;;  %11141 = vmatpush3.bf16.msra.mxu1 %v13663_v55  ;;  %11169 = vmatpush3.bf16.msra.mxu0 %v13605_v24  ;;  %v11726_v55 = vld [vmem:[#allocation2 + $0x180] sm:$0xff]  }
 0x3bd   :  { %v10878_v52 = vpop.f32.mrf.mxu1  ;;  %11142 = vmatprep.subr.bf16.mxu1 %v11792_v0  ;;  %11170 = vmatprep.subr.bf16.mxu0 %v11792_v0 }
 0x3be   :  { %11156 = vmatprep.mubr.msk.bf16.mxu1 %vm11794_vm2, %v11792_v0  ;;  %v5517_v3 = vadd.f32 %v5510_v18, %v5401_v31  ;;  %v11755_v31 = vld [vmem:[%s14385_s5 + $0x138] sm:$0xff]   ;;  %v11753_v52 = vld [vmem:[%s14385_s5 + $0xc0] sm:$0xff]  }
 0x3bf   :  { %v5397_v2 = vpop.f32.mrf.mxu1 }
 0x3c0   :  { %v5402_v17 = vadd.f32 %v14065_v44, %v5397_v2  ;;  %11143 = vmatpush3.bf16.msra.mxu1 %v13678_v62  ;;  %11171 = vmatpush3.bf16.msra.mxu0 %v13619_v28  ;;  %v11727_v28 = vld [vmem:[%s14385_s5 + $0x78] sm:$0xff]  }
 0x3c1   :  { %v10879_v21 = vpop.f32.mrf.mxu1  ;;  %11144 = vmatprep.subr.bf16.mxu1 %v11792_v0  ;;  %11172 = vmatprep.subr.bf16.mxu0 %v11792_v0  ;;  %v11754_v2 = vld [vmem:[#allocation3 + $0x10] sm:$0xff]  }
 0x3c2   :  { %v5518_v24 = vadd.f32 %v5513_v40, %v5402_v17  ;;  %v11757_v21 = vld [vmem:[%s14385_s5 + $0x128] sm:$0xff]  }
 0x3c4   :  { %11145 = vmatpush3.bf16.msra.mxu1 %v13695_v56  ;;  %11173 = vmatpush3.bf16.msra.mxu0 %v13635_v61  ;;  %v11728_v61 = vld [vmem:[%s14385_s5 + $0x70] sm:$0xff]  }
 0x3c5   :  { %11146 = vmatprep.subr.bf16.mxu1 %v11792_v0  ;;  %11174 = vmatprep.subr.bf16.mxu0 %v11792_v0 }
 0x3c8   :  { %11147 = vmatpush3.bf16.msra.mxu1 %v13709_v1  ;;  %11175 = vmatpush3.bf16.msra.mxu0 %v13649_v35  ;;  %v11729_v1 = vld [vmem:[%s14385_s5 + $0x68] sm:$0xff]  }
 0x3c9   :  { %11148 = vmatprep.subr.bf16.mxu1 %v11792_v0  ;;  %11200 = vmatprep.subr.bf16.mxu0 %v11792_v0 }
 0x3cb   :  { %v5742_v62 = vpop.f32.mrf.mxu0  ;;  %11177 = vmatmul.mubr.bf16.vlgmr.msra.gmra.mxu0 %v11726_v55 }
 0x3cc   :  { %11149 = vmatpush3.bf16.msra.mxu1 %v13723_v9  ;;  %11201 = vmatpush3.bf16.msra.mxu0 %v11727_v28 }
 0x3cd   :  { %v10938_v56 = vpop.f32.mrf.mxu0  ;;  %11150 = vmatprep.subr.bf16.mxu1 %v11792_v0  ;;  %11202 = vmatprep.subr.bf16.mxu0 %v11792_v0 }
 0x3ce   :  { %11216 = vmatprep.mubr.msk.bf16.mxu0 %vm11794_vm2, %v11792_v0 }
 0x3cf   :  { %v5745_v35 = vpop.f32.mrf.mxu0 }
 0x3d0   :  { %11151 = vmatpush3.bf16.msra.mxu1 %v13734_v25  ;;  %11203 = vmatpush3.bf16.msra.mxu0 %v11728_v61  ;;  %v11732_v25 = vld [vmem:[%s14385_s5 + $0x38] sm:$0xff]   ;;  %v11758_v61 = vld [vmem:[%s14385_s5 + $0x120] sm:$0xff]  }
 0x3d1   :  { %v10939_v9 = vpop.f32.mrf.mxu0  ;;  %11152 = vmatprep.subr.bf16.mxu1 %v11792_v0  ;;  %11204 = vmatprep.subr.bf16.mxu0 %v11792_v0 }
 0x3d2   :  { %v11759_v9 = vld [vmem:[%s14385_s5 + $0x118] sm:$0xff]  }
 0x3d4   :  { %11153 = vmatpush3.bf16.msra.mxu1 %v13747_v29  ;;  %11205 = vmatpush3.bf16.msra.mxu0 %v11729_v1  ;;  %v11733_v29 = vld [vmem:[%s14385_s5 + $0x58] sm:$0xff]  }
 0x3d5   :  { %11154 = vmatprep.subr.bf16.mxu1 %v11792_v0  ;;  %11206 = vmatprep.subr.bf16.mxu0 %v11792_v0 }
 0x3d8   :  { %11155 = vmatpush3.bf16.msra.mxu1 %v13758_v36  ;;  %11207 = vmatpush3.bf16.msra.mxu0 %v11730_v22  ;;  %v11734_v36 = vld [vmem:[%s14385_s5 + $0x30] sm:$0xff]  }
 0x3d9   :  { %11180 = vmatprep.subr.bf16.mxu1 %v11792_v0  ;;  %11208 = vmatprep.subr.bf16.mxu0 %v11792_v0  ;;  %v11760_v22 = vld [vmem:[%s14385_s5 + $0x110] sm:$0xff]  }
 0x3db   :  { %v5626_v50 = vpop.f32.mrf.mxu1  ;;  %11157 = vmatmul.mubr.bf16.vlgmr.msra.gmra.mxu1 %v11731_v39 }
 0x3dc   :  { %v5633_v46 = vadd.f32 %v5626_v50, %v5517_v3  ;;  %11181 = vmatpush3.bf16.msra.mxu1 %v11732_v25  ;;  %11209 = vmatpush3.bf16.msra.mxu0 %v11733_v29  ;;  %v11756_v3 = vld [vmem:[%s14385_s5 + $0x130] sm:$0xff]   ;;  %v11761_v29 = vld [vmem:[%s14385_s5 + $0x108] sm:$0xff]  }
 0x3dd   :  { %v10918_v58 = vpop.f32.mrf.mxu1  ;;  %11182 = vmatprep.subr.bf16.mxu1 %v11792_v0  ;;  %11210 = vmatprep.subr.bf16.mxu0 %v11792_v0 }
 0x3de   :  { %11196 = vmatprep.mubr.msk.bf16.mxu1 %vm11794_vm2, %v11792_v0  ;;  %v5749_v53 = vadd.f32 %v5742_v62, %v5633_v46  ;;  %v11762_v46 = vld [vmem:[%s14385_s5 + $0x100] sm:$0xff]  }
 0x3df   :  { %v5629_v37 = vpop.f32.mrf.mxu1 }
 0x3e0   :  { %v5634_v45 = vadd.f32 %v5629_v37, %v5518_v24  ;;  %11183 = vmatpush3.bf16.msra.mxu1 %v11734_v36  ;;  %11211 = vmatpush3.bf16.msra.mxu0 %v11735_v33 }
 0x3e1   :  { %v10919_v4 = vpop.f32.mrf.mxu1  ;;  %11184 = vmatprep.subr.bf16.mxu1 %v11792_v0  ;;  %11212 = vmatprep.subr.bf16.mxu0 %v11792_v0 }
 0x3e2   :  { %v5750_v7 = vadd.f32 %v5745_v35, %v5634_v45 }
 0x3e4   :  { %11185 = vmatpush3.bf16.msra.mxu1 %v11736_v48  ;;  %11213 = vmatpush3.bf16.msra.mxu0 %v11737_v23 }
 0x3e5   :  { %11186 = vmatprep.subr.bf16.mxu1 %v11792_v0  ;;  %11214 = vmatprep.subr.bf16.mxu0 %v11792_v0 }
 0x3e8   :  { %11187 = vmatpush3.bf16.msra.mxu1 %v11738_v11  ;;  %11215 = vmatpush3.bf16.msra.mxu0 %v11739_v38 }
 0x3e9   :  { %11188 = vmatprep.subr.bf16.mxu1 %v11792_v0  ;;  %11240 = vmatprep.subr.bf16.mxu0 %v11792_v0 }
 0x3eb   :  { %v5974_v51 = vpop.f32.mrf.mxu0  ;;  %11217 = vmatmul.mubr.bf16.vlgmr.msra.gmra.mxu0 %v11740_v60 }
 0x3ec   :  { %11189 = vmatpush3.bf16.msra.mxu1 %v11741_v59  ;;  %11256 = vmatprep.mubr.msk.bf16.mxu0 %vm11794_vm2, %v11792_v0 }
 0x3ed   :  { %v10978_v14 = vpop.f32.mrf.mxu0  ;;  %11190 = vmatprep.subr.bf16.mxu1 %v11792_v0  ;;  %11241 = vmatpush3.bf16.msra.mxu0 %v11755_v31 }
 0x3ee   :  { %11242 = vmatprep.subr.bf16.mxu0 %v11792_v0 }
 0x3ef   :  { %v5977_v26 = vpop.f32.mrf.mxu0 }
 0x3f0   :  { %11191 = vmatpush3.bf16.msra.mxu1 %v11742_v63 }
 0x3f1   :  { %v10979_v6 = vpop.f32.mrf.mxu0  ;;  %11192 = vmatprep.subr.bf16.mxu1 %v11792_v0  ;;  %11243 = vmatpush3.bf16.msra.mxu0 %v11756_v3 }
 0x3f2   :  { %11244 = vmatprep.subr.bf16.mxu0 %v11792_v0 }
 0x3f4   :  { %11193 = vmatpush3.bf16.msra.mxu1 %v11743_v8 }
 0x3f5   :  { %11194 = vmatprep.subr.bf16.mxu1 %v11792_v0  ;;  %11245 = vmatpush3.bf16.msra.mxu0 %v11757_v21 }
 0x3f6   :  { %11246 = vmatprep.subr.bf16.mxu0 %v11792_v0 }
 0x3f8   :  { %11195 = vmatpush3.bf16.msra.mxu1 %v11744_v30 }
 0x3f9   :  { %11220 = vmatprep.subr.bf16.mxu1 %v11792_v0  ;;  %11247 = vmatpush3.bf16.msra.mxu0 %v11758_v61 }
 0x3fa   :  { %11248 = vmatprep.subr.bf16.mxu0 %v11792_v0 }
 0x3fb   :  { %v5858_v15 = vpop.f32.mrf.mxu1  ;;  %11197 = vmatmul.mubr.bf16.vlgmr.msra.gmra.mxu1 %v11745_v34 }
 0x3fc   :  { %v5865_v43 = vadd.f32 %v5858_v15, %v5749_v53  ;;  %11221 = vmatpush3.bf16.msra.mxu1 %v11746_v5  ;;  %11236 = vmatprep.mubr.msk.bf16.mxu1 %vm11794_vm2, %v11792_v0 }
 0x3fd   :  { %v10958_v27 = vpop.f32.mrf.mxu1  ;;  %11222 = vmatprep.subr.bf16.mxu1 %v11792_v0  ;;  %11249 = vmatpush3.bf16.msra.mxu0 %v11759_v9 }
 0x3fe   :  { %v5981_v41 = vadd.f32 %v5974_v51, %v5865_v43  ;;  %11250 = vmatprep.subr.bf16.mxu0 %v11792_v0  ;;  %v11764_v43 = vld [vmem:[%s14386_s7 + $0x18] sm:$0xff]  }
 0x3ff   :  { %v5861_v47 = vpop.f32.mrf.mxu1 }
 0x400   :  { %v5866_v54 = vadd.f32 %v5861_v47, %v5750_v7  ;;  %11223 = vmatpush3.bf16.msra.mxu1 %v11747_v16 }
 0x401   :  { %v10959_v20 = vpop.f32.mrf.mxu1  ;;  %11224 = vmatprep.subr.bf16.mxu1 %v11792_v0  ;;  %11251 = vmatpush3.bf16.msra.mxu0 %v11760_v22 }
 0x402   :  { %v5982_v49 = vadd.f32 %v5977_v26, %v5866_v54  ;;  %11252 = vmatprep.subr.bf16.mxu0 %v11792_v0  ;;  %v11766_v54 = vld [vmem:[%s14386_s7 + $0x8] sm:$0xff]  }
 0x404   :  { %11225 = vmatpush3.bf16.msra.mxu1 %v11748_v10  ;;  %v14251_v10 = vld [vmem:[%s14387_s6] ss:$0 sm:$0xff] }
 0x405   :  { %11226 = vmatprep.subr.bf16.mxu1 %v11792_v0  ;;  %11253 = vmatpush3.bf16.msra.mxu0 %v11761_v29 }
 0x406   :  { %11254 = vmatprep.subr.bf16.mxu0 %v11792_v0 }
 0x408   :  { %11227 = vmatpush3.bf16.msra.mxu1 %v11749_v57  ;;  %v11767_v57 = vld [vmem:[%s14386_s7] sm:$0xff]  }
 0x409   :  { %11228 = vmatprep.subr.bf16.mxu1 %v11792_v0  ;;  %11255 = vmatpush3.bf16.msra.mxu0 %v11762_v46 }
 0x40a   :  { %11284 = vmatprep.subr.bf16.mxu0 %v11792_v0 }
 0x40b   :  { %v6206_v18 = vpop.f32.mrf.mxu0 }
 0x40c   :  { %11229 = vmatpush3.bf16.msra.mxu1 %v11750_v42 }
 0x40d   :  { %v11018_v40 = vpop.f32.mrf.mxu0  ;;  %11230 = vmatprep.subr.bf16.mxu1 %v11792_v0 }
 0x40f   :  { %v6209_v13 = vpop.f32.mrf.mxu0 }
 0x410   :  { %11231 = vmatpush3.bf16.msra.mxu1 %v11751_v32 }
 0x411   :  { %v11019_v19 = vpop.f32.mrf.mxu0  ;;  %11232 = vmatprep.subr.bf16.mxu1 %v11792_v0 }
 0x412   :  { %v11772_v19 = vld [vmem:[%s14386_s7 + $0x28] sm:$0xff]  }
 0x414   :  { %11233 = vmatpush3.bf16.msra.mxu1 %v11752_v12  ;;  %v11770_v12 = vld [vmem:[%s14386_s7 + $0x30] sm:$0xff]  }
 0x415   :  { %11234 = vmatprep.subr.bf16.mxu1 %v11792_v0 }
 0x418   :  { %11235 = vmatpush3.bf16.msra.mxu1 %v11753_v52  ;;  %v11774_v52 = vld [vmem:[%s14386_s7 + $0x20] sm:$0xff]  }
 0x419   :  { %11260 = vmatprep.subr.bf16.mxu1 %v11792_v0 }
 0x41b   :  { %v6090_v17 = vpop.f32.mrf.mxu1  ;;  %11237 = vmatmul.mubr.bf16.vlgmr.msra.gmra.mxu1 %v11754_v2 }
 0x41c   :  { %v6097_v24 = vadd.f32 %v6090_v17, %v5981_v41  ;;  %11268 = vmatprep.mubr.msk.bf16.mxu1 %vm11794_vm2, %v11792_v0  ;;  %11261 = vmatpush3.bf16.msra.mxu1 %v11764_v43  ;;  %v11765_v41 = vld [vmem:[%s14386_s7 + $0x10] sm:$0xff]   ;;  %v11776_v17 = vld [vmem:[%s14386_s7 + $0x98] sm:$0xff]  }
 0x41d   :  { %v10998_v28 = vpop.f32.mrf.mxu1  ;;  %11262 = vmatprep.subr.bf16.mxu1 %v11792_v0 }
 0x41e   :  { %v6213_v55 = vadd.f32 %v6206_v18, %v6097_v24  ;;  %v11768_v18 = vld [vmem:[%s14386_s7 + $0x38] sm:$0xff]  }
 0x41f   :  { %v6093_v62 = vpop.f32.mrf.mxu1 }
 0x420   :  { %v6098_v56 = vadd.f32 %v6093_v62, %v5982_v49  ;;  %11263 = vmatpush3.bf16.msra.mxu1 %v11765_v41  ;;  %v6727_v49 = vmax.f32 %v14251_v10, 0.0 }
 0x421   :  { %v10999_v35 = vpop.f32.mrf.mxu1  ;;  %11264 = vmatprep.subr.bf16.mxu1 %v11792_v0 }
 0x422   :  { %v6214_v1 = vadd.f32 %v6209_v13, %v6098_v56  ;;  %v14261_v40 = vpack.c.bf16 %v6727_v49, %v6727_v49 }
 0x424   :  { %11265 = vmatpush3.bf16.msra.mxu1 %v11766_v54 }
 0x425   :  { %11266 = vmatprep.subr.bf16.mxu1 %v11792_v0 }
 0x428   :  { %11267 = vmatpush3.bf16.msra.mxu1 %v11767_v57  ;;  %v11777_v57 = vld [vmem:[%s14386_s7 + $0x90] sm:$0xff]  }
 0x429   :  { %11272 = vmatprep.subr.bf16.mxu1 %v11792_v0 }
 0x42b   :  { %v6376_v25 = vpop.f32.mrf.mxu0  ;;  %11269 = vmatmul.mubr.msk.bf16.vlgmr.msra.gmra.mxu1 %vm7234_vm4, %v14261_v40 }
 0x42c   :  { %v6383_v38 = vadd.f32 %v14065_v44, %v6376_v25  ;;  %11273 = vmatpush3.bf16.msra.mxu1 %v11768_v18  ;;  %11280 = vmatprep.mubr.msk.bf16.mxu1 %vm11794_vm2, %v11792_v0  ;;  %v7524_v18 = vld [vmem:[%s14388_s9 + $0x38] sm:$0xff] }
 0x42d   :  { %v11058_v39 = vpop.f32.mrf.mxu0  ;;  %11274 = vmatprep.subr.bf16.mxu1 %v11792_v0 }
 0x42f   :  { %v6379_v50 = vpop.f32.mrf.mxu0 }
 0x430   :  { %v6384_v63 = vadd.f32 %v14065_v44, %v6379_v50  ;;  %11275 = vmatpush3.bf16.msra.mxu1 %v11770_v12 }
 0x431   :  { %v11059_v36 = vpop.f32.mrf.mxu0  ;;  %11276 = vmatprep.subr.bf16.mxu1 %v11792_v0 }
 0x434   :  { %11277 = vmatpush3.bf16.msra.mxu1 %v11772_v19 }
 0x435   :  { %11278 = vmatprep.subr.bf16.mxu1 %v11792_v0 }
 0x438   :  { %11279 = vmatpush3.bf16.msra.mxu1 %v11774_v52 }
 0x439   :  { %11296 = vmatprep.subr.bf16.mxu1 %v11792_v0 }
 0x43b   :  { %v6322_v33 = vpop.f32.mrf.mxu1  ;;  %11281 = vmatmul.mubr.msk.bf16.vlgmr.msra.gmra.mxu1 %vm7234_vm4, %v14261_v40 }
 0x43c   :  { %v6329_v58 = vadd.f32 %v6322_v33, %v6213_v55  ;;  %11297 = vmatpush3.bf16.msra.mxu1 %v11776_v17  ;;  %11304 = vmatprep.mubr.msk.bf16.mxu1 %vm11794_vm2, %v11792_v0 }
 0x43d   :  { %v11038_v53 = vpop.f32.mrf.mxu1  ;;  %11298 = vmatprep.subr.bf16.mxu1 %v11792_v0 }
 0x43e   :  { %v6331_v8 = vmax.f32 %v6329_v58, 0.0 }
 0x43f   :  { %v6325_v37 = vpop.f32.mrf.mxu1 }
 0x440   :  { %v6330_v45 = vadd.f32 %v6325_v37, %v6214_v1  ;;  %11299 = vmatpush3.bf16.msra.mxu1 %v11777_v57 }
 0x441   :  { %v11039_v48 = vpop.f32.mrf.mxu1  ;;  %11300 = vmatprep.subr.bf16.mxu1 %v11792_v0 }
 0x442   :  { %v6332_v16 = vmax.f32 %v6330_v45, 0.0 }
 0x44b   :  { %v6480_v23 = vpop.f32.mrf.mxu0 }
 0x44d   :  { %v11098_v4 = vpop.f32.mrf.mxu0 }
 0x44f   :  { %v6483_v7 = vpop.f32.mrf.mxu0 }
 0x451   :  { %v11099_v11 = vpop.f32.mrf.mxu0 }
 0x45b   :  { %v6428_v59 = vpop.f32.mrf.mxu1 }
 0x45c   :  { %v6435_v60 = vadd.f32 %v6428_v59, %v6383_v38 }
 0x45d   :  { %v11078_v51 = vpop.f32.mrf.mxu1 }
 0x45e   :  { %v6487_v14 = vadd.f32 %v6480_v23, %v6435_v60  ;;  %v11769_v60 = vld [vmem:[%s14386_s7 + $0x78] sm:$0xff]  }
 0x45f   :  { %v6431_v26 = vpop.f32.mrf.mxu1 }
 0x460   :  { %v6489_v6 = vmax.f32 %v6487_v14, 0.0  ;;  %v6436_v30 = vadd.f32 %v6431_v26, %v6384_v63  ;;  %v11771_v63 = vld [vmem:[%s14386_s7 + $0x70] sm:$0xff]   ;;  %v11773_v14 = vld [vmem:[%s14386_s7 + $0x68] sm:$0xff]  }
 0x461   :  { %v11079_v5 = vpop.f32.mrf.mxu1 }
 0x462   :  { %v6488_v34 = vadd.f32 %v6483_v7, %v6436_v30  ;;  %v14235_v15 = vmax.f32 %v6331_v8, %v6489_v6  ;;  %v11775_v6 = vld [vmem:[%s14386_s7 + $0x60] sm:$0xff]  }
 0x464   :  { %v6490_v27 = vmax.f32 %v6488_v34, 0.0 }
 0x466   :  { %v6492_v47 = vmax.f32 %v6332_v16, %v6490_v27 }
 0x46b   :  { %v6588_v20 = vpop.f32.mrf.mxu0 }
 0x46d   :  { %v11138_v42 = vpop.f32.mrf.mxu0 }
 0x46e   :  { %v11779_v42 = vld [vmem:[%s14386_s7 + $0x80] sm:$0xff]  }
 0x46f   :  { %v6591_v32 = vpop.f32.mrf.mxu0 }
 0x471   :  { %v11139_v13 = vpop.f32.mrf.mxu0 }
 0x47b   :  { %v6536_v31 = vpop.f32.mrf.mxu1 }
 0x47c   :  { %v6543_v61 = vadd.f32 %v14065_v44, %v6536_v31  ;;  %v8957_v31 = vld [vmem:[%s14389_s8] ss:$0 sm:$0xff] }
 0x47d   :  { %v11118_v3 = vpop.f32.mrf.mxu1 }
 0x47e   :  { %v6595_v35 = vadd.f32 %v6588_v20, %v6543_v61 }
 0x47f   :  { %v6539_v2 = vpop.f32.mrf.mxu1 }
 0x480   :  { %v6544_v56 = vadd.f32 %v14065_v44, %v6539_v2 }
 0x481   :  { %v11119_v21 = vpop.f32.mrf.mxu1 }
 0x482   :  { %v6596_v29 = vadd.f32 %v6591_v32, %v6544_v56  ;;  %v7523_v32 = vld [vmem:[%s14388_s9 + $0x30] sm:$0xff] }
 0x48b   :  { %v6696_v24 = vpop.f32.mrf.mxu0 }
 0x48c   :  { %v6703_v50 = vadd.f32 %v14065_v44, %v6696_v24 }
 0x48d   :  { %v11178_v28 = vpop.f32.mrf.mxu0 }
 0x48e   :  { %v6705_v37 = vmax.f32 %v6703_v50, 0.0 }
 0x48f   :  { %v6699_v55 = vpop.f32.mrf.mxu0 }
 0x490   :  { %v6704_v46 = vadd.f32 %v14065_v44, %v6699_v55 }
 0x491   :  { %v11179_v62 = vpop.f32.mrf.mxu0 }
 0x492   :  { %v6706_v45 = vmax.f32 %v6704_v46, 0.0 }
 0x49b   :  { %v6640_v1 = vpop.f32.mrf.mxu1 }
 0x49c   :  { %v6647_v9 = vadd.f32 %v6640_v1, %v6595_v35 }
 0x49d   :  { %v11158_v22 = vpop.f32.mrf.mxu1 }
 0x49e   :  { %v6649_v25 = vmax.f32 %v6647_v9, 0.0 }
 0x49f   :  { %v6643_v39 = vpop.f32.mrf.mxu1 }
 0x4a0   :  { %v6648_v36 = vadd.f32 %v6643_v39, %v6596_v29  ;;  %v6651_v58 = vmax.f32 %v14235_v15, %v6649_v25 }
 0x4a1   :  { %v11159_v33 = vpop.f32.mrf.mxu1 }
 0x4a2   :  { %v6650_v53 = vmax.f32 %v6648_v36, 0.0  ;;  %v6707_v23 = vmax.f32 %v6651_v58, %v6705_v37  ;;  %v7520_v37 = vld [vmem:[%s14388_s9 + $0x18] sm:$0xff] }
 0x4a4   :  { %v6652_v48 = vmax.f32 %v6492_v47, %v6650_v53  ;;  %v7521_v53 = vld [vmem:[%s14388_s9 + $0x20] sm:$0xff] }
 0x4a6   :  { %v6708_v4 = vmax.f32 %v6652_v48, %v6706_v45  ;;  %v7519_v45 = vld [vmem:[%s14388_s9 + $0x10] sm:$0xff]  ;;  %v7518_v48 = vld [vmem:[%s14388_s9 + $0x8] sm:$0xff] }
 0x4a8   :  { %v9377_v7 = vpack.c.bf16 %v6708_v4, %v6707_v23  ;;  %v7517_v23 = vld [vmem:[%s14388_s9] sm:$0xff]  ;;  %v7616_v4 = vld [vmem:[%s14390_s11 + $0x18] sm:$0xff] }
 0x4aa   :  { %9378 = vst [vmem:[#allocation3 + $0x18] sm:$0xff] %v9377_v7   ;;  %v7615_v7 = vld [vmem:[%s14390_s11 + $0x10] sm:$0xff] }
 0x4ab   :  { %v6950_v11 = vpop.f32.mrf.mxu0 }
 0x4ad   :  { %v11218_v38 = vpop.f32.mrf.mxu0 }
 0x4ae   :  { %v7200_v38 = vmax.f32 %v8957_v31, 0.0 }
 0x4af   :  { %v6953_v59 = vpop.f32.mrf.mxu0 }
 0x4b1   :  { %v11219_v44 = vpop.f32.mrf.mxu0  ;;  %v11763_v51 = vld [vmem:[#allocation3 + $0x18] sm:$0xff]  }
 0x4b2   :  { %11257 = vmatmul.mubr.bf16.vlgmr.msra.gmra.mxu0 %v11763_v51 }
 0x4b3   :  { %11285 = vmatpush3.bf16.msra.mxu0 %v11769_v60  ;;  %11292 = vmatprep.mubr.msk.bf16.mxu0 %vm11794_vm2, %v11792_v0 }
 0x4b4   :  { %11286 = vmatprep.subr.bf16.mxu0 %v11792_v0 }
 0x4b7   :  { %11287 = vmatpush3.bf16.msra.mxu0 %v11771_v63 }
 0x4b8   :  { %11288 = vmatprep.subr.bf16.mxu0 %v11792_v0 }
 0x4bb   :  { %v6834_v26 = vpop.f32.mrf.mxu1  ;;  %11289 = vmatpush3.bf16.msra.mxu0 %v11773_v14 }
 0x4bc   :  { %v6841_v8 = vadd.f32 %v14251_v10, %v6834_v26  ;;  %11290 = vmatprep.subr.bf16.mxu0 %v11792_v0 }
 0x4bd   :  { %v11198_v30 = vpop.f32.mrf.mxu1 }
 0x4be   :  { %v6957_v5 = vadd.f32 %v6950_v11, %v6841_v8  ;;  %v7614_v30 = vld [vmem:[%s14390_s11 + $0x8] sm:$0xff] }
 0x4bf   :  { %v6837_v34 = vpop.f32.mrf.mxu1  ;;  %11291 = vmatpush3.bf16.msra.mxu0 %v11775_v6 }
 0x4c0   :  { %v6842_v15 = vadd.f32 %v14251_v10, %v6837_v34  ;;  %v11778_v10 = vld [vmem:[%s14386_s7 + $0x88] sm:$0xff]   ;;  %11308 = vmatprep.subr.mxu0 %v7524_v18 }
 0x4c1   :  { %v11199_v43 = vpop.f32.mrf.mxu1  ;;  %11301 = vmatpush3.bf16.msra.mxu1 %v11778_v10 }
 0x4c2   :  { %v6958_v16 = vadd.f32 %v6953_v59, %v6842_v15  ;;  %11293 = vmatmul.mubr.msk.bf16.vlgmr.msra.gmra.mxu0 %vm7234_vm4, %v14261_v40  ;;  %11302 = vmatprep.subr.bf16.mxu1 %v11792_v0  ;;  %v7522_v40 = vld [vmem:[%s14388_s9 + $0x28] sm:$0xff]  ;;  %v9002_v15 = vld [vmem:[%s14391_s10] ss:$0 sm:$0xff] }
 0x4c3   :  { %11309 = vmatpush3.msra.mxu0 %v7524_v18 }
 0x4c4   :  { %11310 = vmatprep.subr.mxu0 %v7523_v32 }
 0x4c5   :  { %11303 = vmatpush3.bf16.msra.mxu1 %v11779_v42  ;;  %11311 = vmatpush3.msra.mxu0 %v7523_v32 }
 0x4c6   :  { %11312 = vmatprep.subr.mxu0 %v7522_v40  ;;  %11327 = vmatprep.subr.mxu1 %v7616_v4 }
 0x4c7   :  { %11313 = vmatpush3.msra.mxu0 %v7522_v40 }
 0x4c8   :  { %11314 = vmatprep.subr.mxu0 %v7521_v53 }
 0x4c9   :  { %11315 = vmatpush3.msra.mxu0 %v7521_v53 }
 0x4ca   :  { %11316 = vmatprep.subr.mxu0 %v7520_v37 }
 0x4cb   :  { %11317 = vmatpush3.msra.mxu0 %v7520_v37 }
 0x4cc   :  { %11318 = vmatprep.subr.mxu0 %v7519_v45 }
 0x4cd   :  { %11319 = vmatpush3.msra.mxu0 %v7519_v45 }
 0x4ce   :  { %11320 = vmatprep.subr.mxu0 %v7518_v48 }
 0x4cf   :  { %11321 = vmatpush3.msra.mxu0 %v7518_v48 }
 0x4d0   :  { %11322 = vmatprep.subr.mxu0 %v7517_v23 }
 0x4d1   :  { %11323 = vmatpush3.msra.mxu0 %v7517_v23 }
 0x4db   :  { %v7066_v27 = vpop.f32.mrf.mxu1 }
 0x4dc   :  { %v7073_v41 = vadd.f32 %v7066_v27, %v6957_v5  ;;  %v7613_v5 = vld [vmem:[%s14390_s11] sm:$0xff] }
 0x4dd   :  { %v11238_v47 = vpop.f32.mrf.mxu1 }
 0x4df   :  { %v7069_v54 = vpop.f32.mrf.mxu1 }
 0x4e0   :  { %v7074_v20 = vadd.f32 %v7069_v54, %v6958_v16 }
 0x4e1   :  { %v11239_v49 = vpop.f32.mrf.mxu1 }
 0x4eb   :  { %v7272_v0 = vpop.f32.mrf.mxu1 }
 0x4ec   :  { %v7279_v52 = vadd.f32 %v8957_v31, %v7272_v0 }
 0x4ed   :  { %v11270_v13 = vpop.f32.mrf.mxu1 }
 0x4ef   :  { %v7275_v12 = vpop.f32.mrf.mxu1 }
 0x4f0   :  { %v7280_v2 = vadd.f32 %v8957_v31, %v7275_v12 }
 0x4f1   :  { %v11271_v19 = vpop.f32.mrf.mxu1 }
 0x4fb   :  { %v7348_v3 = vpop.f32.mrf.mxu1 }
 0x4fc   :  { %v7355_v17 = vadd.f32 %v7348_v3, %v7279_v52 }
 0x4fd   :  { %v11282_v21 = vpop.f32.mrf.mxu1 }
 0x4ff   :  { %v7351_v24 = vpop.f32.mrf.mxu1 }
 0x500   :  { %v7356_v28 = vadd.f32 %v7351_v24, %v7280_v2 }
 0x501   :  { %v11283_v55 = vpop.f32.mrf.mxu1 }
 0x572   :  { %v7182_v62 = vpop.f32.mrf.mxu0 }
 0x573   :  { %v7189_v56 = vadd.f32 %v7182_v62, %v7073_v41  ;;  %v9005_v41 = vld [vmem:[%s14392_s12] ss:$0 sm:$0xff] }
 0x574   :  { %v11258_v61 = vpop.f32.mrf.mxu0 }
 0x575   :  { %v7191_v22 = vmax.f32 %v7189_v56, 0.0 }
 0x576   :  { %v7185_v35 = vpop.f32.mrf.mxu0 }
 0x577   :  { %v7190_v1 = vadd.f32 %v7185_v35, %v7074_v20 }
 0x578   :  { %v11259_v9 = vpop.f32.mrf.mxu0 }
 0x579   :  { %v7192_v25 = vmax.f32 %v7190_v1, 0.0 }
 0x57b   :  { %v7433_v29 = vpack.c.bf16 %v7192_v25, %v7191_v22 }
 0x57d   :  { %11305 = vmatmul.mubr.msk.bf16.vlgmr.msra.gmra.mxu1 %vm7234_vm4, %v7433_v29 }
 0x57e   :  { %11328 = vmatpush3.msra.mxu1 %v7616_v4 }
 0x57f   :  { %11329 = vmatprep.subr.mxu1 %v7615_v7 }
 0x580   :  { %11330 = vmatpush3.msra.mxu1 %v7615_v7 }
 0x581   :  { %11331 = vmatprep.subr.mxu1 %v7614_v30 }
 0x582   :  { %v7424_v39 = vpop.f32.mrf.mxu0  ;;  %11332 = vmatpush3.msra.mxu1 %v7614_v30 }
 0x583   :  { %v7431_v50 = vadd.f32 %v7424_v39, %v7355_v17  ;;  %11333 = vmatprep.subr.mxu1 %v7613_v5 }
 0x584   :  { %v11294_v46 = vpop.f32.mrf.mxu0  ;;  %11334 = vmatpush3.msra.mxu1 %v7613_v5 }
 0x586   :  { %v7427_v36 = vpop.f32.mrf.mxu0 }
 0x587   :  { %v7432_v33 = vadd.f32 %v7427_v36, %v7356_v28 }
 0x588   :  { %v11295_v58 = vpop.f32.mrf.mxu0 }
 0x63d   :  { %v7504_v11 = vpop.f32.mrf.mxu1 }
 0x63e   :  { %v7511_v59 = vadd.f32 %v7504_v11, %v7431_v50 }
 0x63f   :  { %v11306_v60 = vpop.f32.mrf.mxu1 }
 0x640   :  { %v7513_v44 = vmax.f32 %v7511_v59, 0.0 }
 0x641   :  { %v7507_v51 = vpop.f32.mrf.mxu1 }
 0x642   :  { %v7515_v63 = vmax.f32 %v7200_v38, %v7513_v44  ;;  %v7512_v14 = vadd.f32 %v7507_v51, %v7432_v33 }
 0x643   :  { %v11307_v26 = vpop.f32.mrf.mxu1 }
 0x644   :  { %v7514_v8 = vmax.f32 %v7512_v14, 0.0  ;;  %11324 = vmatprep.mubr.msk.f32.mxu0 %vm7234_vm4, %v7515_v63 }
 0x646   :  { %v7516_v6 = vmax.f32 %v7200_v38, %v7514_v8 }
 0x648   :  { %11325 = vmatmul.mubr.msk.f32.vlgmr.msra.gmra.mxu0 %vm7234_vm4, %v7516_v6 }
 0x708   :  { %v11326_v34 = vpop.f32.mrf.mxu0 }
 0x709   :  { %v7610_v27 = vadd.f32 %v11326_v34, %v9002_v15 }
 0x70a   :  { %v7604_v43 = vpop.f32.mrf.mxu0 }
 0x70b   :  { %v7605_v16 = vadd.f32 %v9002_v15, %v7604_v43 }
 0x70d   :  { %11335 = vmatprep.mubr.msk.f32.mxu1 %vm7624_vm5, %v7605_v16 }
 0x70e   :  { %11336 = vmatmul.mubr.msk.f32.vlgmr.msra.gmra.mxu1 %vm7624_vm5, %v7610_v27 }
 0x7ce   :  { %v11337_v47 = vpop.f32.mrf.mxu1 }
 0x7cf   :  { %v7703_v54 = vadd.f32 %v11337_v47, %v9005_v41 }
 0x7d0   :  { %v7697_v20 = vpop.f32.mrf.mxu1 }
 0x7d1   :  { %v7707_v49 = vand.u32 2147483647, %v7703_v54  ;;  %v7698_v57 = vadd.f32 %v9005_v41, %v7697_v20  ;;  %vm7715_vm6 = vcmp.ge.f32.partialorder %v7703_v54, 0.0 }
 0x7d3   :  { %v7709_v10 = vsub.f32 0.0, %v7707_v49  ;;  %v7706_v42 = vand.u32 2147483647, %v7698_v57  ;;  %vm7714_vm7 = vcmp.ge.f32.partialorder %v7698_v57, 0.0 }
 0x7d5   :  { %v7712_v18 = vmul.f32 1.442695, %v7709_v10  ;;  %v7708_v32 = vsub.f32 0.0, %v7706_v42 }
 0x7d7   :  { %11780 = vpow2.f32 %v7712_v18  ;;  %v7710_v40 = vmul.f32 1.442695, %v7708_v32 }
 0x7d9   :  { %11782 = vpow2.f32 %v7710_v40 }
 0x7e4   :  { %v11781_v0 = vpop.eup %11780 }
 0x7e5   :  { %v7717_v13 = vadd.f32 1.0, %v11781_v0 }
 0x7e6   :  { %v11783_v12 = vpop.eup %11782 }
 0x7e7   :  { %11784 = vrcp.f32 %v7717_v13  ;;  %v7716_v19 = vadd.f32 1.0, %v11783_v12 }
 0x7e9   :  { %11786 = vrcp.f32 %v7716_v19 }
 0x7f4   :  { %v11785_v31 = vpop.eup %11784 }
 0x7f5   :  { %v7723_v52 = vmul.f32 %v11785_v31, %v11781_v0 }
 0x7f6   :  { %v11787_v3 = vpop.eup %11786 }
 0x7f7   :  { %v7725_v2 = vsel %vm7715_vm6, %v11785_v31, %v7723_v52  ;;  %v7722_v17 = vmul.f32 %v11787_v3, %v11783_v12 }
 0x7f8   :  { %7727 = vst [vmem:[%s14393_s13 + $0x8] sm:$0xff] %v7725_v2 }
 0x7f9   :  { %v7724_v21 = vsel %vm7714_vm7, %v11787_v3, %v7722_v17 }
 0x7fa   :  { %7726 = vst [vmem:[%s14393_s13] sm:$0xff] %v7724_v21 }

</bundles_post_ra>
